<compile_context>
chip_gen: v7x
topology: tpu7x:2x2x1
jax: 0.10.0
libtpu: 0.0.40
codegen_flags: <defaults>
</compile_context>

<pallas_src>
import numpy as np
import jax
import jax.numpy as jnp
from jax.experimental import pallas as pl
from jax.experimental.pallas import tpu as pltpu

BN_EPS = 1e-5


# ----------------------------------------------------------------------------
# Fused whole-network kernel: one B-row batch block per grid step.
# ----------------------------------------------------------------------------
def _net_kernel(xr1_ref, b1m_ref, wmp_ref, w6m_ref, wfc_ref,
                bconv_ref, b6b_ref, bfc_ref, out_ref):
    """b1 -> (b2,b3,b4) -> concat -> b6 -> fc as dense lane-major matmuls.

    Activation layout: one row per batch element, lanes = flattened (h, w, c)
    feature map (512 lanes after b1..b4, 1536 for the channel concat, 32 after
    b6).  Every conv is a matmul against a trace-time Toeplitz matrix with both
    H and W zero-padding folded in, so there is no scratch, no window slicing,
    no masked stores and no serial accumulation chain (9 matmuls total).
    """
    f32, bf16 = jnp.float32, jnp.bfloat16
    n_pairs = xr1_ref.shape[0]
    bconv = bconv_ref[...]                                      # (4, 512) f32

    # ---- b1: Conv 5x5 / stride 4 / pad 1 (+BN folded) + ReLU ---------------
    # n_pairs independent matmuls (one per pair of output rows) sharing one
    # RHS; the lane-concat assembles the flattened (h, w, c) feature map.
    b1m = b1m_ref[...]                                          # (1152, 128) bf16
    pieces = [jnp.dot(xr1_ref[p], b1m, preferred_element_type=f32)
              for p in range(n_pairs)]
    f1 = jnp.concatenate(pieces, axis=-1)                       # (B, 512) f32
    f1 = jnp.maximum(f1 + bconv[0:1, :], 0.0).astype(bf16)

    # ---- MP block: b2, b3, b4 (3x3 / stride 1 / pad 1), one matmul each ----
    f2 = jnp.maximum(jnp.dot(f1, wmp_ref[0], preferred_element_type=f32)
                     + bconv[1:2, :], 0.0).astype(bf16)
    f3 = jnp.maximum(jnp.dot(f2, wmp_ref[1], preferred_element_type=f32)
                     + bconv[2:3, :], 0.0).astype(bf16)
    f4 = jnp.maximum(jnp.dot(f3, wmp_ref[2], preferred_element_type=f32)
                     + bconv[3:4, :], 0.0).astype(bf16)

    # ---- b6: Conv 9x9 / pad 1 over concat(f2, f3, f4): ONE matmul ----------
    # The channel concat is a lane concat at 512-lane (vreg) boundaries; the
    # three group Toeplitz matrices are stacked along K in the wrapper.
    f5 = jnp.concatenate([f2, f3, f4], axis=-1)                 # (B, 1536) bf16
    f6 = jnp.maximum(jnp.dot(f5, w6m_ref[...], preferred_element_type=f32)
                     + b6b_ref[...], 0.0).astype(bf16)          # (B, 32)

    # ---- fc (Flatten + Linear): ONE matmul, classes lane-padded to 128 -----
    out_ref[...] = (jnp.dot(f6, wfc_ref[...], preferred_element_type=f32)
                    + bfc_ref[...])


# ----------------------------------------------------------------------------
# Trace-time weight preparation: BN folding + "conv as matmul" matrices with
# all zero-padding folded in (built from static 0/1 numpy placement tensors).
# ----------------------------------------------------------------------------
def _fold_bn(w, gamma, beta, rmean, rvar):
    """Fold inference-mode BatchNorm into the conv weight -> (w', bias)."""
    scale = gamma * jax.lax.rsqrt(rvar + BN_EPS)
    return w * scale, beta - rmean * scale


def _place_same_conv(k, ih, iw, oh, ow, pad):
    """0/1 placement P[dh, dw, ih, iw, oh, ow] for a stride-1 conv; taps that
    fall into the zero padding are simply dropped (pad folded into weights)."""
    P = np.zeros((k, k, ih, iw, oh, ow), np.float32)
    for u in range(k):
        for v in range(k):
            for y in range(oh):
                a = y + u - pad
                if not 0 <= a < ih:
                    continue
                for z in range(ow):
                    b = z + v - pad
                    if 0 <= b < iw:
                        P[u, v, a, b, y, z] = 1.0
    return P


def _place_b1_pair(kh, kw, stride, pad, win_rows, iw, ow):
    """Placement for b1 over one pair of output rows.  Rows index the 9-row
    (top-H-padded) input window; W padding is folded (out-of-range taps drop)."""
    P = np.zeros((kh, kw, win_rows, iw, 2, ow), np.float32)
    for u in range(kh):
        for v in range(kw):
            for y in range(2):                      # output row within the pair
                r = stride * y + u                  # row inside the window
                for z in range(ow):
                    b = stride * z + v - pad
                    if 0 <= b < iw:
                        P[u, v, r, b, y, z] = 1.0
    return P


def _flat_conv_matrix(wt, place):
    """wt: (kh, kw, Cin, Cout); place: (kh, kw, A, B, Y, Z) 0/1 numpy constant.
    Returns (A*B*Cin, Y*Z*Cout): rows in (a, b, ci) order, cols in (y, z, co)
    order.  Each entry copies exactly one weight tap (or is zero), so no
    precision is lost."""
    m = jnp.einsum('uvabyz,uvic->abiyzc', jnp.asarray(place), wt)
    _, _, a, b, y, z = place.shape
    cin, cout = wt.shape[2], wt.shape[3]
    return m.reshape(a * b * cin, y * z * cout)


def _pick_block_b(n, max_b=32):
    """Batch rows per grid step: multiple of 8, and keep >= 2 grid steps when
    possible so both v7x TensorCores get work (harmless on 1-TC chips)."""
    if n >= 2 * max_b:
        return max_b
    return max(8, min(max_b, ((n + 15) // 16) * 8))


# ----------------------------------------------------------------------------
# Net.forward (wrapper: NCHW input, one pallas_call for the whole network)
# ----------------------------------------------------------------------------
@jax.jit
def net_forward(x_nchw, params):
    bf16 = jnp.bfloat16
    n_class = params["fc_b"].shape[0]
    x = jnp.transpose(x_nchw, (0, 2, 3, 1)).astype(jnp.float32)   # NCHW -> NHWC
    n, h, wdt, cin = x.shape
    assert h == 32 and wdt == 32, "kernel is specialized to 32x32 inputs"
    c = 8                                         # hidden channels
    oh1 = (h + 2 - 5) // 4 + 1                    # 8 : f1..f4 spatial size
    ow1 = (wdt + 2 - 5) // 4 + 1                  # 8
    assert oh1 == 8 and ow1 == 8 and oh1 % 2 == 0
    oh6 = oh1 + 2 - 9 + 1                         # 2 : f6 spatial size
    lanes6 = oh6 * oh6 * c                        # 32
    ncls_pad = ((n_class + 127) // 128) * 128     # dense unmasked output slab

    # ---- batch blocking (pad N up to a multiple of the block) --------------
    block_b = _pick_block_b(n)
    n_pad = ((n + block_b - 1) // block_b) * block_b
    if n_pad != n:
        x = jnp.pad(x, ((0, n_pad - n), (0, 0), (0, 0), (0, 0)))

    # ---- b1 input: one 9-row window per pair of output rows (top H pad only,
    #      W pad folded into the matrix).  (n_pairs, N, 9*32*cin) = (4, N, 1152)
    n_pairs = oh1 // 2
    win_rows = 4 + 5                              # stride + kernel height
    xp = jnp.pad(x, ((0, 0), (1, 0), (0, 0), (0, 0)))
    xr1 = jnp.stack(
        [xp[:, 8 * p:8 * p + win_rows].reshape(n_pad, win_rows * wdt * cin)
         for p in range(n_pairs)], axis=0).astype(bf16)

    # ---- Toeplitz conv matrices, BN folded --------------------------------
    w1f, bias1 = _fold_bn(*params["b1"])
    b1m = _flat_conv_matrix(
        w1f, _place_b1_pair(5, 5, 4, 1, win_rows, wdt, ow1)).astype(bf16)  # (1152,128)

    p3 = _place_same_conv(3, oh1, ow1, oh1, ow1, 1)
    wmp, bmp = [], []
    for name in ("b2", "b3", "b4"):
        wf, bb = _fold_bn(*params[name])
        wmp.append(_flat_conv_matrix(wf, p3))                    # (512, 512)
        bmp.append(bb)
    wmp = jnp.stack(wmp).astype(bf16)                            # (3, 512, 512)

    w6f, bias6 = _fold_bn(*params["b6"])
    p6 = _place_same_conv(9, oh1, ow1, oh6, oh6, 1)
    w6m = jnp.concatenate(
        [_flat_conv_matrix(w6f[:, :, g * c:(g + 1) * c, :], p6) for g in range(3)],
        axis=0).astype(bf16)                                     # (1536, 32)

    # fc: permute torch-(C,H,W)-flatten weight rows into (H,W,C) lane order,
    # pad classes to a full 128-lane slab.
    wfc = params["fc_w"].reshape(c, oh6, oh6, n_class)
    wfc = jnp.transpose(wfc, (1, 2, 0, 3)).reshape(lanes6, n_class)
    wfc = jnp.pad(wfc, ((0, 0), (0, ncls_pad - n_class))).astype(bf16)

    # ---- biases, tiled to the flattened (h, w, c) lane layout (f32) --------
    rep = oh1 * ow1
    bconv = jnp.stack([jnp.tile(bias1, rep), jnp.tile(bmp[0], rep),
                       jnp.tile(bmp[1], rep), jnp.tile(bmp[2], rep)])  # (4, 512)
    b6b = jnp.tile(bias6, oh6 * oh6).reshape(1, lanes6)
    bfc = jnp.pad(params["fc_b"], (0, ncls_pad - n_class)).reshape(1, ncls_pad)

    grid = (n_pad // block_b,)
    out = pl.pallas_call(
        _net_kernel,
        grid=grid,
        in_specs=[
            pl.BlockSpec((n_pairs, block_b, win_rows * wdt * cin),
                         lambda i: (0, i, 0)),
            pl.BlockSpec(b1m.shape, lambda i: (0, 0)),
            pl.BlockSpec(wmp.shape, lambda i: (0, 0, 0)),
            pl.BlockSpec(w6m.shape, lambda i: (0, 0)),
            pl.BlockSpec(wfc.shape, lambda i: (0, 0)),
            pl.BlockSpec(bconv.shape, lambda i: (0, 0)),
            pl.BlockSpec(b6b.shape, lambda i: (0, 0)),
            pl.BlockSpec(bfc.shape, lambda i: (0, 0)),
        ],
        out_specs=pl.BlockSpec((block_b, ncls_pad), lambda i: (i, 0)),
        out_shape=jax.ShapeDtypeStruct((n_pad, ncls_pad), jnp.float32),
        compiler_params=pltpu.CompilerParams(
            dimension_semantics=("parallel",)),       # shard batch blocks on v7x
    )(xr1, b1m, wmp, w6m, wfc, bconv, b6b, bfc)
    return out[:n, :n_class]


# ----------------------------------------------------------------------------
# Parameter construction (deterministic, synthetic)
# ----------------------------------------------------------------------------
def make_conv_block_params(key, cin, cout, kh, kw):
    # NOTE: weights generated directly in (KH, KW, Cin, Cout) layout; real
    # PyTorch weights ((Cout, Cin, KH, KW)) would need a transpose.
    kw_key, kg_key, kb_key = jax.random.split(key, 3)
    w = 0.1 * jax.random.normal(kw_key, (kh, kw, cin, cout), jnp.float32)
    gamma = 1.0 + 0.1 * jax.random.normal(kg_key, (cout,), jnp.float32)
    beta = 0.1 * jax.random.normal(kb_key, (cout,), jnp.float32)
    rmean = jnp.zeros((cout,), jnp.float32)
    rvar = jnp.ones((cout,), jnp.float32)
    return (w, gamma, beta, rmean, rvar)


def make_net_params(key, in_channels, n_class):
    keys = jax.random.split(key, 7)
    fc_in = 8 * 2 * 2          # channels * spatial after b6 (LazyLinear infers this)
    return {
        "b1": make_conv_block_params(keys[0], in_channels, 8, 5, 5),
        "b2": make_conv_block_params(keys[1], 8, 8, 3, 3),
        "b3": make_conv_block_params(keys[2], 8, 8, 3, 3),
        "b4": make_conv_block_params(keys[3], 8, 8, 3, 3),
        "b6": make_conv_block_params(keys[4], 24, 8, 9, 9),
        # fc weight rows follow torch.flatten's (C, H, W) order of NCHW f6.
        "fc_w": 0.1 * jax.random.normal(keys[5], (fc_in, n_class), jnp.float32),
        "fc_b": 0.1 * jax.random.normal(keys[6], (n_class,), jnp.float32),
    }


# ----------------------------------------------------------------------------
# Plain-JAX/XLA reference (same bf16 rounding points as the kernel)
# ----------------------------------------------------------------------------
@jax.jit
def reference_forward(x_nchw, params):
    bf16 = jnp.bfloat16

    def block(x, p, stride, pad):
        wf, b = _fold_bn(*p)
        y = jax.lax.conv_general_dilated(
            x.astype(bf16), wf.astype(bf16),
            window_strides=(stride, stride),
            padding=[(pad, pad), (pad, pad)],
            dimension_numbers=("NHWC", "HWIO", "NHWC"),
            preferred_element_type=jnp.float32)
        return jnp.maximum(y + b, 0.0)

    x = jnp.transpose(x_nchw, (0, 2, 3, 1))
    f1 = block(x, params["b1"], 4, 1)
    f2 = block(f1, params["b2"], 1, 1)
    f3 = block(f2, params["b3"], 1, 1)
    f4 = block(f3, params["b4"], 1, 1)
    f5 = jnp.concatenate([f2, f3, f4], axis=-1)
    f6 = block(f5, params["b6"], 1, 1)
    f7 = jnp.transpose(f6, (0, 3, 1, 2)).reshape(f6.shape[0], -1)  # torch flatten
    return jnp.dot(f7.astype(bf16), params["fc_w"].astype(bf16),
                   preferred_element_type=jnp.float32) + params["fc_b"]


if __name__ == "__main__":
    N, C_IN, H, W = 64, 4, 32, 32    # H=W=32: smallest natural size for which
    N_CLASS = 10                     # the 9x9 conv after the stride-4 b1 fits.
                                     # N=64 -> 2 batch blocks of 32 (even grid).
    root = jax.random.PRNGKey(0)
    k_x, k_p = jax.random.split(root)
    x = jax.random.normal(k_x, (N, C_IN, H, W), jnp.float32)     # NCHW, like PyTorch
    params = make_net_params(k_p, C_IN, N_CLASS)

    out = jax.block_until_ready(net_forward(x, params))
    assert out.shape == (N, N_CLASS), out.shape

    ref = jax.block_until_ready(reference_forward(x, params))
    err = float(jnp.max(jnp.abs(out - ref)))
    scale = float(jnp.max(jnp.abs(ref)))
    assert err <= 5e-2 + 2e-2 * scale, \
        f"max |pallas - reference| = {err} (ref scale {scale})"
    print("KERNEL_OK")
</pallas_src>

<mosaic_0001>
module attributes {stable_mosaic.version = 11 : i64} {
  func.func @_net_kernel(%arg0: i32, %arg1: memref<4x32x1152xbf16, #tpu.memory_space<vmem>>, %arg2: memref<1152x128xbf16, #tpu.memory_space<vmem>>, %arg3: memref<3x512x512xbf16, #tpu.memory_space<vmem>>, %arg4: memref<1536x32xbf16, #tpu.memory_space<vmem>>, %arg5: memref<32x128xbf16, #tpu.memory_space<vmem>>, %arg6: memref<4x512xf32, #tpu.memory_space<vmem>>, %arg7: memref<1x32xf32, #tpu.memory_space<vmem>>, %arg8: memref<1x128xf32, #tpu.memory_space<vmem>>, %arg9: memref<32x128xf32, #tpu.memory_space<vmem>>) attributes {dimension_semantics = [#tpu.dimension_semantics<parallel>], iteration_bounds = array<i64: 2>, scalar_prefetch = 0 : i64, scratch_operands = 0 : i64, tpu.core_type = #tpu.core_type<tc>, window_params = [{transform_indices = @transform_0, window_bounds = array<i64: 4, 32, 1152>}, {pipeline_mode = #tpu.pipeline_mode<synchronous>, transform_indices = @transform_1, window_bounds = array<i64: 1152, 128>}, {pipeline_mode = #tpu.pipeline_mode<synchronous>, transform_indices = @transform_2, window_bounds = array<i64: 3, 512, 512>}, {pipeline_mode = #tpu.pipeline_mode<synchronous>, transform_indices = @transform_3, window_bounds = array<i64: 1536, 32>}, {pipeline_mode = #tpu.pipeline_mode<synchronous>, transform_indices = @transform_4, window_bounds = array<i64: 32, 128>}, {pipeline_mode = #tpu.pipeline_mode<synchronous>, transform_indices = @transform_5, window_bounds = array<i64: 4, 512>}, {pipeline_mode = #tpu.pipeline_mode<synchronous>, transform_indices = @transform_6, window_bounds = array<i64: 1, 32>}, {pipeline_mode = #tpu.pipeline_mode<synchronous>, transform_indices = @transform_7, window_bounds = array<i64: 1, 128>}, {transform_indices = @transform_8, window_bounds = array<i64: 32, 128>}]} {
    %c0 = arith.constant 0 : index
    %c0_0 = arith.constant 0 : index
    %0 = vector.load %arg6[%c0, %c0_0] : memref<4x512xf32, #tpu.memory_space<vmem>>, vector<4x512xf32>
    %c0_1 = arith.constant 0 : index
    %c0_2 = arith.constant 0 : index
    %1 = vector.load %arg2[%c0_1, %c0_2] : memref<1152x128xbf16, #tpu.memory_space<vmem>>, vector<1152x128xbf16>
    %c0_3 = arith.constant 0 : index
    %c0_4 = arith.constant 0 : index
    %c0_5 = arith.constant 0 : index
    %2 = vector.load %arg1[%c0_3, %c0_4, %c0_5] : memref<4x32x1152xbf16, #tpu.memory_space<vmem>>, vector<1x32x1152xbf16>
    %3 = vector.shape_cast %2 : vector<1x32x1152xbf16> to vector<32x1152xbf16>
    %cst = arith.constant dense<0.000000e+00> : vector<32x128xf32>
    %4 = tpu.matmul %3, %1, %cst {dimension_numbers = #tpu.dot_dimension_numbers<[1], [0], [0], [1], [0, 0, 1, 1], [], []>} : vector<32x1152xbf16>, vector<1152x128xbf16>, vector<32x128xf32> -> vector<32x128xf32>
    %c1 = arith.constant 1 : index
    %c0_6 = arith.constant 0 : index
    %c0_7 = arith.constant 0 : index
    %5 = vector.load %arg1[%c1, %c0_6, %c0_7] : memref<4x32x1152xbf16, #tpu.memory_space<vmem>>, vector<1x32x1152xbf16>
    %6 = vector.shape_cast %5 : vector<1x32x1152xbf16> to vector<32x1152xbf16>
    %cst_8 = arith.constant dense<0.000000e+00> : vector<32x128xf32>
    %7 = tpu.matmul %6, %1, %cst_8 {dimension_numbers = #tpu.dot_dimension_numbers<[1], [0], [0], [1], [0, 0, 1, 1], [], []>} : vector<32x1152xbf16>, vector<1152x128xbf16>, vector<32x128xf32> -> vector<32x128xf32>
    %c2 = arith.constant 2 : index
    %c0_9 = arith.constant 0 : index
    %c0_10 = arith.constant 0 : index
    %8 = vector.load %arg1[%c2, %c0_9, %c0_10] : memref<4x32x1152xbf16, #tpu.memory_space<vmem>>, vector<1x32x1152xbf16>
    %9 = vector.shape_cast %8 : vector<1x32x1152xbf16> to vector<32x1152xbf16>
    %cst_11 = arith.constant dense<0.000000e+00> : vector<32x128xf32>
    %10 = tpu.matmul %9, %1, %cst_11 {dimension_numbers = #tpu.dot_dimension_numbers<[1], [0], [0], [1], [0, 0, 1, 1], [], []>} : vector<32x1152xbf16>, vector<1152x128xbf16>, vector<32x128xf32> -> vector<32x128xf32>
    %c3 = arith.constant 3 : index
    %c0_12 = arith.constant 0 : index
    %c0_13 = arith.constant 0 : index
    %11 = vector.load %arg1[%c3, %c0_12, %c0_13] : memref<4x32x1152xbf16, #tpu.memory_space<vmem>>, vector<1x32x1152xbf16>
    %12 = vector.shape_cast %11 : vector<1x32x1152xbf16> to vector<32x1152xbf16>
    %cst_14 = arith.constant dense<0.000000e+00> : vector<32x128xf32>
    %13 = tpu.matmul %12, %1, %cst_14 {dimension_numbers = #tpu.dot_dimension_numbers<[1], [0], [0], [1], [0, 0, 1, 1], [], []>} : vector<32x1152xbf16>, vector<1152x128xbf16>, vector<32x128xf32> -> vector<32x128xf32>
    %14 = tpu.concatenate %4, %7, %10, %13 in 1 : vector<32x128xf32>, vector<32x128xf32>, vector<32x128xf32>, vector<32x128xf32> -> vector<32x512xf32>
    %15 = vector.extract_strided_slice %0 {offsets = [0, 0], sizes = [1, 512], strides = [1, 1]} : vector<4x512xf32> to vector<1x512xf32>
    %16 = vector.broadcast %15 : vector<1x512xf32> to vector<32x512xf32>
    %17 = arith.addf %14, %16 : vector<32x512xf32>
    %cst_15 = arith.constant 0.000000e+00 : f32
    %18 = vector.broadcast %cst_15 : f32 to vector<32x512xf32>
    %19 = arith.maximumf %17, %18 : vector<32x512xf32>
    %20 = arith.truncf %19 : vector<32x512xf32> to vector<32x512xbf16>
    %c0_16 = arith.constant 0 : index
    %c0_17 = arith.constant 0 : index
    %c0_18 = arith.constant 0 : index
    %21 = vector.load %arg3[%c0_16, %c0_17, %c0_18] : memref<3x512x512xbf16, #tpu.memory_space<vmem>>, vector<1x512x512xbf16>
    %22 = vector.shape_cast %21 : vector<1x512x512xbf16> to vector<512x512xbf16>
    %cst_19 = arith.constant dense<0.000000e+00> : vector<32x512xf32>
    %23 = tpu.matmul %20, %22, %cst_19 {dimension_numbers = #tpu.dot_dimension_numbers<[1], [0], [0], [1], [0, 0, 1, 1], [], []>} : vector<32x512xbf16>, vector<512x512xbf16>, vector<32x512xf32> -> vector<32x512xf32>
    %24 = vector.extract_strided_slice %0 {offsets = [1, 0], sizes = [1, 512], strides = [1, 1]} : vector<4x512xf32> to vector<1x512xf32>
    %25 = vector.broadcast %24 : vector<1x512xf32> to vector<32x512xf32>
    %26 = arith.addf %23, %25 : vector<32x512xf32>
    %cst_20 = arith.constant 0.000000e+00 : f32
    %27 = vector.broadcast %cst_20 : f32 to vector<32x512xf32>
    %28 = arith.maximumf %26, %27 : vector<32x512xf32>
    %29 = arith.truncf %28 : vector<32x512xf32> to vector<32x512xbf16>
    %c1_21 = arith.constant 1 : index
    %c0_22 = arith.constant 0 : index
    %c0_23 = arith.constant 0 : index
    %30 = vector.load %arg3[%c1_21, %c0_22, %c0_23] : memref<3x512x512xbf16, #tpu.memory_space<vmem>>, vector<1x512x512xbf16>
    %31 = vector.shape_cast %30 : vector<1x512x512xbf16> to vector<512x512xbf16>
    %cst_24 = arith.constant dense<0.000000e+00> : vector<32x512xf32>
    %32 = tpu.matmul %29, %31, %cst_24 {dimension_numbers = #tpu.dot_dimension_numbers<[1], [0], [0], [1], [0, 0, 1, 1], [], []>} : vector<32x512xbf16>, vector<512x512xbf16>, vector<32x512xf32> -> vector<32x512xf32>
    %33 = vector.extract_strided_slice %0 {offsets = [2, 0], sizes = [1, 512], strides = [1, 1]} : vector<4x512xf32> to vector<1x512xf32>
    %34 = vector.broadcast %33 : vector<1x512xf32> to vector<32x512xf32>
    %35 = arith.addf %32, %34 : vector<32x512xf32>
    %cst_25 = arith.constant 0.000000e+00 : f32
    %36 = vector.broadcast %cst_25 : f32 to vector<32x512xf32>
    %37 = arith.maximumf %35, %36 : vector<32x512xf32>
    %38 = arith.truncf %37 : vector<32x512xf32> to vector<32x512xbf16>
    %c2_26 = arith.constant 2 : index
    %c0_27 = arith.constant 0 : index
    %c0_28 = arith.constant 0 : index
    %39 = vector.load %arg3[%c2_26, %c0_27, %c0_28] : memref<3x512x512xbf16, #tpu.memory_space<vmem>>, vector<1x512x512xbf16>
    %40 = vector.shape_cast %39 : vector<1x512x512xbf16> to vector<512x512xbf16>
    %cst_29 = arith.constant dense<0.000000e+00> : vector<32x512xf32>
    %41 = tpu.matmul %38, %40, %cst_29 {dimension_numbers = #tpu.dot_dimension_numbers<[1], [0], [0], [1], [0, 0, 1, 1], [], []>} : vector<32x512xbf16>, vector<512x512xbf16>, vector<32x512xf32> -> vector<32x512xf32>
    %42 = vector.extract_strided_slice %0 {offsets = [3, 0], sizes = [1, 512], strides = [1, 1]} : vector<4x512xf32> to vector<1x512xf32>
    %43 = vector.broadcast %42 : vector<1x512xf32> to vector<32x512xf32>
    %44 = arith.addf %41, %43 : vector<32x512xf32>
    %cst_30 = arith.constant 0.000000e+00 : f32
    %45 = vector.broadcast %cst_30 : f32 to vector<32x512xf32>
    %46 = arith.maximumf %44, %45 : vector<32x512xf32>
    %47 = arith.truncf %46 : vector<32x512xf32> to vector<32x512xbf16>
    %48 = tpu.concatenate %29, %38, %47 in 1 : vector<32x512xbf16>, vector<32x512xbf16>, vector<32x512xbf16> -> vector<32x1536xbf16>
    %c0_31 = arith.constant 0 : index
    %c0_32 = arith.constant 0 : index
    %49 = vector.load %arg4[%c0_31, %c0_32] : memref<1536x32xbf16, #tpu.memory_space<vmem>>, vector<1536x32xbf16>
    %cst_33 = arith.constant dense<0.000000e+00> : vector<32x32xf32>
    %50 = tpu.matmul %48, %49, %cst_33 {dimension_numbers = #tpu.dot_dimension_numbers<[1], [0], [0], [1], [0, 0, 1, 1], [], []>} : vector<32x1536xbf16>, vector<1536x32xbf16>, vector<32x32xf32> -> vector<32x32xf32>
    %c0_34 = arith.constant 0 : index
    %c0_35 = arith.constant 0 : index
    %51 = vector.load %arg7[%c0_34, %c0_35] : memref<1x32xf32, #tpu.memory_space<vmem>>, vector<1x32xf32>
    %52 = vector.broadcast %51 : vector<1x32xf32> to vector<32x32xf32>
    %53 = arith.addf %50, %52 : vector<32x32xf32>
    %cst_36 = arith.constant 0.000000e+00 : f32
    %54 = vector.broadcast %cst_36 : f32 to vector<32x32xf32>
    %55 = arith.maximumf %53, %54 : vector<32x32xf32>
    %56 = arith.truncf %55 : vector<32x32xf32> to vector<32x32xbf16>
    %c0_37 = arith.constant 0 : index
    %c0_38 = arith.constant 0 : index
    %57 = vector.load %arg5[%c0_37, %c0_38] : memref<32x128xbf16, #tpu.memory_space<vmem>>, vector<32x128xbf16>
    %cst_39 = arith.constant dense<0.000000e+00> : vector<32x128xf32>
    %58 = tpu.matmul %56, %57, %cst_39 {dimension_numbers = #tpu.dot_dimension_numbers<[1], [0], [0], [1], [0, 0, 1, 1], [], []>} : vector<32x32xbf16>, vector<32x128xbf16>, vector<32x128xf32> -> vector<32x128xf32>
    %c0_40 = arith.constant 0 : index
    %c0_41 = arith.constant 0 : index
    %59 = vector.load %arg8[%c0_40, %c0_41] : memref<1x128xf32, #tpu.memory_space<vmem>>, vector<1x128xf32>
    %60 = vector.broadcast %59 : vector<1x128xf32> to vector<32x128xf32>
    %61 = arith.addf %58, %60 : vector<32x128xf32>
    %c0_42 = arith.constant 0 : index
    %c0_43 = arith.constant 0 : index
    %62 = vector.load %arg9[%c0_42, %c0_43] : memref<32x128xf32, #tpu.memory_space<vmem>>, vector<32x128xf32>
    tpu.vector_store %arg9[%c0_42, %c0_43], %61 {strides = array<i32>} : memref<32x128xf32, #tpu.memory_space<vmem>>, vector<32x128xf32>,
    return
  }
  func.func @transform_0(%arg0: i32) -> (i32, i32, i32) {
    %c0_i32 = arith.constant 0 : i32
    %c0_i32_0 = arith.constant 0 : i32
    %c0_i32_1 = arith.constant 0 : i32
    return %c0_i32, %arg0, %c0_i32_0 : i32, i32, i32
  }
  func.func @transform_1(%arg0: i32) -> (i32, i32) {
    %c0_i32 = arith.constant 0 : i32
    %c0_i32_0 = arith.constant 0 : i32
    %c0_i32_1 = arith.constant 0 : i32
    return %c0_i32, %c0_i32_0 : i32, i32
  }
  func.func @transform_2(%arg0: i32) -> (i32, i32, i32) {
    %c0_i32 = arith.constant 0 : i32
    %c0_i32_0 = arith.constant 0 : i32
    %c0_i32_1 = arith.constant 0 : i32
    %c0_i32_2 = arith.constant 0 : i32
    return %c0_i32, %c0_i32_0, %c0_i32_1 : i32, i32, i32
  }
  func.func @transform_3(%arg0: i32) -> (i32, i32) {
    %c0_i32 = arith.constant 0 : i32
    %c0_i32_0 = arith.constant 0 : i32
    %c0_i32_1 = arith.constant 0 : i32
    return %c0_i32, %c0_i32_0 : i32, i32
  }
  func.func @transform_4(%arg0: i32) -> (i32, i32) {
    %c0_i32 = arith.constant 0 : i32
    %c0_i32_0 = arith.constant 0 : i32
    %c0_i32_1 = arith.constant 0 : i32
    return %c0_i32, %c0_i32_0 : i32, i32
  }
  func.func @transform_5(%arg0: i32) -> (i32, i32) {
    %c0_i32 = arith.constant 0 : i32
    %c0_i32_0 = arith.constant 0 : i32
    %c0_i32_1 = arith.constant 0 : i32
    return %c0_i32, %c0_i32_0 : i32, i32
  }
  func.func @transform_6(%arg0: i32) -> (i32, i32) {
    %c0_i32 = arith.constant 0 : i32
    %c0_i32_0 = arith.constant 0 : i32
    %c0_i32_1 = arith.constant 0 : i32
    return %c0_i32, %c0_i32_0 : i32, i32
  }
  func.func @transform_7(%arg0: i32) -> (i32, i32) {
    %c0_i32 = arith.constant 0 : i32
    %c0_i32_0 = arith.constant 0 : i32
    %c0_i32_1 = arith.constant 0 : i32
    return %c0_i32, %c0_i32_0 : i32, i32
  }
  func.func @transform_8(%arg0: i32) -> (i32, i32) {
    %c0_i32 = arith.constant 0 : i32
    %c0_i32_0 = arith.constant 0 : i32
    return %arg0, %c0_i32 : i32, i32
  }
}

</mosaic_0001>

<bundles_post_ra>
// kernel: tile.40
= control target key start
LH: loop header
LB: loop body
LE: loop exit
PB: predicated region body
PF: predicated region fallthrough
CT: control target
= control target key end

     0   :  { %s64_s0 = inlined_call_operand.vmem [shape: f32[8], index: 0, kind: input, shape index: {}]   ;;  %s65_s1 = inlined_call_operand.vmem [shape: f32[64,8], index: 1, kind: output, shape index: {}]  }
   0x1   :  { %v4_v0 = vld [vmem:[%s64_s0] ss:$0 sm:$0xff] }
   0x2   :  { %5 = vst [vmem:[%s65_s1] sm:$0xff] %v4_v0  ;;  %20 = vst [vmem:[%s65_s1 + $0x8] sm:$0xff] %v4_v0 }
   0x3   :  { %21 = vst [vmem:[%s65_s1 + $0x10] sm:$0xff] %v4_v0  ;;  %22 = vst [vmem:[%s65_s1 + $0x18] sm:$0xff] %v4_v0 }
   0x4   :  { %23 = vst [vmem:[%s65_s1 + $0x20] sm:$0xff] %v4_v0  ;;  %24 = vst [vmem:[%s65_s1 + $0x28] sm:$0xff] %v4_v0 }
   0x5   :  { %25 = vst [vmem:[%s65_s1 + $0x30] sm:$0xff] %v4_v0  ;;  %26 = vst [vmem:[%s65_s1 + $0x38] sm:$0xff] %v4_v0 }

// kernel: tile.44
= control target key start
LH: loop header
LB: loop body
LE: loop exit
PB: predicated region body
PF: predicated region fallthrough
CT: control target
= control target key end

     0   :  { %vm6_vm0 = vcmask 1043458   ;;  %s11_s6 = smov 3  ;;  %s14_s7 = smov 12  ;;  %vm8_vm1 = vcmask 64512   ;;  %vm20_vm2 = vcmask 1048512   ;;  %vm32_vm3 = vcmask 982912   ;;  %s412_s0 = inlined_call_operand.vmem [shape: f32[64,8], index: 0, kind: input, shape index: {}]   ;;  %s413_s1 = inlined_call_operand.vmem [shape: f32[1,512], index: 1, kind: output, shape index: {}]  }
   0x1   :  { %v215_v0 = vld [vmem:[%s412_s0 + $0xf] ss:$16 sm:%s11_s6]   ;;  %s35_s12 = smov 3  ;;  %s38_s15 = smov 12  ;;  %vm44_vm4 = vcmask 917312   ;;  %vm56_vm5 = vcmask 851712  }
   0x2   :  { %v216_v1 = vld [vmem:[%s412_s0 + $0xf] ss:$16 sm:%s14_s7]   ;;  %v219_v3 = vld [vmem:[%s412_s0 + $0xd] ss:$16 sm:%s35_s12]   ;;  %s263_s16 = smov 120   ;;  %s23_s19 = smov 3 }
   0x3   :  { %v17_v2 = vsel %vm6_vm0, %v216_v1, %v215_v0  ;;  %v220_v4 = vld [vmem:[%s412_s0 + $0xd] ss:$16 sm:%s38_s15]   ;;  %s26_s20 = smov 12  ;;  %v217_v6 = vld [vmem:[%s412_s0 + $0xe] ss:$16 sm:%s23_s19]   ;;  %s47_s25 = smov 3 }
   0x4   :  { %18 = vrot.lane.b32.xlu0 %v17_v2, %s263_s16  ;;  %v41_v5 = vsel %vm6_vm0, %v220_v4, %v219_v3  ;;  %v218_v7 = vld [vmem:[%s412_s0 + $0xe] ss:$16 sm:%s26_s20]   ;;  %s264_s26 = smov 104   ;;  %s50_s29 = smov 12  ;;  %vm68_vm6 = vcmask 786112   ;;  %vm80_vm7 = vcmask 720512  }
   0x5   :  { %42 = vrot.lane.b32.xlu1 %v41_v5, %s264_s26  ;;  %v29_v8 = vsel %vm6_vm0, %v218_v7, %v217_v6  ;;  %v221_v9 = vld [vmem:[%s412_s0 + $0xc] ss:$16 sm:%s47_s25]   ;;  %s59_s3 = smov 3  ;;  %s62_s4 = smov 12  ;;  %vm92_vm8 = vcmask 654912   ;;  %vm104_vm9 = vcmask 589312  }
   0x6   :  { %v222_v10 = vld [vmem:[%s412_s0 + $0xc] ss:$16 sm:%s50_s29]   ;;  %s265_s5 = smov 112   ;;  %v223_v12 = vld [vmem:[%s412_s0 + $0xb] ss:$16 sm:%s59_s3]   ;;  %s71_s8 = smov 3 }
   0x7   :  { %v53_v11 = vsel %vm6_vm0, %v222_v10, %v221_v9  ;;  %v224_v13 = vld [vmem:[%s412_s0 + $0xb] ss:$16 sm:%s62_s4]   ;;  %v225_v14 = vld [vmem:[%s412_s0 + $0xa] ss:$16 sm:%s71_s8]   ;;  %s74_s13 = smov 12  ;;  %s266_s14 = smov 96  }
   0x8   :  { %30 = vrot.lane.b32.xlu0 %v29_v8, %s265_s5  ;;  %v65_v15 = vsel %vm6_vm0, %v224_v13, %v223_v12  ;;  %v226_v16 = vld [vmem:[%s412_s0 + $0xa] ss:$16 sm:%s74_s13]   ;;  %s83_s17 = smov 3  ;;  %s86_s18 = smov 12  ;;  %vm116_vm10 = vcmask 523712   ;;  %vm128_vm11 = vcmask 458112  }
   0x9   :  { %54 = vrot.lane.b32.xlu1 %v53_v11, %s266_s14  ;;  %v77_v17 = vsel %vm6_vm0, %v226_v16, %v225_v14  ;;  %v227_v18 = vld [vmem:[%s412_s0 + $0x9] ss:$16 sm:%s83_s17]   ;;  %s95_s23 = smov 3  ;;  %s267_s24 = smov 88   ;;  %vm140_vm12 = vcmask 392512   ;;  %vm152_vm13 = vcmask 326912  }
   0xa   :  { %v228_v19 = vld [vmem:[%s412_s0 + $0x9] ss:$16 sm:%s86_s18]   ;;  %v229_v20 = vld [vmem:[%s412_s0 + $0x8] ss:$16 sm:%s95_s23]   ;;  %s98_s27 = smov 12  ;;  %s107_s30 = smov 3 }
   0xb   :  { %v89_v21 = vsel %vm6_vm0, %v228_v19, %v227_v18  ;;  %v230_v22 = vld [vmem:[%s412_s0 + $0x8] ss:$16 sm:%s98_s27]   ;;  %s110_s2 = smov 12  ;;  %s268_s3 = smov 80   ;;  %v231_v23 = vld [vmem:[%s412_s0 + $0x7] ss:$16 sm:%s107_s30]  }
   0xc   :  { %66 = vrot.lane.b32.xlu0 %v65_v15, %s267_s24  ;;  %s119_s6 = smov 3  ;;  %v101_v24 = vsel %vm6_vm0, %v230_v22, %v229_v20  ;;  %v232_v25 = vld [vmem:[%s412_s0 + $0x7] ss:$16 sm:%s110_s2]   ;;  %s122_s11 = smov 12  ;;  %vm164_vm14 = vcmask 261312   ;;  %vm176_vm15 = vcmask 195712  }
   0xd   :  { %78 = vrot.lane.b32.xlu1 %v77_v17, %s268_s3  ;;  %v233_v26 = vld [vmem:[%s412_s0 + $0x6] ss:$16 sm:%s119_s6]   ;;  %s269_s12 = smov 72   ;;  %s131_s15 = smov 3  ;;  %v113_v28 = vsel %vm6_vm0, %v232_v25, %v231_v23 }
   0xe   :  { %v234_v27 = vld [vmem:[%s412_s0 + $0x6] ss:$16 sm:%s122_s11]   ;;  %s134_s16 = smov 12  ;;  %v235_v29 = vld [vmem:[%s412_s0 + $0x5] ss:$16 sm:%s131_s15]   ;;  %s143_s19 = smov 3 }
   0xf   :  { %s270_s20 = smov 64   ;;  %v236_v30 = vld [vmem:[%s412_s0 + $0x5] ss:$16 sm:%s134_s16]   ;;  %s146_s23 = smov 12  ;;  %v125_v31 = vsel %vm6_vm0, %v234_v27, %v233_v26  ;;  %v237_v32 = vld [vmem:[%s412_s0 + $0x4] ss:$16 sm:%s143_s19]  }
  0x10   :  { %90 = vrot.lane.b32.xlu0 %v89_v21, %s269_s12  ;;  %s155_s26 = smov 3  ;;  %s158_s27 = smov 12  ;;  %v238_v33 = vld [vmem:[%s412_s0 + $0x4] ss:$16 sm:%s146_s23]   ;;  %v137_v34 = vsel %vm6_vm0, %v236_v30, %v235_v29 }
  0x11   :  { %102 = vrot.lane.b32.xlu1 %v101_v24, %s270_s20  ;;  %s271_s28 = smov 56   ;;  %s167_s2 = smov 3  ;;  %v239_v35 = vld [vmem:[%s412_s0 + $0x3] ss:$16 sm:%s155_s26]   ;;  %v149_v37 = vsel %vm6_vm0, %v238_v33, %v237_v32 }
  0x12   :  { %s170_s5 = smov 12  ;;  %s272_s6 = smov 48   ;;  %v240_v36 = vld [vmem:[%s412_s0 + $0x3] ss:$16 sm:%s158_s27]   ;;  %v241_v38 = vld [vmem:[%s412_s0 + $0x2] ss:$16 sm:%s167_s2]  }
  0x13   :  { %s179_s9 = smov 3  ;;  %v242_v39 = vld [vmem:[%s412_s0 + $0x2] ss:$16 sm:%s170_s5]   ;;  %s182_s14 = smov 12  ;;  %v161_v41 = vsel %vm6_vm0, %v240_v36, %v239_v35 }
  0x14   :  { %114 = vrot.lane.b32.xlu0 %v113_v28, %s271_s28  ;;  %s2_s15 = smov 3  ;;  %s273_s16 = smov 40   ;;  %v243_v42 = vld [vmem:[%s412_s0 + $0x1] ss:$16 sm:%s179_s9]   ;;  %v173_v46 = vsel %vm6_vm0, %v242_v39, %v241_v38 }
  0x15   :  { %126 = vrot.lane.b32.xlu1 %v125_v31, %s272_s6  ;;  %v3_v40 = vld [vmem:[%s412_s0] ss:$16 sm:%s2_s15]   ;;  %s4_s19 = smov 12  ;;  %s274_s24 = smov 32  }
  0x16   :  { %v5_v43 = vld [vmem:[%s412_s0] ss:$16 sm:%s4_s19]   ;;  %v244_v44 = vld [vmem:[%s412_s0 + $0x1] ss:$16 sm:%s182_s14]   ;;  %s275_s0 = smov 24   ;;  %s276_s27 = smov 16  }
  0x17   :  { %v7_v45 = vsel %vm6_vm0, %v5_v43, %v3_v40  ;;  %v185_v47 = vsel %vm6_vm0, %v244_v44, %v243_v42  ;;  %s277_s28 = smov 8   ;;  %vm188_vm0 = vcmask 130112  }
  0x18   :  { %138 = vrot.lane.b32.xlu0 %v137_v34, %s273_s16  ;;  %9 = vst.msk [vmem:[#allocation0] ss:$8 sm:$0xf] %vm8_vm1, %v7_v45  }
  0x19   :  { %150 = vrot.lane.b32.xlu1 %v149_v37, %s274_s24 }
  0x1c   :  { %162 = vrot.lane.b32.xlu0 %v161_v41, %s275_s0 }
  0x1d   :  { %174 = vrot.lane.b32.xlu1 %v173_v46, %s276_s27 }
  0x20   :  { %186 = vrot.lane.b32.xlu0 %v185_v47, %s277_s28 }
  0x76   :  { %v19_v48 = vpop.permute.xlu0 %18  }
  0x77   :  { %21 = vst.msk [vmem:[#allocation0] ss:$8 sm:$0xf] %vm20_vm2, %v19_v48   ;;  %v43_v49 = vpop.permute.xlu1 %42  }
  0x7a   :  { %v31_v50 = vpop.permute.xlu0 %30  }
  0x7b   :  { %33 = vst.msk [vmem:[#allocation0] ss:$8 sm:$0xf] %vm32_vm3, %v31_v50   ;;  %v55_v51 = vpop.permute.xlu1 %54  }
  0x7c   :  { %45 = vst.msk [vmem:[#allocation0] ss:$8 sm:$0xf] %vm44_vm4, %v43_v49  }
  0x7d   :  { %57 = vst.msk [vmem:[#allocation0] ss:$8 sm:$0xf] %vm56_vm5, %v55_v51  }
  0x7e   :  { %v67_v52 = vpop.permute.xlu0 %66  }
  0x7f   :  { %69 = vst.msk [vmem:[#allocation0] ss:$8 sm:$0xf] %vm68_vm6, %v67_v52   ;;  %v79_v53 = vpop.permute.xlu1 %78  }
  0x80   :  { %81 = vst.msk [vmem:[#allocation0] ss:$8 sm:$0xf] %vm80_vm7, %v79_v53  }
  0x82   :  { %v91_v54 = vpop.permute.xlu0 %90  }
  0x83   :  { %93 = vst.msk [vmem:[#allocation0] ss:$8 sm:$0xf] %vm92_vm8, %v91_v54   ;;  %v103_v55 = vpop.permute.xlu1 %102  }
  0x84   :  { %105 = vst.msk [vmem:[#allocation0] ss:$8 sm:$0xf] %vm104_vm9, %v103_v55  }
  0x86   :  { %v115_v56 = vpop.permute.xlu0 %114  }
  0x87   :  { %117 = vst.msk [vmem:[#allocation0] ss:$8 sm:$0xf] %vm116_vm10, %v115_v56   ;;  %v127_v57 = vpop.permute.xlu1 %126  }
  0x88   :  { %129 = vst.msk [vmem:[#allocation0] ss:$8 sm:$0xf] %vm128_vm11, %v127_v57  }
  0x8a   :  { %v139_v58 = vpop.permute.xlu0 %138  }
  0x8b   :  { %141 = vst.msk [vmem:[#allocation0] ss:$8 sm:$0xf] %vm140_vm12, %v139_v58   ;;  %v151_v59 = vpop.permute.xlu1 %150  }
  0x8c   :  { %153 = vst.msk [vmem:[#allocation0] ss:$8 sm:$0xf] %vm152_vm13, %v151_v59  }
  0x8e   :  { %v163_v60 = vpop.permute.xlu0 %162  }
  0x8f   :  { %165 = vst.msk [vmem:[#allocation0] ss:$8 sm:$0xf] %vm164_vm14, %v163_v60   ;;  %v175_v61 = vpop.permute.xlu1 %174  }
  0x90   :  { %177 = vst.msk [vmem:[#allocation0] ss:$8 sm:$0xf] %vm176_vm15, %v175_v61  }
  0x92   :  { %v187_v62 = vpop.permute.xlu0 %186  }
  0x93   :  { %189 = vst.msk [vmem:[#allocation0] ss:$8 sm:$0xf] %vm188_vm0, %v187_v62  }
  0x9a   :  { %v193_v63 = vld [vmem:[#allocation0] sm:$0x1]  ;;  %v197_v0 = vld [vmem:[#allocation0 + $0x8] sm:$0x1]  ;;  %v202_v1 = vld [vmem:[#allocation0 + $0x10] sm:$0x1] }
  0x9b   :  { %195 = vst [vmem:[%s413_s1] sm:$0x1] %v193_v63  ;;  %245 = vst [vmem:[%s413_s1 + $0x1] sm:$0x1] %v197_v0  ;;  %v208_v2 = vld [vmem:[#allocation0 + $0x18] sm:$0x1] }
  0x9c   :  { %246 = vst [vmem:[%s413_s1 + $0x2] sm:$0x1] %v202_v1  ;;  %247 = vst [vmem:[%s413_s1 + $0x3] sm:$0x1] %v208_v2 }

// kernel: tile.48
= control target key start
LH: loop header
LB: loop body
LE: loop exit
PB: predicated region body
PF: predicated region fallthrough
CT: control target
= control target key end

     0   :  { %s22_s0 = inlined_call_operand.vmem [shape: f32[8], index: 0, kind: input, shape index: {}]   ;;  %s23_s1 = inlined_call_operand.vmem [shape: f32[4,8], index: 1, kind: output, shape index: {}]  }
   0x1   :  { %v4_v0 = vld [vmem:[%s22_s0] ss:$0 sm:$0xff] }
   0x2   :  { %5 = vst [vmem:[%s23_s1] sm:$0xf] %v4_v0 }

// kernel: tile.49
= control target key start
LH: loop header
LB: loop body
LE: loop exit
PB: predicated region body
PF: predicated region fallthrough
CT: control target
= control target key end

     0   :  { %vm7_vm0 = vcmask 64512   ;;  %s37_s8 = smov 8   ;;  %s38_s9 = smov 16   ;;  %vm13_vm1 = vcmask 261312   ;;  %vm19_vm2 = vcmask 195712   ;;  %vm25_vm3 = vcmask 130112   ;;  %s55_s0 = inlined_call_operand.vmem [shape: f32[4,8], index: 0, kind: input, shape index: {}]   ;;  %s56_s1 = inlined_call_operand.vmem [shape: f32[1,32], index: 1, kind: output, shape index: {}]  }
   0x1   :  { %v4_v0 = vld [vmem:[%s55_s0] sm:$0xf]  ;;  %s36_s0 = smov 24  }
   0x2   :  { %5 = vst [vmem:[#allocation1] sm:$0xf] %v4_v0 }
   0x9   :  { %v10_v1 = vld [vmem:[#allocation1 + $0x3] sm:$0x1]   ;;  %v22_v2 = vld [vmem:[#allocation1 + $0x1] sm:$0x1]   ;;  %v6_v3 = vld [vmem:[#allocation1] sm:$0x1]  }
   0xa   :  { %11 = vrot.lane.b32.xlu0 %v10_v1, %s36_s0  ;;  %23 = vrot.lane.b32.xlu1 %v22_v2, %s37_s8  ;;  %v16_v4 = vld [vmem:[#allocation1 + $0x2] sm:$0x1]   ;;  %8 = vst.msk [vmem:[#allocation0] sm:$0x1] %vm7_vm0, %v6_v3  }
   0xe   :  { %17 = vrot.lane.b32.xlu0 %v16_v4, %s38_s9 }
  0x7c   :  { %v12_v5 = vpop.permute.xlu0 %11   ;;  %v24_v6 = vpop.permute.xlu1 %23  }
  0x7d   :  { %14 = vst.msk [vmem:[#allocation0] sm:$0x1] %vm13_vm1, %v12_v5  }
  0x80   :  { %v18_v7 = vpop.permute.xlu0 %17  }
  0x81   :  { %20 = vst.msk [vmem:[#allocation0] sm:$0x1] %vm19_vm2, %v18_v7  }
  0x82   :  { %26 = vst.msk [vmem:[#allocation0] sm:$0x1] %vm25_vm3, %v24_v6  }
  0x89   :  { %v30_v8 = vld [vmem:[#allocation0] sm:$0x1] }
  0x8a   :  { %32 = vst [vmem:[%s56_s1] sm:$0x1] %v30_v8 }

// kernel: net_forward.1
= control target key start
LH: loop header
LB: loop body
LE: loop exit
PB: predicated region body
PF: predicated region fallthrough
CT: control target
= control target key end

     0   :  { %s9785_s27 = smov 0   ;;  %s9787_s28 = smov 0   ;;  %s12770_s0 = inlined_call_operand.vmem [shape: bf16[4,64,1152], index: 0, kind: input, shape index: {}]   ;;  %s12771_s1 = inlined_call_operand.vmem [shape: bf16[1152,128], index: 1, kind: input, shape index: {}]   ;;  %s12772_s2 = inlined_call_operand.vmem [shape: bf16[3,512,512], index: 2, kind: input, shape index: {}]   ;;  %s12773_s3 = inlined_call_operand.vmem [shape: bf16[1536,32], index: 3, kind: input, shape index: {}]   ;;  %s12774_s4 = inlined_call_operand.vmem [shape: bf16[32,128], index: 4, kind: input, shape index: {}]   ;;  %s12775_s5 = inlined_call_operand.vmem [shape: f32[4,512], index: 5, kind: input, shape index: {}]   ;;  %s12776_s6 = inlined_call_operand.vmem [shape: f32[1,32], index: 6, kind: input, shape index: {}]   ;;  %s12777_s7 = inlined_call_operand.vmem [shape: f32[1,128], index: 7, kind: input, shape index: {}]   ;;  %s12778_s8 = inlined_call_operand.vmem [shape: f32[64,128], index: 8, kind: output, shape index: {}]  }
   0x1   :  { %s9789_s29 = smov 0  }
   0x2 LB: > { %s6930_s30 = sadd.s32 4294967295, %s9738_s29   ;;  %s9802_s9 = sadd.s32 1, %s9738_s29   ;;  %s9738_s29 = sphi %s9789_s29, %s12829_s29   ;;  %s9734_s28 = sphi %s9787_s28, %s12828_s28   ;;  %s9730_s27 = sphi %s9785_s27, %s12827_s27  }
   0x3   : > { %s22_s10 = ssub.s32 %s9738_s29, %s9802_s9  ;;  %s25_s11 = sadd.s32 1, %s9734_s28 }
   0x4   : > { %p23_p0 = scmp.eq.s32.totalorder %s22_s10, 0  ;;  %p32_p1 = scmp.ne.s32.totalorder %s9734_s28, %s9730_s27 }
   0x5   : > { %p33_p2 = scmp.eq.s32.totalorder %s9738_s29, 0  ;;  %p6933_p4 = scmp.ge.s32.totalorder %s9738_s29, 2 }
   0x6   : > { %s9811_s12 = scalar_select %p23_p0, %s9734_s28, %s25_s11  }
   0x7   : > { %p34_p3 = por %p33_p2, %p32_p1  ;;  %252 = sbr.rel (%p6933_p4) target bundleno = 61 (0x3d), region = 44 }
   0xe   : > { %255 = sbr.rel (!%p34_p3) target bundleno = 61 (0x3d), region = 48  ;;  %s257_s13 = sand.u32 (%p34_p3), 1, %s9734_s28  }
   0xf   : > { %s8765_s14 = smul.u32 (%p34_p3), 144, %s9738_s29 }
  0x10   : > { %s8764_s15 = smul.u32 (%p34_p3), 576, %s257_s13 }
  0x11   : > { %s9819_s18 = scalar_lea.vmem (%p34_p3), %s12770_s0, %s8765_s14 }
  0x12   : > { %v278_v0 = vld [vmem:[%s9819_s18] sm:$0xff] (%p34_p3)  ;;  %v280_v1 = vld [vmem:[%s9819_s18 + $0x8] sm:$0xff] (%p34_p3)  ;;  %v282_v2 = vld [vmem:[%s9819_s18 + $0x10] sm:$0xff] (%p34_p3)  ;;  %s9824_s19 = scalar_lea.vmem (%p34_p3), [#allocation2], %s8764_s15 }
  0x13   : > { %279 = vst [vmem:[%s9824_s19] sm:$0xff] (%p34_p3), %v278_v0  ;;  %281 = vst [vmem:[%s9824_s19 + $0x8] sm:$0xff] (%p34_p3), %v280_v1  ;;  %v284_v3 = vld [vmem:[%s9819_s18 + $0x18] sm:$0xff] (%p34_p3)  ;;  %v286_v4 = vld [vmem:[%s9819_s18 + $0x24] sm:$0xff] (%p34_p3) }
  0x14   : > { %283 = vst [vmem:[%s9824_s19 + $0x10] sm:$0xff] (%p34_p3), %v282_v2  ;;  %v288_v5 = vld [vmem:[%s9819_s18 + $0x2c] sm:$0xff] (%p34_p3)  ;;  %285 = vst [vmem:[%s9824_s19 + $0x18] sm:$0xff] (%p34_p3), %v284_v3  ;;  %v290_v6 = vld [vmem:[%s9819_s18 + $0x34] sm:$0xff] (%p34_p3) }
  0x15   : > { %287 = vst [vmem:[%s9824_s19 + $0x24] sm:$0xff] %v286_v4  ;;  %289 = vst [vmem:[%s9824_s19 + $0x2c] sm:$0xff] %v288_v5  ;;  %v292_v7 = vld [vmem:[%s9819_s18 + $0x3c] sm:$0xff]  ;;  %v294_v8 = vld [vmem:[%s9819_s18 + $0x48] sm:$0xff] }
  0x16   : > { %291 = vst [vmem:[%s9824_s19 + $0x34] sm:$0xff] %v290_v6  ;;  %293 = vst [vmem:[%s9824_s19 + $0x3c] sm:$0xff] %v292_v7  ;;  %v296_v9 = vld [vmem:[%s9819_s18 + $0x50] sm:$0xff]  ;;  %v298_v10 = vld [vmem:[%s9819_s18 + $0x58] sm:$0xff] }
  0x17   : > { %295 = vst [vmem:[%s9824_s19 + $0x48] sm:$0xff] %v294_v8  ;;  %v300_v11 = vld [vmem:[%s9819_s18 + $0x60] sm:$0xff]  ;;  %297 = vst [vmem:[%s9824_s19 + $0x50] sm:$0xff] %v296_v9  ;;  %v302_v12 = vld [vmem:[%s9819_s18 + $0x6c] sm:$0xff] }
  0x18   : > { %299 = vst [vmem:[%s9824_s19 + $0x58] sm:$0xff] %v298_v10  ;;  %301 = vst [vmem:[%s9824_s19 + $0x60] sm:$0xff] %v300_v11  ;;  %v304_v13 = vld [vmem:[%s9819_s18 + $0x74] sm:$0xff]  ;;  %v306_v14 = vld [vmem:[%s9819_s18 + $0x7c] sm:$0xff] }
  0x19   : > { %303 = vst [vmem:[%s9824_s19 + $0x6c] sm:$0xff] %v302_v12  ;;  %305 = vst [vmem:[%s9824_s19 + $0x74] sm:$0xff] %v304_v13  ;;  %v308_v15 = vld [vmem:[%s9819_s18 + $0x84] sm:$0xff]  ;;  %v314_v18 = vld [vmem:[%s9819_s18 + $0x130] sm:$0xff] }
  0x1a   : > { %307 = vst [vmem:[%s9824_s19 + $0x7c] sm:$0xff] %v306_v14  ;;  %v310_v16 = vld [vmem:[%s9819_s18 + $0x120] sm:$0xff]  ;;  %v312_v17 = vld [vmem:[%s9819_s18 + $0x128] sm:$0xff]  ;;  %309 = vst [vmem:[%s9824_s19 + $0x84] sm:$0xff] %v308_v15 }
  0x1b   : > { %311 = vst [vmem:[%s9824_s19 + $0x90] sm:$0xff] %v310_v16  ;;  %313 = vst [vmem:[%s9824_s19 + $0x98] sm:$0xff] %v312_v17  ;;  %v316_v19 = vld [vmem:[%s9819_s18 + $0x138] sm:$0xff]  ;;  %v318_v20 = vld [vmem:[%s9819_s18 + $0x144] sm:$0xff] }
  0x1c   : > { %315 = vst [vmem:[%s9824_s19 + $0xa0] sm:$0xff] %v314_v18  ;;  %317 = vst [vmem:[%s9824_s19 + $0xa8] sm:$0xff] %v316_v19  ;;  %v320_v21 = vld [vmem:[%s9819_s18 + $0x14c] sm:$0xff]  ;;  %v322_v22 = vld [vmem:[%s9819_s18 + $0x154] sm:$0xff] }
  0x1d   : > { %319 = vst [vmem:[%s9824_s19 + $0xb4] sm:$0xff] %v318_v20  ;;  %v324_v23 = vld [vmem:[%s9819_s18 + $0x15c] sm:$0xff]  ;;  %321 = vst [vmem:[%s9824_s19 + $0xbc] sm:$0xff] %v320_v21  ;;  %v326_v24 = vld [vmem:[%s9819_s18 + $0x168] sm:$0xff] }
  0x1e   : > { %323 = vst [vmem:[%s9824_s19 + $0xc4] sm:$0xff] %v322_v22  ;;  %325 = vst [vmem:[%s9824_s19 + $0xcc] sm:$0xff] %v324_v23  ;;  %v328_v25 = vld [vmem:[%s9819_s18 + $0x170] sm:$0xff]  ;;  %v330_v26 = vld [vmem:[%s9819_s18 + $0x178] sm:$0xff] }
  0x1f   : > { %327 = vst [vmem:[%s9824_s19 + $0xd8] sm:$0xff] %v326_v24  ;;  %329 = vst [vmem:[%s9824_s19 + $0xe0] sm:$0xff] %v328_v25  ;;  %v332_v27 = vld [vmem:[%s9819_s18 + $0x180] sm:$0xff]  ;;  %v334_v28 = vld [vmem:[%s9819_s18 + $0x18c] sm:$0xff] }
  0x20   : > { %331 = vst [vmem:[%s9824_s19 + $0xe8] sm:$0xff] %v330_v26  ;;  %v336_v29 = vld [vmem:[%s9819_s18 + $0x194] sm:$0xff]  ;;  %333 = vst [vmem:[%s9824_s19 + $0xf0] sm:$0xff] %v332_v27  ;;  %v338_v30 = vld [vmem:[%s9819_s18 + $0x19c] sm:$0xff] }
  0x21   : > { %335 = vst [vmem:[%s9824_s19 + $0xfc] sm:$0xff] %v334_v28  ;;  %337 = vst [vmem:[%s9824_s19 + $0x104] sm:$0xff] %v336_v29  ;;  %v340_v31 = vld [vmem:[%s9819_s18 + $0x1a4] sm:$0xff]  ;;  %v346_v34 = vld [vmem:[%s9819_s18 + $0x250] sm:$0xff] }
  0x22   : > { %v342_v32 = vld [vmem:[%s9819_s18 + $0x240] sm:$0xff]  ;;  %339 = vst [vmem:[%s9824_s19 + $0x10c] sm:$0xff] %v338_v30  ;;  %341 = vst [vmem:[%s9824_s19 + $0x114] sm:$0xff] %v340_v31  ;;  %v344_v33 = vld [vmem:[%s9819_s18 + $0x248] sm:$0xff] }
  0x23   : > { %343 = vst [vmem:[%s9824_s19 + $0x120] sm:$0xff] %v342_v32  ;;  %v348_v35 = vld [vmem:[%s9819_s18 + $0x258] sm:$0xff]  ;;  %345 = vst [vmem:[%s9824_s19 + $0x128] sm:$0xff] %v344_v33  ;;  %v350_v36 = vld [vmem:[%s9819_s18 + $0x264] sm:$0xff] }
  0x24   : > { %347 = vst [vmem:[%s9824_s19 + $0x130] sm:$0xff] %v346_v34  ;;  %349 = vst [vmem:[%s9824_s19 + $0x138] sm:$0xff] %v348_v35  ;;  %v352_v37 = vld [vmem:[%s9819_s18 + $0x26c] sm:$0xff]  ;;  %v354_v38 = vld [vmem:[%s9819_s18 + $0x274] sm:$0xff] }
  0x25   : > { %351 = vst [vmem:[%s9824_s19 + $0x144] sm:$0xff] %v350_v36  ;;  %353 = vst [vmem:[%s9824_s19 + $0x14c] sm:$0xff] %v352_v37  ;;  %v356_v39 = vld [vmem:[%s9819_s18 + $0x27c] sm:$0xff]  ;;  %v358_v40 = vld [vmem:[%s9819_s18 + $0x288] sm:$0xff] }
  0x26   : > { %355 = vst [vmem:[%s9824_s19 + $0x154] sm:$0xff] %v354_v38  ;;  %v360_v41 = vld [vmem:[%s9819_s18 + $0x290] sm:$0xff]  ;;  %357 = vst [vmem:[%s9824_s19 + $0x15c] sm:$0xff] %v356_v39  ;;  %v362_v42 = vld [vmem:[%s9819_s18 + $0x298] sm:$0xff] }
  0x27   : > { %359 = vst [vmem:[%s9824_s19 + $0x168] sm:$0xff] %v358_v40  ;;  %361 = vst [vmem:[%s9824_s19 + $0x170] sm:$0xff] %v360_v41  ;;  %v364_v43 = vld [vmem:[%s9819_s18 + $0x2a0] sm:$0xff]  ;;  %v366_v44 = vld [vmem:[%s9819_s18 + $0x2ac] sm:$0xff] }
  0x28   : > { %363 = vst [vmem:[%s9824_s19 + $0x178] sm:$0xff] %v362_v42  ;;  %365 = vst [vmem:[%s9824_s19 + $0x180] sm:$0xff] %v364_v43  ;;  %v368_v45 = vld [vmem:[%s9819_s18 + $0x2b4] sm:$0xff]  ;;  %v370_v46 = vld [vmem:[%s9819_s18 + $0x2bc] sm:$0xff] }
  0x29   : > { %367 = vst [vmem:[%s9824_s19 + $0x18c] sm:$0xff] %v366_v44  ;;  %v372_v47 = vld [vmem:[%s9819_s18 + $0x2c4] sm:$0xff]  ;;  %369 = vst [vmem:[%s9824_s19 + $0x194] sm:$0xff] %v368_v45  ;;  %v378_v50 = vld [vmem:[%s9819_s18 + $0x370] sm:$0xff] }
  0x2a   : > { %371 = vst [vmem:[%s9824_s19 + $0x19c] sm:$0xff] %v370_v46  ;;  %373 = vst [vmem:[%s9824_s19 + $0x1a4] sm:$0xff] %v372_v47  ;;  %v374_v48 = vld [vmem:[%s9819_s18 + $0x360] sm:$0xff]  ;;  %v376_v49 = vld [vmem:[%s9819_s18 + $0x368] sm:$0xff] }
  0x2b   : > { %375 = vst [vmem:[%s9824_s19 + $0x1b0] sm:$0xff] %v374_v48  ;;  %377 = vst [vmem:[%s9824_s19 + $0x1b8] sm:$0xff] %v376_v49  ;;  %v380_v51 = vld [vmem:[%s9819_s18 + $0x378] sm:$0xff]  ;;  %v382_v52 = vld [vmem:[%s9819_s18 + $0x384] sm:$0xff] }
  0x2c   : > { %379 = vst [vmem:[%s9824_s19 + $0x1c0] sm:$0xff] %v378_v50  ;;  %v384_v53 = vld [vmem:[%s9819_s18 + $0x38c] sm:$0xff]  ;;  %381 = vst [vmem:[%s9824_s19 + $0x1c8] sm:$0xff] %v380_v51  ;;  %v386_v54 = vld [vmem:[%s9819_s18 + $0x394] sm:$0xff] }
  0x2d   : > { %383 = vst [vmem:[%s9824_s19 + $0x1d4] sm:$0xff] %v382_v52  ;;  %385 = vst [vmem:[%s9824_s19 + $0x1dc] sm:$0xff] %v384_v53  ;;  %v388_v55 = vld [vmem:[%s9819_s18 + $0x39c] sm:$0xff]  ;;  %v390_v56 = vld [vmem:[%s9819_s18 + $0x3a8] sm:$0xff] }
  0x2e   : > { %387 = vst [vmem:[%s9824_s19 + $0x1e4] sm:$0xff] %v386_v54  ;;  %389 = vst [vmem:[%s9824_s19 + $0x1ec] sm:$0xff] %v388_v55  ;;  %v392_v57 = vld [vmem:[%s9819_s18 + $0x3b0] sm:$0xff]  ;;  %v394_v58 = vld [vmem:[%s9819_s18 + $0x3b8] sm:$0xff] }
  0x2f   : > { %391 = vst [vmem:[%s9824_s19 + $0x1f8] sm:$0xff] %v390_v56  ;;  %v396_v59 = vld [vmem:[%s9819_s18 + $0x3c0] sm:$0xff]  ;;  %393 = vst [vmem:[%s9824_s19 + $0x200] sm:$0xff] %v392_v57  ;;  %v398_v60 = vld [vmem:[%s9819_s18 + $0x3cc] sm:$0xff] }
  0x30   : > { %395 = vst [vmem:[%s9824_s19 + $0x208] sm:$0xff] %v394_v58  ;;  %397 = vst [vmem:[%s9824_s19 + $0x210] sm:$0xff] %v396_v59  ;;  %v400_v61 = vld [vmem:[%s9819_s18 + $0x3d4] sm:$0xff]  ;;  %v402_v62 = vld [vmem:[%s9819_s18 + $0x3dc] sm:$0xff] }
  0x31   : > { %399 = vst [vmem:[%s9824_s19 + $0x21c] sm:$0xff] %v398_v60  ;;  %401 = vst [vmem:[%s9824_s19 + $0x224] sm:$0xff] %v400_v61  ;;  %v404_v63 = vld [vmem:[%s9819_s18 + $0x3e4] sm:$0xff]  ;;  %v6937_v0 = vld [vmem:[%s9819_s18 + $0x20] sm:$0xf] }
  0x32   : > { %403 = vst [vmem:[%s9824_s19 + $0x22c] sm:$0xff] %v402_v62  ;;  %v6939_v1 = vld [vmem:[%s9819_s18 + $0x44] sm:$0xf]  ;;  %405 = vst [vmem:[%s9824_s19 + $0x234] sm:$0xff] %v404_v63  ;;  %v6941_v2 = vld [vmem:[%s9819_s18 + $0x68] sm:$0xf] }
  0x33   : > { %6938 = vst [vmem:[%s9824_s19 + $0x20] sm:$0xf] %v6937_v0  ;;  %6940 = vst [vmem:[%s9824_s19 + $0x44] sm:$0xf] %v6939_v1  ;;  %v6943_v3 = vld [vmem:[%s9819_s18 + $0x8c] sm:$0xf] }
  0x34   : > { %v6945_v4 = vld [vmem:[%s9819_s18 + $0x140] sm:$0xf]  ;;  %6942 = vst [vmem:[%s9824_s19 + $0x68] sm:$0xf] %v6941_v2  ;;  %6944 = vst [vmem:[%s9824_s19 + $0x8c] sm:$0xf] %v6943_v3 }
  0x35   : > { %6946 = vst [vmem:[%s9824_s19 + $0xb0] sm:$0xf] %v6945_v4  ;;  %v6947_v5 = vld [vmem:[%s9819_s18 + $0x164] sm:$0xf]  ;;  %v6949_v6 = vld [vmem:[%s9819_s18 + $0x188] sm:$0xf] }
  0x36   : > { %v6951_v7 = vld [vmem:[%s9819_s18 + $0x1ac] sm:$0xf]  ;;  %6948 = vst [vmem:[%s9824_s19 + $0xd4] sm:$0xf] %v6947_v5  ;;  %6950 = vst [vmem:[%s9824_s19 + $0xf8] sm:$0xf] %v6949_v6 }
  0x37   : > { %6952 = vst [vmem:[%s9824_s19 + $0x11c] sm:$0xf] %v6951_v7  ;;  %v6953_v8 = vld [vmem:[%s9819_s18 + $0x260] sm:$0xf]  ;;  %v6955_v9 = vld [vmem:[%s9819_s18 + $0x284] sm:$0xf] }
  0x38   : > { %v6957_v10 = vld [vmem:[%s9819_s18 + $0x2a8] sm:$0xf]  ;;  %6954 = vst [vmem:[%s9824_s19 + $0x140] sm:$0xf] %v6953_v8  ;;  %6956 = vst [vmem:[%s9824_s19 + $0x164] sm:$0xf] %v6955_v9 }
  0x39   : > { %6958 = vst [vmem:[%s9824_s19 + $0x188] sm:$0xf] %v6957_v10  ;;  %v6959_v11 = vld [vmem:[%s9819_s18 + $0x2cc] sm:$0xf]  ;;  %v6961_v12 = vld [vmem:[%s9819_s18 + $0x380] sm:$0xf] }
  0x3a   : > { %v6963_v13 = vld [vmem:[%s9819_s18 + $0x3a4] sm:$0xf]  ;;  %6960 = vst [vmem:[%s9824_s19 + $0x1ac] sm:$0xf] %v6959_v11  ;;  %6962 = vst [vmem:[%s9824_s19 + $0x1d0] sm:$0xf] %v6961_v12 }
  0x3b   : > { %6964 = vst [vmem:[%s9824_s19 + $0x1f4] sm:$0xf] %v6963_v13  ;;  %v6965_v14 = vld [vmem:[%s9819_s18 + $0x3c8] sm:$0xf]  ;;  %v6967_v15 = vld [vmem:[%s9819_s18 + $0x3ec] sm:$0xf] }
  0x3c   : > { %6966 = vst [vmem:[%s9824_s19 + $0x218] sm:$0xf] %v6965_v14  ;;  %6968 = vst [vmem:[%s9824_s19 + $0x23c] sm:$0xf] %v6967_v15 }
  0x3d PF: > { %p6969_p5 = scmp.ge.s32.totalorder %s9738_s29, 1  ;;  %p449_p6 = scmp.lt.s32.totalorder %s9738_s29, 3 }
  0x3f   : > { %p450_p7 = pnand %p6969_p5, %p449_p6 }
  0x41   : > { %453 = sbr.rel (%p450_p7) target bundleno = 1867 (0x74b), region = 74 }
  0x48   : > { %v9988_v16 = vld [vmem:[%s12771_s1 + $0x40] sm:$0xff]   ;;  %v10011_v20 = vld [vmem:[%s12771_s1 + $0x48] sm:$0xff]   ;;  %v10035_v24 = vld [vmem:[%s12771_s1 + $0x50] sm:$0xff]   ;;  %s456_s18 = sand.u32 1, %s9730_s27   ;;  %vm6804_vm0 = vcmask 261120   ;;  %s6970_s13 = sshll.u32 %s6930_s30, 2 }
  0x49   : > { %v9993_v17 = vld [vmem:[%s12771_s1 + $0xc0] sm:$0xff]   ;;  %7920 = vmatprep.subr.bf16.mxu0 %v9988_v16  ;;  %v10017_v21 = vld [vmem:[%s12771_s1 + $0xc8] sm:$0xff]   ;;  %v10041_v25 = vld [vmem:[%s12771_s1 + $0xd0] sm:$0xff]   ;;  %s8766_s27 = smul.u32 576, %s456_s18  ;;  %p491_p8 = scmp.lt.s32.totalorder %s6970_s13, 7 }
  0x4a   : > { %v9999_v18 = vld [vmem:[%s12771_s1] sm:$0xff]   ;;  %7948 = vmatprep.subr.bf16.mxu1 %v9993_v17  ;;  %v10023_v22 = vld [vmem:[%s12771_s1 + $0x8] sm:$0xff]   ;;  %v10047_v26 = vld [vmem:[%s12771_s1 + $0x10] sm:$0xff]  }
  0x4b   : > { %v10005_v19 = vld [vmem:[%s12771_s1 + $0x80] sm:$0xff]   ;;  %7921 = vmatpush3.bf16.msra.mxu0 %v9999_v18  ;;  %v10029_v23 = vld [vmem:[%s12771_s1 + $0x88] sm:$0xff]   ;;  %v10053_v27 = vld [vmem:[%s12771_s1 + $0x90] sm:$0xff]   ;;  %s10177_s21 = scalar_lea.vmem [#allocation2], %s8766_s27  ;;  %s12831_s13 = smov (!%p491_p8, %s6970_s13), 7 }
  0x4c   : > { %7949 = vmatpush3.bf16.msra.mxu1 %v10005_v19  ;;  %7922 = vmatprep.subr.bf16.mxu0 %v10011_v20  ;;  %v10059_v28 = vld [vmem:[%s12771_s1 + $0x58] sm:$0xff]   ;;  %v10083_v32 = vld [vmem:[%s12771_s1 + $0x60] sm:$0xff]   ;;  %v10107_v36 = vld [vmem:[%s12771_s1 + $0x68] sm:$0xff]   ;;  %s6971_s14 = sshll.u32 %s12831_s13, 3 }
  0x4d   : > { %7950 = vmatprep.subr.bf16.mxu1 %v10017_v21  ;;  %v10065_v29 = vld [vmem:[%s12771_s1 + $0xd8] sm:$0xff]   ;;  %v10089_v33 = vld [vmem:[%s12771_s1 + $0xe0] sm:$0xff]   ;;  %v10113_v37 = vld [vmem:[%s12771_s1 + $0xe8] sm:$0xff]  }
  0x4e   : > { %v10071_v30 = vld [vmem:[%s12771_s1 + $0x18] sm:$0xff]   ;;  %v10095_v34 = vld [vmem:[%s12771_s1 + $0x20] sm:$0xff]   ;;  %v10119_v38 = vld [vmem:[%s12771_s1 + $0x28] sm:$0xff]  }
  0x4f   : > { %7923 = vmatpush3.bf16.msra.mxu0 %v10023_v22  ;;  %v10077_v31 = vld [vmem:[%s12771_s1 + $0x98] sm:$0xff]   ;;  %v10101_v35 = vld [vmem:[%s12771_s1 + $0xa0] sm:$0xff]   ;;  %v10126_v39 = vld [vmem:[%s12771_s1 + $0xa8] sm:$0xff]  }
  0x50   : > { %7951 = vmatpush3.bf16.msra.mxu1 %v10029_v23  ;;  %7924 = vmatprep.subr.bf16.mxu0 %v10035_v24  ;;  %v10132_v40 = vld [vmem:[%s12771_s1 + $0x70] sm:$0xff]   ;;  %v10156_v44 = vld [vmem:[%s12771_s1 + $0x78] sm:$0xff]   ;;  %v8823_v48 = vld [vmem:[%s10177_s21] ss:$36 sps:$4 sm:$0xff]  }
  0x51   : > { %7952 = vmatprep.subr.bf16.mxu1 %v10041_v25  ;;  %v10138_v41 = vld [vmem:[%s12771_s1 + $0xf0] sm:$0xff]   ;;  %v10162_v45 = vld [vmem:[%s12771_s1 + $0xf8] sm:$0xff]   ;;  %v8825_v49 = vld [vmem:[%s10177_s21 + $0x4] ss:$36 sps:$4 sm:$0xff]  }
  0x52   : > { %v10144_v42 = vld [vmem:[%s12771_s1 + $0x30] sm:$0xff]   ;;  %v10168_v46 = vld [vmem:[%s12771_s1 + $0x38] sm:$0xff]   ;;  %v8826_v50 = vld [vmem:[%s10177_s21 + $0x8] ss:$36 sps:$4 sm:$0xff]   ;;  %1219 = vmatprep.mubr.bf16.mxu0 %v8825_v49 }
  0x53   : > { %7925 = vmatpush3.bf16.msra.mxu0 %v10047_v26  ;;  %v10150_v43 = vld [vmem:[%s12771_s1 + $0xb0] sm:$0xff]   ;;  %v10174_v47 = vld [vmem:[%s12771_s1 + $0xb8] sm:$0xff]   ;;  %v10187_v52 = vld [vmem:[%s12771_s1 + $0x140] sm:$0xff]  }
  0x54   : > { %7953 = vmatpush3.bf16.msra.mxu1 %v10053_v27  ;;  %7926 = vmatprep.subr.bf16.mxu0 %v10059_v28  ;;  %v8828_v51 = vld [vmem:[%s10177_s21 + $0xc] ss:$36 sps:$4 sm:$0xff]   ;;  %v10192_v53 = vld [vmem:[%s12771_s1 + $0x1c0] sm:$0xff]   ;;  %v10258_v0 = vld [vmem:[%s12771_s1 + $0x158] sm:$0xff]  }
  0x55   : > { %7954 = vmatprep.subr.bf16.mxu1 %v10065_v29  ;;  %1268 = vmatprep.mubr.bf16.mxu1 %v8828_v51  ;;  %v10198_v54 = vld [vmem:[%s12771_s1 + $0x100] sm:$0xff]   ;;  %v10210_v56 = vld [vmem:[%s12771_s1 + $0x148] sm:$0xff]   ;;  %v10234_v60 = vld [vmem:[%s12771_s1 + $0x150] sm:$0xff]  }
  0x56   : > { %v10204_v55 = vld [vmem:[%s12771_s1 + $0x180] sm:$0xff]   ;;  %v10216_v57 = vld [vmem:[%s12771_s1 + $0x1c8] sm:$0xff]   ;;  %v10240_v61 = vld [vmem:[%s12771_s1 + $0x1d0] sm:$0xff]  }
  0x57   : > { %7927 = vmatpush3.bf16.msra.mxu0 %v10071_v30  ;;  %v10222_v58 = vld [vmem:[%s12771_s1 + $0x108] sm:$0xff]   ;;  %v10246_v62 = vld [vmem:[%s12771_s1 + $0x110] sm:$0xff]   ;;  %v10264_v1 = vld [vmem:[%s12771_s1 + $0x1d8] sm:$0xff]  }
  0x58   : > { %7955 = vmatpush3.bf16.msra.mxu1 %v10077_v31  ;;  %7928 = vmatprep.subr.bf16.mxu0 %v10083_v32  ;;  %v10228_v59 = vld [vmem:[%s12771_s1 + $0x188] sm:$0xff]   ;;  %v10252_v63 = vld [vmem:[%s12771_s1 + $0x190] sm:$0xff]   ;;  %v10270_v2 = vld [vmem:[%s12771_s1 + $0x118] sm:$0xff]  }
  0x59   : > { %7956 = vmatprep.subr.bf16.mxu1 %v10089_v33  ;;  %v10276_v3 = vld [vmem:[%s12771_s1 + $0x198] sm:$0xff]   ;;  %v10282_v4 = vld [vmem:[%s12771_s1 + $0x160] sm:$0xff]   ;;  %v10306_v8 = vld [vmem:[%s12771_s1 + $0x168] sm:$0xff]  }
  0x5a   : > { %v10288_v5 = vld [vmem:[%s12771_s1 + $0x1e0] sm:$0xff]   ;;  %v10312_v9 = vld [vmem:[%s12771_s1 + $0x1e8] sm:$0xff]   ;;  %v8853_v11 = vld [vmem:[%s10177_s21 + $0x54] ss:$36 sps:$4 sm:$0xff]  }
  0x5b   : > { %7929 = vmatpush3.bf16.msra.mxu0 %v10095_v34  ;;  %v10294_v6 = vld [vmem:[%s12771_s1 + $0x120] sm:$0xff]   ;;  %12796 = vst [vmem:[#allocation4_spill] sm:$0xff] %v10312_v9  ;;  %v8851_v10 = vld [vmem:[%s10177_s21 + $0x4c] ss:$36 sps:$4 sm:$0xff]  }
  0x5c   : > { %7957 = vmatpush3.bf16.msra.mxu1 %v10101_v35  ;;  %7930 = vmatprep.subr.bf16.mxu0 %v10107_v36  ;;  %v10300_v7 = vld [vmem:[%s12771_s1 + $0x1a0] sm:$0xff]   ;;  %v10321_v12 = vld [vmem:[%s12771_s1 + $0x128] sm:$0xff]   ;;  %v8858_v15 = vld [vmem:[%s10177_s21 + $0x50] ss:$36 sps:$4 sm:$0xff]  }
  0x5d   : > { %7958 = vmatprep.subr.bf16.mxu1 %v10113_v37  ;;  %12795 = vst [vmem:[#allocation3_spill] sm:$0xff] %v10300_v7  ;;  %v10326_v13 = vld [vmem:[%s12771_s1 + $0x1a8] sm:$0xff]   ;;  %v10340_v49 = vld [vmem:[%s12771_s1 + $0x1f0] sm:$0xff]  }
  0x5e   : > { %12797 = vst [vmem:[#allocation5_spill] sm:$0xff] %v10326_v13  ;;  %v8857_v14 = vld [vmem:[%s10177_s21 + $0x48] ss:$36 sps:$4 sm:$0xff]   ;;  %12798 = vst [vmem:[#allocation6_spill] sm:$0xff] %v10340_v49  ;;  %v10352_v51 = vld [vmem:[%s12771_s1 + $0x1b0] sm:$0xff]  }
  0x5f   : > { %7931 = vmatpush3.bf16.msra.mxu0 %v10119_v38  ;;  %12799 = vst [vmem:[#allocation7_spill] sm:$0xff] %v10352_v51 }
  0x60   : > { %7959 = vmatpush3.bf16.msra.mxu1 %v10126_v39  ;;  %7932 = vmatprep.subr.bf16.mxu0 %v10132_v40 }
  0x61   : > { %7960 = vmatprep.subr.bf16.mxu1 %v10138_v41 }
  0x63   : > { %7933 = vmatpush3.bf16.msra.mxu0 %v10144_v42 }
  0x64   : > { %7961 = vmatpush3.bf16.msra.mxu1 %v10150_v43  ;;  %7934 = vmatprep.subr.bf16.mxu0 %v10156_v44 }
  0x65   : > { %7962 = vmatprep.subr.bf16.mxu1 %v10162_v45 }
  0x67   : > { %7935 = vmatpush3.bf16.msra.mxu0 %v10168_v46 }
  0x68   : > { %7963 = vmatpush3.bf16.msra.mxu1 %v10174_v47  ;;  %7976 = vmatprep.subr.bf16.mxu0 %v10187_v52 }
  0x69   : > { %8004 = vmatprep.subr.bf16.mxu1 %v10192_v53 }
  0x6a   : > { %1220 = vmatmul.mubr.bf16.vlgmr.msra.gmra.mrb[0].mxu0 %v8823_v48  ;;  %v10335_v48 = vld [vmem:[%s12771_s1 + $0x170] sm:$0xff]  }
  0x6b   : > { %1269 = vmatmul.mubr.bf16.vlgmr.msra.gmra.mrb[0].mxu1 %v8826_v50  ;;  %7977 = vmatpush3.bf16.msra.mxu0 %v10198_v54  ;;  %v10346_v50 = vld [vmem:[%s12771_s1 + $0x130] sm:$0xff]  }
  0x6c   : > { %8005 = vmatpush3.bf16.msra.mxu1 %v10204_v55  ;;  %7978 = vmatprep.subr.bf16.mxu0 %v10210_v56 }
  0x6d   : > { %8006 = vmatprep.subr.bf16.mxu1 %v10216_v57  ;;  %1227 = vmatprep.mubr.bf16.mxu0 %v8851_v10  ;;  %v10358_v10 = vld [vmem:[%s12771_s1 + $0x178] sm:$0xff]  }
  0x6e   : > { %1276 = vmatprep.mubr.bf16.mxu1 %v8853_v11  ;;  %v10364_v11 = vld [vmem:[%s12771_s1 + $0x1f8] sm:$0xff]  }
  0x6f   : > { %7979 = vmatpush3.bf16.msra.mxu0 %v10222_v58  ;;  %12800 = vst [vmem:[#allocation8_spill] sm:$0xff] %v10364_v11 }
  0x70   : > { %8007 = vmatpush3.bf16.msra.mxu1 %v10228_v59  ;;  %7980 = vmatprep.subr.bf16.mxu0 %v10234_v60 }
  0x71   : > { %8008 = vmatprep.subr.bf16.mxu1 %v10240_v61 }
  0x72   : > { %1228 = vmatmul.mubr.bf16.gmra.mrb[4].mxu0 %v8857_v14  ;;  %v10370_v14 = vld [vmem:[%s12771_s1 + $0x138] sm:$0xff]  }
  0x73   : > { %7981 = vmatpush3.bf16.msra.mxu0 %v10246_v62  ;;  %1277 = vmatmul.mubr.bf16.gmra.mrb[4].mxu1 %v8858_v15  ;;  %v10376_v15 = vld [vmem:[%s12771_s1 + $0x1b8] sm:$0xff]  }
  0x74   : > { %8009 = vmatpush3.bf16.msra.mxu1 %v10252_v63  ;;  %7982 = vmatprep.subr.bf16.mxu0 %v10258_v0  ;;  %12801 = vst [vmem:[#allocation9_spill] sm:$0xff] %v10376_v15 }
  0x75   : > { %8010 = vmatprep.subr.bf16.mxu1 %v10264_v1 }
  0x77   : > { %7983 = vmatpush3.bf16.msra.mxu0 %v10270_v2 }
  0x78   : > { %8011 = vmatpush3.bf16.msra.mxu1 %v10276_v3  ;;  %7984 = vmatprep.subr.bf16.mxu0 %v10282_v4 }
  0x79   : > { %8012 = vmatprep.subr.bf16.mxu1 %v10288_v5 }
  0x7b   : > { %7985 = vmatpush3.bf16.msra.mxu0 %v10294_v6 }
  0x7c   : > { %8013 = vmatpush3.bf16.msra.mxu1 %v10300_v7  ;;  %7986 = vmatprep.subr.bf16.mxu0 %v10306_v8  ;;  %v10393_v7 = vld [vmem:[%s12771_s1 + $0x208] sm:$0xff]  }
  0x7d   : > { %8014 = vmatprep.subr.bf16.mxu1 %v10312_v9  ;;  %v8872_v9 = vld [vmem:[%s10177_s21 + $0x1c] ss:$36 sps:$4 sm:$0xff]  }
  0x7e   : > { %1366 = vmatprep.mubr.bf16.mxu1 %v8872_v9  ;;  %v8877_v9 = vld [vmem:[%s10177_s21 + $0x58] ss:$36 sps:$4 sm:$0xff]  }
  0x7f   : > { %7987 = vmatpush3.bf16.msra.mxu0 %v10321_v12 }
  0x80   : > { %8015 = vmatpush3.bf16.msra.mxu1 %v10326_v13  ;;  %7988 = vmatprep.subr.bf16.mxu0 %v10335_v48  ;;  %v8870_v13 = vld [vmem:[%s10177_s21 + $0x18] ss:$36 sps:$4 sm:$0xff]  }
  0x81   : > { %8016 = vmatprep.subr.bf16.mxu1 %v10340_v49  ;;  %v8869_v49 = vld [vmem:[%s10177_s21 + $0x14] ss:$36 sps:$4 sm:$0xff]  }
  0x82   : > { %1317 = vmatprep.mubr.bf16.mxu0 %v8869_v49  ;;  %v8875_v49 = vld [vmem:[%s10177_s21 + $0x5c] ss:$36 sps:$4 sm:$0xff]  }
  0x83   : > { %7989 = vmatpush3.bf16.msra.mxu0 %v10346_v50 }
  0x84   : > { %8017 = vmatpush3.bf16.msra.mxu1 %v10352_v51  ;;  %7990 = vmatprep.subr.bf16.mxu0 %v10358_v10  ;;  %v8867_v51 = vld [vmem:[%s10177_s21 + $0x10] ss:$36 sps:$4 sm:$0xff]  }
  0x85   : > { %8018 = vmatprep.subr.bf16.mxu1 %v10364_v11  ;;  %v10387_v11 = vld [vmem:[%s12771_s1 + $0x200] sm:$0xff]  }
  0x87   : > { %7991 = vmatpush3.bf16.msra.mxu0 %v10370_v14 }
  0x88   : > { %8019 = vmatpush3.bf16.msra.mxu1 %v10376_v15  ;;  %8580 = vmatprep.subr.bf16.mxu0 %v10387_v11  ;;  %v8881_v15 = vld [vmem:[%s10177_s21 + $0x60] ss:$36 sps:$4 sm:$0xff]  }
  0x89   : > { %8042 = vmatprep.subr.bf16.mxu1 %v9988_v16  ;;  %v10404_v16 = vld [vmem:[%s12771_s1 + $0x210] sm:$0xff]  }
  0x8a   : > { %1318 = vmatmul.mubr.bf16.vlgmr.msra.gmra.mrb[8].mxu0 %v8867_v51  ;;  %v8879_v51 = vld [vmem:[%s10177_s21 + $0x64] ss:$36 sps:$4 sm:$0xff]  }
  0x8b   : > { %1367 = vmatmul.mubr.bf16.vlgmr.msra.gmra.mrb[8].mxu1 %v8870_v13  ;;  %8581 = vmatpush3.bf16.msra.mxu0 %v10387_v11  ;;  %v10663_v13 = vld [vmem:[%s12771_s1 + $0xa0] sm:$0xff]  }
  0x8c   : > { %8043 = vmatpush3.bf16.msra.mxu1 %v9999_v18  ;;  %8582 = vmatprep.subr.bf16.mxu0 %v10393_v7  ;;  %v10416_v18 = vld [vmem:[%s12771_s1 + $0x218] sm:$0xff]  }
  0x8d   : > { %8044 = vmatprep.subr.bf16.mxu1 %v10011_v20  ;;  %1325 = vmatprep.mubr.bf16.mxu0 %v8875_v49  ;;  %v8887_v20 = vld [vmem:[%s10177_s21 + $0x20] ss:$36 sps:$4 sm:$0xff]   ;;  %v10705_v49 = vld [vmem:[%s12771_s1 + $0x30] sm:$0xff]  }
  0x8e   : > { %1374 = vmatprep.mubr.bf16.mxu1 %v8879_v51  ;;  %v10723_v51 = vld [vmem:[%s12771_s1 + $0xf8] sm:$0xff]  }
  0x8f   : > { %8583 = vmatpush3.bf16.msra.mxu0 %v10393_v7 }
  0x90   : > { %8045 = vmatpush3.bf16.msra.mxu1 %v10023_v22  ;;  %8584 = vmatprep.subr.bf16.mxu0 %v10404_v16  ;;  %v10426_v22 = vld [vmem:[%s12771_s1 + $0x220] sm:$0xff]  }
  0x91   : > { %8046 = vmatprep.subr.bf16.mxu1 %v10035_v24  ;;  %v8891_v24 = vld [vmem:[%s10177_s21 + $0x94] ss:$36 sps:$4 sm:$0xff]  }
  0x92   : > { %1326 = vmatmul.mubr.bf16.gmra.mrb[12].mxu0 %v8877_v9  ;;  %v10717_v9 = vld [vmem:[%s12771_s1 + $0x78] sm:$0xff]  }
  0x93   : > { %1375 = vmatmul.mubr.bf16.gmra.mrb[12].mxu1 %v8881_v15  ;;  %8585 = vmatpush3.bf16.msra.mxu0 %v10404_v16  ;;  %v10699_v15 = vld [vmem:[%s12771_s1 + $0xf0] sm:$0xff]  }
  0x94   : > { %8047 = vmatpush3.bf16.msra.mxu1 %v10047_v26  ;;  %8586 = vmatprep.subr.bf16.mxu0 %v10416_v18  ;;  %v10436_v26 = vld [vmem:[%s12771_s1 + $0x228] sm:$0xff]  }
  0x95   : > { %8048 = vmatprep.subr.bf16.mxu1 %v10059_v28  ;;  %8596 = vmatprep.mubr.bf16.mxu0 %v8887_v20  ;;  %v10445_v28 = vld [vmem:[%s12771_s1 + $0x230] sm:$0xff]   ;;  %v8918_v20 = vld [vmem:[%s10177_s21 + $0x128] ss:$36 sps:$4 sm:$0xff]  }
  0x96   : > { %1577 = vmatprep.mubr.bf16.mxu1 %v8891_v24  ;;  %v10737_v24 = vld [vmem:[%s12771_s1 + $0xb8] sm:$0xff]  }
  0x97   : > { %8587 = vmatpush3.bf16.msra.mxu0 %v10416_v18 }
  0x98   : > { %8049 = vmatpush3.bf16.msra.mxu1 %v10071_v30  ;;  %8588 = vmatprep.subr.bf16.mxu0 %v10426_v22  ;;  %v10454_v30 = vld [vmem:[%s12771_s1 + $0x238] sm:$0xff]  }
  0x99   : > { %8050 = vmatprep.subr.bf16.mxu1 %v10083_v32  ;;  %v8888_v32 = vld [vmem:[%s10177_s21 + $0x68] ss:$36 sps:$4 sm:$0xff]  }
  0x9b   : > { %8589 = vmatpush3.bf16.msra.mxu0 %v10426_v22 }
  0x9c   : > { %8051 = vmatpush3.bf16.msra.mxu1 %v10095_v34  ;;  %8590 = vmatprep.subr.bf16.mxu0 %v10436_v26  ;;  %v8889_v34 = vld [vmem:[%s10177_s21 + $0x90] ss:$36 sps:$4 sm:$0xff]  }
  0x9d   : > { %8052 = vmatprep.subr.bf16.mxu1 %v10107_v36  ;;  %v8892_v36 = vld [vmem:[%s10177_s21 + $0xdc] ss:$36 sps:$4 sm:$0xff]  }
  0x9f   : > { %8591 = vmatpush3.bf16.msra.mxu0 %v10436_v26 }
  0xa0   : > { %8053 = vmatpush3.bf16.msra.mxu1 %v10119_v38  ;;  %8592 = vmatprep.subr.bf16.mxu0 %v10445_v28  ;;  %v8897_v38 = vld [vmem:[%s10177_s21 + $0x9c] ss:$36 sps:$4 sm:$0xff]  }
  0xa1   : > { %8054 = vmatprep.subr.bf16.mxu1 %v10132_v40  ;;  %v8894_v40 = vld [vmem:[%s10177_s21 + $0xd8] ss:$36 sps:$4 sm:$0xff]  }
  0xa3   : > { %8593 = vmatpush3.bf16.msra.mxu0 %v10445_v28 }
  0xa4   : > { %8055 = vmatpush3.bf16.msra.mxu1 %v10144_v42  ;;  %8594 = vmatprep.subr.bf16.mxu0 %v10454_v30  ;;  %v12806_v42 = vld [vmem:[#allocation7_spill] sm:$0xff] }
  0xa5   : > { %8056 = vmatprep.subr.bf16.mxu1 %v10156_v44  ;;  %v8907_v44 = vld [vmem:[%s10177_s21 + $0xa8] ss:$36 sps:$4 sm:$0xff]  }
  0xa7   : > { %8595 = vmatpush3.bf16.msra.mxu0 %v10454_v30 }
  0xa8   : > { %8057 = vmatpush3.bf16.msra.mxu1 %v10168_v46  ;;  %8070 = vmatprep.subr.bf16.mxu0 %v9993_v17  ;;  %v8900_v17 = vld [vmem:[%s10177_s21 + $0xa4] ss:$36 sps:$4 sm:$0xff]   ;;  %v12808_v46 = vld [vmem:[#allocation9_spill] sm:$0xff] }
  0xa9   : > { %8098 = vmatprep.subr.bf16.mxu1 %v10187_v52  ;;  %v10551_v52 = vld [vmem:[%s12771_s1 + $0xc0] sm:$0xff]  }
  0xaa   : > { %8597 = vmatmul.mubr.bf16.vlgmr.msra.gmra.mrb[16].mxu0 %v8888_v32  ;;  %v8923_v32 = vld [vmem:[%s10177_s21 + $0x174] ss:$36 sps:$4 sm:$0xff]  }
  0xab   : > { %1578 = vmatmul.mubr.bf16.vlgmr.msra.gmra.mrb[16].mxu1 %v8889_v34  ;;  %8071 = vmatpush3.bf16.msra.mxu0 %v10005_v19  ;;  %v8895_v19 = vld [vmem:[%s10177_s21 + $0x98] ss:$36 sps:$4 sm:$0xff]   ;;  %v10757_v34 = vld [vmem:[%s12771_s1 + $0x100] sm:$0xff]  }
  0xac   : > { %8099 = vmatpush3.bf16.msra.mxu1 %v10198_v54  ;;  %8072 = vmatprep.subr.bf16.mxu0 %v10017_v21  ;;  %v8898_v21 = vld [vmem:[%s10177_s21 + $0xa0] ss:$36 sps:$4 sm:$0xff]   ;;  %v8920_v54 = vld [vmem:[%s10177_s21 + $0x12c] ss:$36 sps:$4 sm:$0xff]  }
  0xad   : > { %8100 = vmatprep.subr.bf16.mxu1 %v10210_v56  ;;  %1585 = vmatprep.mubr.bf16.mxu1 %v8892_v36  ;;  %v10565_v56 = vld [vmem:[%s12771_s1 + $0x80] sm:$0xff]  }
  0xae   : > { %1626 = vmatprep.mubr.bf16.mxu0 %v8897_v38  ;;  %v10763_v36 = vld [vmem:[%s12771_s1 + $0x180] sm:$0xff]   ;;  %v10769_v38 = vld [vmem:[%s12771_s1 + $0x148] sm:$0xff]  }
  0xaf   : > { %8073 = vmatpush3.bf16.msra.mxu0 %v10029_v23  ;;  %v8901_v23 = vld [vmem:[%s10177_s21 + $0xe4] ss:$36 sps:$4 sm:$0xff]  }
  0xb0   : > { %8101 = vmatpush3.bf16.msra.mxu1 %v10222_v58  ;;  %8074 = vmatprep.subr.bf16.mxu0 %v10041_v25  ;;  %v8904_v25 = vld [vmem:[%s10177_s21 + $0xec] ss:$36 sps:$4 sm:$0xff]  }
  0xb1   : > { %8102 = vmatprep.subr.bf16.mxu1 %v10234_v60  ;;  %v10577_v58 = vld [vmem:[%s12771_s1 + $0xc8] sm:$0xff]  }
  0xb2   : > { %v10584_v60 = vld [vmem:[%s12771_s1 + $0x8] sm:$0xff]  }
  0xb3   : > { %1586 = vmatmul.mubr.bf16.gmra.mrb[20].mxu1 %v8894_v40  ;;  %8075 = vmatpush3.bf16.msra.mxu0 %v10053_v27  ;;  %v8903_v27 = vld [vmem:[%s10177_s21 + $0xe0] ss:$36 sps:$4 sm:$0xff]   ;;  %v10775_v40 = vld [vmem:[%s12771_s1 + $0x1c8] sm:$0xff]  }
  0xb4   : > { %8103 = vmatpush3.bf16.msra.mxu1 %v10246_v62  ;;  %8076 = vmatprep.subr.bf16.mxu0 %v10065_v29  ;;  %v8906_v29 = vld [vmem:[%s10177_s21 + $0xe8] ss:$36 sps:$4 sm:$0xff]   ;;  %v10596_v62 = vld [vmem:[%s12771_s1 + $0x50] sm:$0xff]  }
  0xb5   : > { %8104 = vmatprep.subr.bf16.mxu1 %v10258_v0  ;;  %1675 = vmatprep.mubr.bf16.mxu1 %v8900_v17  ;;  %v8917_v0 = vld [vmem:[%s10177_s21 + $0x124] ss:$36 sps:$4 sm:$0xff]  }
  0xb6   : > { %v8925_v17 = vld [vmem:[%s10177_s21 + $0x168] ss:$36 sps:$4 sm:$0xff]  }
  0xb7   : > { %8077 = vmatpush3.bf16.msra.mxu0 %v10077_v31  ;;  %v8909_v31 = vld [vmem:[%s10177_s21 + $0xac] ss:$36 sps:$4 sm:$0xff]  }
  0xb8   : > { %8105 = vmatpush3.bf16.msra.mxu1 %v10270_v2  ;;  %8078 = vmatprep.subr.bf16.mxu0 %v10089_v33  ;;  %v8910_v33 = vld [vmem:[%s10177_s21 + $0xb0] ss:$36 sps:$4 sm:$0xff]  }
  0xb9   : > { %8106 = vmatprep.subr.bf16.mxu1 %v10282_v4  ;;  %v10615_v2 = vld [vmem:[%s12771_s1 + $0x90] sm:$0xff]   ;;  %v10627_v4 = vld [vmem:[%s12771_s1 + $0xd8] sm:$0xff]  }
  0xbb   : > { %8079 = vmatpush3.bf16.msra.mxu0 %v10101_v35  ;;  %v12802_v35 = vld [vmem:[#allocation3_spill] sm:$0xff] }
  0xbc   : > { %8107 = vmatpush3.bf16.msra.mxu1 %v10294_v6  ;;  %8080 = vmatprep.subr.bf16.mxu0 %v10113_v37  ;;  %v12803_v37 = vld [vmem:[#allocation4_spill] sm:$0xff]  ;;  %v10639_v6 = vld [vmem:[%s12771_s1 + $0x98] sm:$0xff]  }
  0xbd   : > { %8108 = vmatprep.subr.bf16.mxu1 %v10306_v8  ;;  %v10651_v8 = vld [vmem:[%s12771_s1 + $0xe0] sm:$0xff]  }
  0xbf   : > { %8081 = vmatpush3.bf16.msra.mxu0 %v10126_v39  ;;  %v12804_v39 = vld [vmem:[#allocation5_spill] sm:$0xff] }
  0xc0   : > { %8109 = vmatpush3.bf16.msra.mxu1 %v10321_v12  ;;  %8082 = vmatprep.subr.bf16.mxu0 %v10138_v41  ;;  %v12805_v41 = vld [vmem:[#allocation6_spill] sm:$0xff]  ;;  %v10657_v12 = vld [vmem:[%s12771_s1 + $0x20] sm:$0xff]  }
  0xc1   : > { %8110 = vmatprep.subr.bf16.mxu1 %v10335_v48  ;;  %v10669_v48 = vld [vmem:[%s12771_s1 + $0x68] sm:$0xff]  }
  0xc3   : > { %8083 = vmatpush3.bf16.msra.mxu0 %v10150_v43  ;;  %v12807_v43 = vld [vmem:[#allocation8_spill] sm:$0xff] }
  0xc4   : > { %8111 = vmatpush3.bf16.msra.mxu1 %v10346_v50  ;;  %8084 = vmatprep.subr.bf16.mxu0 %v10162_v45  ;;  %v8911_v45 = vld [vmem:[%s10177_s21 + $0xf8] ss:$36 sps:$4 sm:$0xff]   ;;  %v10675_v50 = vld [vmem:[%s12771_s1 + $0xe8] sm:$0xff]  }
  0xc5   : > { %8112 = vmatprep.subr.bf16.mxu1 %v10358_v10  ;;  %v10681_v10 = vld [vmem:[%s12771_s1 + $0x28] sm:$0xff]  }
  0xc7   : > { %8085 = vmatpush3.bf16.msra.mxu0 %v10174_v47  ;;  %v10545_v47 = vld [vmem:[%s12771_s1 + $0x40] sm:$0xff]  }
  0xc8   : > { %8113 = vmatpush3.bf16.msra.mxu1 %v10370_v14  ;;  %8126 = vmatprep.subr.bf16.mxu0 %v10192_v53  ;;  %v8912_v53 = vld [vmem:[%s10177_s21 + $0xf4] ss:$36 sps:$4 sm:$0xff]  }
  0xc9   : > { %8600 = vmatprep.subr.bf16.mxu1 %v10387_v11  ;;  %v10693_v14 = vld [vmem:[%s12771_s1 + $0x70] sm:$0xff]  }
  0xca   : > { %1627 = vmatmul.mubr.bf16.vlgmr.msra.gmra.mrb[20].mxu0 %v8895_v19  ;;  %v8926_v19 = vld [vmem:[%s10177_s21 + $0x170] ss:$36 sps:$4 sm:$0xff]  }
  0xcb   : > { %1676 = vmatmul.mubr.bf16.vlgmr.msra.gmra.mrb[24].mxu1 %v8898_v21  ;;  %8127 = vmatpush3.bf16.msra.mxu0 %v10204_v55  ;;  %v10559_v55 = vld [vmem:[%s12771_s1] sm:$0xff]   ;;  %v10783_v21 = vld [vmem:[%s12771_s1 + $0x108] sm:$0xff]  }
  0xcc   : > { %8601 = vmatpush3.bf16.msra.mxu1 %v10387_v11  ;;  %8128 = vmatprep.subr.bf16.mxu0 %v10216_v57  ;;  %v10571_v57 = vld [vmem:[%s12771_s1 + $0x48] sm:$0xff]  }
  0xcd   : > { %8602 = vmatprep.subr.bf16.mxu1 %v10393_v7  ;;  %1634 = vmatprep.mubr.bf16.mxu0 %v8901_v23  ;;  %v10687_v11 = vld [vmem:[%s12771_s1 + $0xa8] sm:$0xff]  }
  0xce   : > { %1683 = vmatprep.mubr.bf16.mxu1 %v8904_v25  ;;  %v10789_v23 = vld [vmem:[%s12771_s1 + $0x188] sm:$0xff]   ;;  %v10795_v25 = vld [vmem:[%s12771_s1 + $0x150] sm:$0xff]  }
  0xcf   : > { %8129 = vmatpush3.bf16.msra.mxu0 %v10228_v59  ;;  %v8914_v59 = vld [vmem:[%s10177_s21 + $0xf0] ss:$36 sps:$4 sm:$0xff]  }
  0xd0   : > { %8603 = vmatpush3.bf16.msra.mxu1 %v10393_v7  ;;  %8130 = vmatprep.subr.bf16.mxu0 %v10240_v61  ;;  %v10590_v61 = vld [vmem:[%s12771_s1 + $0x88] sm:$0xff]   ;;  %v10645_v7 = vld [vmem:[%s12771_s1 + $0x60] sm:$0xff]  }
  0xd1   : > { %8604 = vmatprep.subr.bf16.mxu1 %v10404_v16 }
  0xd2   : > { %1635 = vmatmul.mubr.bf16.gmra.mrb[24].mxu0 %v8903_v27  ;;  %v10801_v27 = vld [vmem:[%s12771_s1 + $0x1d0] sm:$0xff]  }
  0xd3   : > { %1684 = vmatmul.mubr.bf16.gmra.mrb[28].mxu1 %v8906_v29  ;;  %8131 = vmatpush3.bf16.msra.mxu0 %v10252_v63  ;;  %v10602_v63 = vld [vmem:[%s12771_s1 + $0xd0] sm:$0xff]  }
  0xd4   : > { %8605 = vmatpush3.bf16.msra.mxu1 %v10404_v16  ;;  %8132 = vmatprep.subr.bf16.mxu0 %v10264_v1  ;;  %v10609_v1 = vld [vmem:[%s12771_s1 + $0x10] sm:$0xff]  }
  0xd5   : > { %8606 = vmatprep.subr.bf16.mxu1 %v10416_v18  ;;  %1724 = vmatprep.mubr.bf16.mxu0 %v8909_v31  ;;  %v10711_v16 = vld [vmem:[%s12771_s1 + $0xb0] sm:$0xff]   ;;  %v8932_v31 = vld [vmem:[%s10177_s21 + $0x13c] ss:$36 sps:$4 sm:$0xff]  }
  0xd6   : > { %8616 = vmatprep.mubr.bf16.mxu1 %v8910_v33  ;;  %v8929_v29 = vld [vmem:[%s10177_s21 + $0x134] ss:$36 sps:$4 sm:$0xff]  }
  0xd7   : > { %8133 = vmatpush3.bf16.msra.mxu0 %v10276_v3  ;;  %v10621_v3 = vld [vmem:[%s12771_s1 + $0x58] sm:$0xff]   ;;  %v10809_v33 = vld [vmem:[%s12771_s1 + $0x110] sm:$0xff]  }
  0xd8   : > { %8607 = vmatpush3.bf16.msra.mxu1 %v10416_v18  ;;  %8134 = vmatprep.subr.bf16.mxu0 %v10288_v5  ;;  %v10633_v5 = vld [vmem:[%s12771_s1 + $0x18] sm:$0xff]   ;;  %v8915_v18 = vld [vmem:[%s10177_s21 + $0x120] ss:$36 sps:$4 sm:$0xff]  }
  0xd9   : > { %8608 = vmatprep.subr.bf16.mxu1 %v10426_v22 }
  0xdb   : > { %8135 = vmatpush3.bf16.msra.mxu0 %v12802_v35  ;;  %v10815_v35 = vld [vmem:[%s12771_s1 + $0x190] sm:$0xff]  }
  0xdc   : > { %8609 = vmatpush3.bf16.msra.mxu1 %v10426_v22  ;;  %8136 = vmatprep.subr.bf16.mxu0 %v12803_v37  ;;  %v10731_v22 = vld [vmem:[%s12771_s1 + $0x38] sm:$0xff]  }
  0xdd   : > { %8610 = vmatprep.subr.bf16.mxu1 %v10436_v26  ;;  %v10821_v37 = vld [vmem:[%s12771_s1 + $0x158] sm:$0xff]  }
  0xdf   : > { %8137 = vmatpush3.bf16.msra.mxu0 %v12804_v39  ;;  %v10827_v39 = vld [vmem:[%s12771_s1 + $0x1d8] sm:$0xff]  }
  0xe0   : > { %8611 = vmatpush3.bf16.msra.mxu1 %v10436_v26  ;;  %8138 = vmatprep.subr.bf16.mxu0 %v12805_v41  ;;  %v10743_v26 = vld [vmem:[%s12771_s1 + $0x140] sm:$0xff]   ;;  %v10833_v41 = vld [vmem:[%s12771_s1 + $0x118] sm:$0xff]  }
  0xe1   : > { %8612 = vmatprep.subr.bf16.mxu1 %v10445_v28 }
  0xe3   : > { %8139 = vmatpush3.bf16.msra.mxu0 %v12806_v42  ;;  %v10839_v42 = vld [vmem:[%s12771_s1 + $0x198] sm:$0xff]  }
  0xe4   : > { %8613 = vmatpush3.bf16.msra.mxu1 %v10445_v28  ;;  %8140 = vmatprep.subr.bf16.mxu0 %v12807_v43  ;;  %v10749_v28 = vld [vmem:[%s12771_s1 + $0x1c0] sm:$0xff]   ;;  %12809 = vst [vmem:[#allocation3_spill] sm:$0xff] %v10839_v42 }
  0xe5   : > { %8614 = vmatprep.subr.bf16.mxu1 %v10454_v30  ;;  %v10845_v43 = vld [vmem:[%s12771_s1 + $0x160] sm:$0xff]  }
  0xe7   : > { %8141 = vmatpush3.bf16.msra.mxu0 %v12808_v46  ;;  %v10863_v46 = vld [vmem:[%s12771_s1 + $0x1a0] sm:$0xff]  }
  0xe8   : > { %8615 = vmatpush3.bf16.msra.mxu1 %v10454_v30  ;;  %8164 = vmatprep.subr.bf16.mxu0 %v10545_v47  ;;  %v8921_v30 = vld [vmem:[%s10177_s21 + $0x16c] ss:$36 sps:$4 sm:$0xff]   ;;  %12811 = vst [vmem:[#allocation5_spill] sm:$0xff] %v10863_v46 }
  0xe9   : > { %8192 = vmatprep.subr.bf16.mxu1 %v10551_v52 }
  0xea   : > { %1725 = vmatmul.mubr.bf16.vlgmr.msra.gmra.mrb[28].mxu0 %v8907_v44  ;;  %v10851_v44 = vld [vmem:[%s12771_s1 + $0x1e0] sm:$0xff]  }
  0xeb   : > { %8617 = vmatmul.mubr.bf16.vlgmr.msra.gmra.mrb[32].mxu1 %v8911_v45  ;;  %8165 = vmatpush3.bf16.msra.mxu0 %v10559_v55  ;;  %12810 = vst [vmem:[#allocation4_spill] sm:$0xff] %v10851_v44  ;;  %v10857_v45 = vld [vmem:[%s12771_s1 + $0x120] sm:$0xff]  }
  0xec   : > { %8193 = vmatpush3.bf16.msra.mxu1 %v10565_v56  ;;  %8166 = vmatprep.subr.bf16.mxu0 %v10571_v57 }
  0xed   : > { %8194 = vmatprep.subr.bf16.mxu1 %v10577_v58  ;;  %1732 = vmatprep.mubr.bf16.mxu0 %v8912_v53  ;;  %v10869_v53 = vld [vmem:[%s12771_s1 + $0x168] sm:$0xff]  }
  0xee   : > { %1984 = vmatprep.mubr.bf16.mxu1 %v8920_v54  ;;  %v10875_v54 = vld [vmem:[%s12771_s1 + $0x1e8] sm:$0xff]  }
  0xef   : > { %8167 = vmatpush3.bf16.msra.mxu0 %v10584_v60  ;;  %12812 = vst [vmem:[#allocation6_spill] sm:$0xff] %v10875_v54 }
  0xf0   : > { %8195 = vmatpush3.bf16.msra.mxu1 %v10590_v61  ;;  %8168 = vmatprep.subr.bf16.mxu0 %v10596_v62 }
  0xf1   : > { %8196 = vmatprep.subr.bf16.mxu1 %v10602_v63 }
  0xf2   : > { %1733 = vmatmul.mubr.bf16.gmra.mrb[32].mxu0 %v8914_v59  ;;  %v10881_v59 = vld [vmem:[%s12771_s1 + $0x128] sm:$0xff]  }
  0xf3   : > { %8169 = vmatpush3.bf16.msra.mxu0 %v10609_v1  ;;  %1935 = vmatprep.mubr.bf16.mxu0 %v8917_v0  ;;  %v10887_v0 = vld [vmem:[%s12771_s1 + $0x1a8] sm:$0xff]  }
  0xf4   : > { %8197 = vmatpush3.bf16.msra.mxu1 %v10615_v2  ;;  %8170 = vmatprep.subr.bf16.mxu0 %v10621_v3  ;;  %12813 = vst [vmem:[#allocation7_spill] sm:$0xff] %v10887_v0 }
  0xf5   : > { %8198 = vmatprep.subr.bf16.mxu1 %v10627_v4 }
  0xf7   : > { %8171 = vmatpush3.bf16.msra.mxu0 %v10633_v5 }
  0xf8   : > { %8199 = vmatpush3.bf16.msra.mxu1 %v10639_v6  ;;  %8172 = vmatprep.subr.bf16.mxu0 %v10645_v7 }
  0xf9   : > { %8200 = vmatprep.subr.bf16.mxu1 %v10651_v8 }
  0xfb   : > { %8173 = vmatpush3.bf16.msra.mxu0 %v10657_v12 }
  0xfc   : > { %8201 = vmatpush3.bf16.msra.mxu1 %v10663_v13  ;;  %8174 = vmatprep.subr.bf16.mxu0 %v10669_v48 }
  0xfd   : > { %8202 = vmatprep.subr.bf16.mxu1 %v10675_v50 }
  0xff   : > { %8175 = vmatpush3.bf16.msra.mxu0 %v10681_v10 }
 0x100   : > { %8203 = vmatpush3.bf16.msra.mxu1 %v10687_v11  ;;  %8176 = vmatprep.subr.bf16.mxu0 %v10693_v14 }
 0x101   : > { %8204 = vmatprep.subr.bf16.mxu1 %v10699_v15 }
 0x103   : > { %8177 = vmatpush3.bf16.msra.mxu0 %v10705_v49 }
 0x104   : > { %8205 = vmatpush3.bf16.msra.mxu1 %v10711_v16  ;;  %8178 = vmatprep.subr.bf16.mxu0 %v10717_v9 }
 0x105   : > { %8206 = vmatprep.subr.bf16.mxu1 %v10723_v51 }
 0x107   : > { %8179 = vmatpush3.bf16.msra.mxu0 %v10731_v22 }
 0x108   : > { %8207 = vmatpush3.bf16.msra.mxu1 %v10737_v24  ;;  %8220 = vmatprep.subr.bf16.mxu0 %v10743_v26 }
 0x109   : > { %8248 = vmatprep.subr.bf16.mxu1 %v10749_v28 }
 0x10a   : > { %1936 = vmatmul.mubr.bf16.vlgmr.msra.gmra.mrb[36].mxu0 %v8915_v18  ;;  %v10893_v18 = vld [vmem:[%s12771_s1 + $0x170] sm:$0xff]  }
 0x10b   : > { %1985 = vmatmul.mubr.bf16.vlgmr.msra.gmra.mrb[36].mxu1 %v8918_v20  ;;  %8221 = vmatpush3.bf16.msra.mxu0 %v10757_v34  ;;  %v10899_v20 = vld [vmem:[%s12771_s1 + $0x1f0] sm:$0xff]  }
 0x10c   : > { %8249 = vmatpush3.bf16.msra.mxu1 %v10763_v36  ;;  %8222 = vmatprep.subr.bf16.mxu0 %v10769_v38  ;;  %12814 = vst [vmem:[#allocation8_spill] sm:$0xff] %v10899_v20 }
 0x10d   : > { %8250 = vmatprep.subr.bf16.mxu1 %v10775_v40  ;;  %1943 = vmatprep.mubr.bf16.mxu0 %v8921_v30  ;;  %v10905_v30 = vld [vmem:[%s12771_s1 + $0x130] sm:$0xff]  }
 0x10e   : > { %1992 = vmatprep.mubr.bf16.mxu1 %v8923_v32  ;;  %v10911_v32 = vld [vmem:[%s12771_s1 + $0x1b0] sm:$0xff]  }
 0x10f   : > { %8223 = vmatpush3.bf16.msra.mxu0 %v10783_v21  ;;  %12815 = vst [vmem:[#allocation9_spill] sm:$0xff] %v10911_v32 }
 0x110   : > { %8251 = vmatpush3.bf16.msra.mxu1 %v10789_v23  ;;  %8224 = vmatprep.subr.bf16.mxu0 %v10795_v25 }
 0x111   : > { %8252 = vmatprep.subr.bf16.mxu1 %v10801_v27 }
 0x112   : > { %1944 = vmatmul.mubr.bf16.gmra.mrb[40].mxu0 %v8925_v17  ;;  %v10917_v17 = vld [vmem:[%s12771_s1 + $0x178] sm:$0xff]  }
 0x113   : > { %1993 = vmatmul.mubr.bf16.gmra.mrb[40].mxu1 %v8926_v19  ;;  %8225 = vmatpush3.bf16.msra.mxu0 %v10809_v33  ;;  %v10923_v19 = vld [vmem:[%s12771_s1 + $0x1f8] sm:$0xff]  }
 0x114   : > { %8253 = vmatpush3.bf16.msra.mxu1 %v10815_v35  ;;  %8226 = vmatprep.subr.bf16.mxu0 %v10821_v37  ;;  %12816 = vst [vmem:[#allocation10_spill] sm:$0xff] %v10923_v19 }
 0x115   : > { %8254 = vmatprep.subr.bf16.mxu1 %v10827_v39  ;;  %2033 = vmatprep.mubr.bf16.mxu0 %v8929_v29  ;;  %v8927_v29 = vld [vmem:[%s10177_s21 + $0x130] ss:$36 sps:$4 sm:$0xff]  }
 0x116   : > { %2082 = vmatprep.mubr.bf16.mxu1 %v8932_v31  ;;  %v8930_v31 = vld [vmem:[%s10177_s21 + $0x138] ss:$36 sps:$4 sm:$0xff]  }
 0x117   : > { %8227 = vmatpush3.bf16.msra.mxu0 %v10833_v41 }
 0x118   : > { %8255 = vmatpush3.bf16.msra.mxu1 %v10839_v42  ;;  %8228 = vmatprep.subr.bf16.mxu0 %v10845_v43 }
 0x119   : > { %8256 = vmatprep.subr.bf16.mxu1 %v10851_v44 }
 0x11b   : > { %8229 = vmatpush3.bf16.msra.mxu0 %v10857_v45 }
 0x11c   : > { %8257 = vmatpush3.bf16.msra.mxu1 %v10863_v46  ;;  %8230 = vmatprep.subr.bf16.mxu0 %v10869_v53  ;;  %v8943_v46 = vld [vmem:[%s10177_s21 + $0x1b4] ss:$36 sps:$4 sm:$0xff]  }
 0x11d   : > { %8258 = vmatprep.subr.bf16.mxu1 %v10875_v54  ;;  %v8936_v54 = vld [vmem:[%s10177_s21 + $0x184] ss:$36 sps:$4 sm:$0xff]  }
 0x11f   : > { %8231 = vmatpush3.bf16.msra.mxu0 %v10881_v59 }
 0x120   : > { %8259 = vmatpush3.bf16.msra.mxu1 %v10887_v0  ;;  %8232 = vmatprep.subr.bf16.mxu0 %v10893_v18  ;;  %v8933_v0 = vld [vmem:[%s10177_s21 + $0x17c] ss:$36 sps:$4 sm:$0xff]  }
 0x121   : > { %8260 = vmatprep.subr.bf16.mxu1 %v10899_v20  ;;  %v10937_v20 = vld [vmem:[%s12771_s1 + $0x1b8] sm:$0xff]  }
 0x122   : > { %12817 = vst [vmem:[#allocation11_spill] sm:$0xff] %v10937_v20 }
 0x123   : > { %8233 = vmatpush3.bf16.msra.mxu0 %v10905_v30 }
 0x124   : > { %8261 = vmatpush3.bf16.msra.mxu1 %v10911_v32  ;;  %8234 = vmatprep.subr.bf16.mxu0 %v10917_v17  ;;  %v10931_v32 = vld [vmem:[%s12771_s1 + $0x138] sm:$0xff]  }
 0x125   : > { %8262 = vmatprep.subr.bf16.mxu1 %v10923_v19  ;;  %v10943_v19 = vld [vmem:[%s12771_s1 + $0x200] sm:$0xff]  }
 0x127   : > { %8235 = vmatpush3.bf16.msra.mxu0 %v10931_v32 }
 0x128   : > { %8263 = vmatpush3.bf16.msra.mxu1 %v10937_v20  ;;  %8620 = vmatprep.subr.bf16.mxu0 %v10943_v19  ;;  %v10954_v20 = vld [vmem:[%s12771_s1 + $0x208] sm:$0xff]  }
 0x129   : > { %8286 = vmatprep.subr.bf16.mxu1 %v10545_v47  ;;  %v8935_v47 = vld [vmem:[%s10177_s21 + $0x178] ss:$36 sps:$4 sm:$0xff]  }
 0x12a   : > { %2034 = vmatmul.mubr.bf16.vlgmr.msra.gmra.mrb[44].mxu0 %v8927_v29  ;;  %v8938_v29 = vld [vmem:[%s10177_s21 + $0x180] ss:$36 sps:$4 sm:$0xff]  }
 0x12b   : > { %2083 = vmatmul.mubr.bf16.vlgmr.msra.gmra.mrb[44].mxu1 %v8930_v31  ;;  %8621 = vmatpush3.bf16.msra.mxu0 %v10943_v19  ;;  %v8939_v31 = vld [vmem:[%s10177_s21 + $0x140] ss:$36 sps:$4 sm:$0xff]  }
 0x12c   : > { %8287 = vmatpush3.bf16.msra.mxu1 %v10559_v55  ;;  %8622 = vmatprep.subr.bf16.mxu0 %v10954_v20  ;;  %v10965_v55 = vld [vmem:[%s12771_s1 + $0x210] sm:$0xff]  }
 0x12d   : > { %8288 = vmatprep.subr.bf16.mxu1 %v10571_v57  ;;  %2041 = vmatprep.mubr.bf16.mxu0 %v8933_v0  ;;  %v10976_v57 = vld [vmem:[%s12771_s1 + $0x218] sm:$0xff]  }
 0x12e   : > { %2090 = vmatprep.mubr.bf16.mxu1 %v8936_v54 }
 0x12f   : > { %8623 = vmatpush3.bf16.msra.mxu0 %v10954_v20 }
 0x130   : > { %8289 = vmatpush3.bf16.msra.mxu1 %v10584_v60  ;;  %8624 = vmatprep.subr.bf16.mxu0 %v10965_v55 }
 0x131   : > { %8290 = vmatprep.subr.bf16.mxu1 %v10596_v62  ;;  %v10985_v62 = vld [vmem:[%s12771_s1 + $0x220] sm:$0xff]  }
 0x132   : > { %2042 = vmatmul.mubr.bf16.gmra.mrb[48].mxu0 %v8935_v47 }
 0x133   : > { %2091 = vmatmul.mubr.bf16.gmra.mrb[48].mxu1 %v8938_v29  ;;  %8625 = vmatpush3.bf16.msra.mxu0 %v10965_v55 }
 0x134   : > { %8291 = vmatpush3.bf16.msra.mxu1 %v10609_v1  ;;  %8626 = vmatprep.subr.bf16.mxu0 %v10976_v57 }
 0x135   : > { %8292 = vmatprep.subr.bf16.mxu1 %v10621_v3  ;;  %8636 = vmatprep.mubr.bf16.mxu0 %v8939_v31 }
 0x136   : > { %2293 = vmatprep.mubr.bf16.mxu1 %v8943_v46 }
 0x137   : > { %8627 = vmatpush3.bf16.msra.mxu0 %v10976_v57 }
 0x138   : > { %8293 = vmatpush3.bf16.msra.mxu1 %v10633_v5  ;;  %8628 = vmatprep.subr.bf16.mxu0 %v10985_v62 }
 0x139   : > { %8294 = vmatprep.subr.bf16.mxu1 %v10645_v7  ;;  %v10996_v7 = vld [vmem:[%s12771_s1 + $0x228] sm:$0xff]  }
 0x13b   : > { %8629 = vmatpush3.bf16.msra.mxu0 %v10985_v62 }
 0x13c   : > { %8295 = vmatpush3.bf16.msra.mxu1 %v10657_v12  ;;  %8630 = vmatprep.subr.bf16.mxu0 %v10996_v7  ;;  %v11007_v12 = vld [vmem:[%s12771_s1 + $0x230] sm:$0xff]  }
 0x13d   : > { %v7936_v60 = vpop.f32.mrb[0].mxu0  ;;  %8296 = vmatprep.subr.bf16.mxu1 %v10669_v48  ;;  %v11016_v48 = vld [vmem:[%s12771_s1 + $0x238] sm:$0xff]  }
 0x13e   : > { %v7964_v1 = vpop.f32.mrb[0].mxu1  ;;  %v7937_v54 = vpop.f32.mrb[1].mxu0 }
 0x13f   : > { %v7938_v0 = vadd.f32 %v7937_v54, %v7936_v60  ;;  %v7965_v3 = vpop.f32.mrb[1].mxu1  ;;  %v7939_v47 = vpop.f32.mrb[2].mxu0  ;;  %8631 = vmatpush3.bf16.msra.mxu0 %v10996_v7 }
 0x140   : > { %v7966_v46 = vadd.f32 %v7965_v3, %v7964_v1  ;;  %v7967_v29 = vpop.f32.mrb[2].mxu1  ;;  %v7940_v31 = vpop.f32.mrb[3].mxu0  ;;  %8297 = vmatpush3.bf16.msra.mxu1 %v10681_v10  ;;  %8632 = vmatprep.subr.bf16.mxu0 %v11007_v12  ;;  %v8940_v10 = vld [vmem:[%s10177_s21 + $0x188] ss:$36 sps:$4 sm:$0xff]  }
 0x141   : > { %v7941_v5 = vadd.f32 %v7940_v31, %v7939_v47  ;;  %v7968_v44 = vpop.f32.mrb[3].mxu1  ;;  %8298 = vmatprep.subr.bf16.mxu1 %v10693_v14  ;;  %v8944_v14 = vld [vmem:[%s10177_s21 + $0x1fc] ss:$36 sps:$4 sm:$0xff]  }
 0x142   : > { %v10991_v42 = vadd.f32 %v7966_v46, %v7938_v0  ;;  %v7969_v60 = vadd.f32 %v7968_v44, %v7967_v29  ;;  %v8941_v44 = vld [vmem:[%s10177_s21 + $0x1b0] ss:$36 sps:$4 sm:$0xff]  }
 0x143   : > { %8633 = vmatpush3.bf16.msra.mxu0 %v11007_v12 }
 0x144   : > { %v11000_v1 = vadd.f32 %v7969_v60, %v7941_v5  ;;  %8299 = vmatpush3.bf16.msra.mxu1 %v10705_v49  ;;  %8634 = vmatprep.subr.bf16.mxu0 %v11016_v48  ;;  %v8949_v49 = vld [vmem:[%s10177_s21 + $0x1bc] ss:$36 sps:$4 sm:$0xff]  }
 0x145   : > { %8300 = vmatprep.subr.bf16.mxu1 %v10717_v9  ;;  %v8946_v9 = vld [vmem:[%s10177_s21 + $0x1f8] ss:$36 sps:$4 sm:$0xff]  }
 0x147   : > { %8635 = vmatpush3.bf16.msra.mxu0 %v11016_v48 }
 0x148   : > { %8301 = vmatpush3.bf16.msra.mxu1 %v10731_v22  ;;  %8314 = vmatprep.subr.bf16.mxu0 %v10551_v52  ;;  %v8952_v52 = vld [vmem:[%s10177_s21 + $0x1c4] ss:$36 sps:$4 sm:$0xff]   ;;  %v7942_v22 = vpop.f32.mrb[4].mxu0 }
 0x149   : > { %8342 = vmatprep.subr.bf16.mxu1 %v10743_v26  ;;  %v7943_v26 = vpop.f32.mrb[5].mxu0 }
 0x14a   : > { %8637 = vmatmul.mubr.bf16.vlgmr.msra.gmra.mrb[52].mxu0 %v8940_v10 }
 0x14b   : > { %2294 = vmatmul.mubr.bf16.vlgmr.msra.gmra.mrb[52].mxu1 %v8941_v44  ;;  %8315 = vmatpush3.bf16.msra.mxu0 %v10565_v56  ;;  %v7970_v56 = vpop.f32.mrb[4].mxu1 }
 0x14c   : > { %8343 = vmatpush3.bf16.msra.mxu1 %v10757_v34  ;;  %8316 = vmatprep.subr.bf16.mxu0 %v10577_v58  ;;  %v7944_v58 = vadd.f32 %v7943_v26, %v7942_v22  ;;  %v7971_v34 = vpop.f32.mrb[5].mxu1 }
 0x14d   : > { %8344 = vmatprep.subr.bf16.mxu1 %v10769_v38  ;;  %2301 = vmatprep.mubr.bf16.mxu1 %v8944_v14  ;;  %v7945_v38 = vpop.f32.mrb[6].mxu0  ;;  %v7972_v54 = vadd.f32 %v7971_v34, %v7970_v56 }
 0x14e   : > { %2342 = vmatprep.mubr.bf16.mxu0 %v8949_v49  ;;  %v7946_v0 = vpop.f32.mrb[7].mxu0  ;;  %v8956_v49 = vld [vmem:[%s10177_s21 + $0x20c] ss:$36 sps:$4 sm:$0xff]  }
 0x14f   : > { %8317 = vmatpush3.bf16.msra.mxu0 %v10590_v61  ;;  %v7973_v61 = vpop.f32.mrb[6].mxu1 }
 0x150   : > { %8345 = vmatpush3.bf16.msra.mxu1 %v10783_v21  ;;  %8318 = vmatprep.subr.bf16.mxu0 %v10602_v63  ;;  %v7947_v63 = vadd.f32 %v7946_v0, %v7945_v38  ;;  %v7974_v21 = vpop.f32.mrb[7].mxu1  ;;  %v8961_v38 = vld [vmem:[%s10177_s21 + $0x1cc] ss:$36 sps:$4 sm:$0xff]  }
 0x151   : > { %8346 = vmatprep.subr.bf16.mxu1 %v10795_v25  ;;  %v1279_v25 = vadd.f32 %v7972_v54, %v7944_v58  ;;  %v7975_v3 = vadd.f32 %v7974_v21, %v7973_v61  ;;  %v8958_v58 = vld [vmem:[%s10177_s21 + $0x208] ss:$36 sps:$4 sm:$0xff]   ;;  %v8962_v54 = vld [vmem:[%s10177_s21 + $0x1d0] ss:$36 sps:$4 sm:$0xff]  }
 0x153   : > { %2302 = vmatmul.mubr.bf16.gmra.mrb[56].mxu1 %v8946_v9  ;;  %8319 = vmatpush3.bf16.msra.mxu0 %v10615_v2  ;;  %v1282_v2 = vadd.f32 %v7975_v3, %v7947_v63 }
 0x154   : > { %8347 = vmatpush3.bf16.msra.mxu1 %v10809_v33  ;;  %8320 = vmatprep.subr.bf16.mxu0 %v10627_v4 }
 0x155   : > { %8348 = vmatprep.subr.bf16.mxu1 %v10821_v37  ;;  %2391 = vmatprep.mubr.bf16.mxu1 %v8952_v52 }
 0x157   : > { %8321 = vmatpush3.bf16.msra.mxu0 %v10639_v6 }
 0x158   : > { %8349 = vmatpush3.bf16.msra.mxu1 %v10833_v41  ;;  %8322 = vmatprep.subr.bf16.mxu0 %v10651_v8 }
 0x159   : > { %8350 = vmatprep.subr.bf16.mxu1 %v10845_v43 }
 0x15b   : > { %8323 = vmatpush3.bf16.msra.mxu0 %v10663_v13 }
 0x15c   : > { %8351 = vmatpush3.bf16.msra.mxu1 %v10857_v45  ;;  %8324 = vmatprep.subr.bf16.mxu0 %v10675_v50 }
 0x15d   : > { %v7992_v4 = vpop.f32.mrb[8].mxu0  ;;  %8352 = vmatprep.subr.bf16.mxu1 %v10869_v53  ;;  %v2508_v53 = vlaneseq }
 0x15e   : > { %v7993_v33 = vpop.f32.mrb[9].mxu0  ;;  %v8020_v37 = vpop.f32.mrb[8].mxu1 }
 0x15f   : > { %v7994_v47 = vadd.f32 %v7993_v33, %v7992_v4  ;;  %v7995_v6 = vpop.f32.mrb[10].mxu0  ;;  %v8021_v46 = vpop.f32.mrb[9].mxu1  ;;  %8325 = vmatpush3.bf16.msra.mxu0 %v10687_v11 }
 0x160   : > { %v7996_v41 = vpop.f32.mrb[11].mxu0  ;;  %v8022_v8 = vadd.f32 %v8021_v46, %v8020_v37  ;;  %8353 = vmatpush3.bf16.msra.mxu1 %v10881_v59  ;;  %v8023_v13 = vpop.f32.mrb[10].mxu1  ;;  %8326 = vmatprep.subr.bf16.mxu0 %v10699_v15  ;;  %v8947_v15 = vld [vmem:[%s10177_s21 + $0x1b8] ss:$36 sps:$4 sm:$0xff]  }
 0x161   : > { %v1320_v43 = vadd.f32 %v7994_v47, %v10991_v42  ;;  %v7997_v45 = vadd.f32 %v7996_v41, %v7995_v6  ;;  %v8024_v50 = vpop.f32.mrb[11].mxu1  ;;  %8354 = vmatprep.subr.bf16.mxu1 %v10893_v18  ;;  %v8950_v42 = vld [vmem:[%s10177_s21 + $0x1c0] ss:$36 sps:$4 sm:$0xff]   ;;  %v11064_v18 = vshrl.u32 %v2508_v53, 7  ;;  %v12823_v47 = vld [vmem:[#allocation8_spill] sm:$0xff] }
 0x162   : > { %v8025_v29 = vadd.f32 %v8024_v50, %v8023_v13  ;;  %v8969_v13 = vld [vmem:[%s12772_s2 + $0xc] ss:$16 sps:$4 sm:$0xff]   ;;  %v12824_v50 = vld [vmem:[#allocation9_spill] sm:$0xff] }
 0x163   : > { %v1323_v31 = vadd.f32 %v7997_v45, %v11000_v1  ;;  %v11056_v11 = vadd.f32 %v8022_v8, %v1320_v43  ;;  %8327 = vmatpush3.bf16.msra.mxu0 %v10711_v16  ;;  %v11075_v56 = vsub.s32 0, %v11064_v18 }
 0x164   : > { %8355 = vmatpush3.bf16.msra.mxu1 %v10905_v30  ;;  %8328 = vmatprep.subr.bf16.mxu0 %v10723_v51 }
 0x165   : > { %v7998_v59 = vpop.f32.mrb[12].mxu0  ;;  %8356 = vmatprep.subr.bf16.mxu1 %v10917_v17  ;;  %v11066_v5 = vadd.f32 %v8025_v29, %v1323_v31  ;;  %v8953_v17 = vld [vmem:[%s10177_s21 + $0x204] ss:$36 sps:$4 sm:$0xff]   ;;  %v12825_v31 = vld [vmem:[#allocation10_spill] sm:$0xff] }
 0x166   : > { %v7999_v60 = vpop.f32.mrb[13].mxu0  ;;  %v8026_v1 = vpop.f32.mrb[12].mxu1 }
 0x167   : > { %v8000_v10 = vadd.f32 %v7999_v60, %v7998_v59  ;;  %v8001_v44 = vpop.f32.mrb[14].mxu0  ;;  %v8027_v16 = vpop.f32.mrb[13].mxu1  ;;  %8329 = vmatpush3.bf16.msra.mxu0 %v10737_v24  ;;  %v8963_v59 = vld [vmem:[%s10177_s21 + $0x218] ss:$36 sps:$4 sm:$0xff]  }
 0x168   : > { %v8002_v30 = vpop.f32.mrb[15].mxu0  ;;  %v8028_v14 = vadd.f32 %v8027_v16, %v8026_v1  ;;  %8357 = vmatpush3.bf16.msra.mxu1 %v10931_v32  ;;  %v8029_v51 = vpop.f32.mrb[14].mxu1  ;;  %8370 = vmatprep.subr.bf16.mxu0 %v10749_v28  ;;  %v8955_v28 = vld [vmem:[%s10177_s21 + $0x200] ss:$36 sps:$4 sm:$0xff]   ;;  %v8970_v1 = vld [vmem:[%s10177_s21 + $0x214] ss:$36 sps:$4 sm:$0xff]  }
 0x169   : > { %v1328_v9 = vadd.f32 %v8000_v10, %v1279_v25  ;;  %v8003_v52 = vadd.f32 %v8002_v30, %v8001_v44  ;;  %v8030_v22 = vpop.f32.mrb[15].mxu1  ;;  %8640 = vmatprep.subr.bf16.mxu1 %v10943_v19  ;;  %v12822_v25 = vld [vmem:[#allocation7_spill] sm:$0xff] }
 0x16a   : > { %v8031_v24 = vadd.f32 %v8030_v22, %v8029_v51  ;;  %2343 = vmatmul.mubr.bf16.vlgmr.msra.gmra.mrb[56].mxu0 %v8947_v15  ;;  %v12826_v30 = vld [vmem:[#allocation11_spill] sm:$0xff] }
 0x16b   : > { %v1331_v26 = vadd.f32 %v8003_v52, %v1282_v2  ;;  %2392 = vmatmul.mubr.bf16.vlgmr.msra.gmra.mrb[60].mxu1 %v8950_v42  ;;  %v1377_v32 = vadd.f32 %v8028_v14, %v1328_v9  ;;  %8371 = vmatpush3.bf16.msra.mxu0 %v10763_v36  ;;  %v11094_v36 = vld [vmem:[%s12775_s5] sm:$0xff]  ;;  %v8978_v14 = vld [vmem:[%s12772_s2 + $0x2c] ss:$16 sps:$4 sm:$0xff]   ;;  %v8976_v52 = vld [vmem:[%s12772_s2 + $0x28] ss:$16 sps:$4 sm:$0xff]  }
 0x16c   : > { %8641 = vmatpush3.bf16.msra.mxu1 %v10943_v19  ;;  %8372 = vmatprep.subr.bf16.mxu0 %v10775_v40  ;;  %v12818_v40 = vld [vmem:[#allocation3_spill] sm:$0xff] }
 0x16d   : > { %8642 = vmatprep.subr.bf16.mxu1 %v10954_v20  ;;  %v1380_v34 = vadd.f32 %v8031_v24, %v1331_v26  ;;  %2350 = vmatprep.mubr.bf16.mxu0 %v8953_v17  ;;  %v8964_v42 = vld [vmem:[%s12772_s2] ss:$16 sps:$4 sm:$0xff]   ;;  %v8981_v22 = vld [vmem:[%s12772_s2 + $0x44] ss:$16 sps:$4 sm:$0xff]   ;;  %v8984_v24 = vld [vmem:[%s12772_s2 + $0x4c] ss:$16 sps:$4 sm:$0xff]  }
 0x16e   : > { %2399 = vmatprep.mubr.bf16.mxu1 %v8956_v49  ;;  %v8973_v9 = vld [vmem:[%s12772_s2 + $0x20] ss:$16 sps:$4 sm:$0xff]  }
 0x16f   : > { %8373 = vmatpush3.bf16.msra.mxu0 %v10789_v23  ;;  %v12819_v23 = vld [vmem:[#allocation4_spill] sm:$0xff]  ;;  %v8972_v26 = vld [vmem:[%s10177_s21 + $0x210] ss:$36 sps:$4 sm:$0xff]  }
 0x170   : > { %8643 = vmatpush3.bf16.msra.mxu1 %v10954_v20  ;;  %8374 = vmatprep.subr.bf16.mxu0 %v10801_v27  ;;  %v2511_v27 = vrot.slane %v11094_v36, %v11075_v56  ;;  %v12821_v20 = vld [vmem:[#allocation6_spill] sm:$0xff] }
 0x171   : > { %8644 = vmatprep.subr.bf16.mxu1 %v10965_v55 }
 0x172   : > { %2351 = vmatmul.mubr.bf16.gmra.mrb[60].mxu0 %v8955_v28  ;;  %v8982_v28 = vld [vmem:[%s12772_s2 + $0x48] ss:$16 sps:$4 sm:$0xff]  }
 0x173   : > { %2400 = vmatmul.mubr.bf16.gmra.mrb[64].mxu1 %v8958_v58  ;;  %8375 = vmatpush3.bf16.msra.mxu0 %v10815_v35  ;;  %v12820_v35 = vld [vmem:[#allocation5_spill] sm:$0xff] }
 0x174   : > { %8645 = vmatpush3.bf16.msra.mxu1 %v10965_v55  ;;  %8376 = vmatprep.subr.bf16.mxu0 %v10827_v39  ;;  %v2531_v39 = vrot.slane %v2511_v27, %v11075_v56  ;;  %v8987_v58 = vld [vmem:[%s12772_s2 + $0x64] ss:$16 sps:$4 sm:$0xff]   ;;  %v8991_v27 = vld [vmem:[%s12772_s2 + $0x80] ss:$16 sps:$4 sm:$0xff]  }
 0x175   : > { %8646 = vmatprep.subr.bf16.mxu1 %v10976_v57  ;;  %2440 = vmatprep.mubr.bf16.mxu0 %v8961_v38  ;;  %v8985_v38 = vld [vmem:[%s12772_s2 + $0x60] ss:$16 sps:$4 sm:$0xff]  }
 0x176   : > { %8656 = vmatprep.mubr.bf16.mxu1 %v8962_v54  ;;  %v8988_v54 = vld [vmem:[%s12772_s2 + $0x68] ss:$16 sps:$4 sm:$0xff]  }
 0x177   : > { %8377 = vmatpush3.bf16.msra.mxu0 %v12818_v40  ;;  %v8993_v40 = vld [vmem:[%s12772_s2 + $0x84] ss:$16 sps:$4 sm:$0xff]  }
 0x178   : > { %8647 = vmatpush3.bf16.msra.mxu1 %v10976_v57  ;;  %8378 = vmatprep.subr.bf16.mxu0 %v12819_v23  ;;  %v8996_v23 = vld [vmem:[%s12772_s2 + $0x8c] ss:$16 sps:$4 sm:$0xff]  }
 0x179   : > { %8648 = vmatprep.subr.bf16.mxu1 %v10985_v62 }
 0x17b   : > { %8379 = vmatpush3.bf16.msra.mxu0 %v12820_v35  ;;  %v8994_v35 = vld [vmem:[%s12772_s2 + $0x88] ss:$16 sps:$4 sm:$0xff]  }
 0x17c   : > { %8649 = vmatpush3.bf16.msra.mxu1 %v10985_v62  ;;  %8380 = vmatprep.subr.bf16.mxu0 %v12821_v20  ;;  %v9002_v20 = vld [vmem:[%s12772_s2 + $0xac] ss:$16 sps:$4 sm:$0xff]  }
 0x17d   : > { %8650 = vmatprep.subr.bf16.mxu1 %v10996_v7  ;;  %v8598_v19 = vpop.f32.mrb[16].mxu0 }
 0x17e   : > { %v8058_v55 = vpop.f32.mrb[16].mxu1  ;;  %v1426_v57 = vadd.f32 %v8598_v19, %v1377_v32  ;;  %v1417_v61 = vpop.f32.mrb[17].mxu0  ;;  %v8979_v32 = vld [vmem:[%s12772_s2 + $0x40] ss:$16 sps:$4 sm:$0xff]  }
 0x17f   : > { %v8059_v0 = vpop.f32.mrb[17].mxu1  ;;  %v1418_v63 = vadd.f32 %v1417_v61, %v11056_v11  ;;  %v8599_v21 = vpop.f32.mrb[18].mxu0  ;;  %8381 = vmatpush3.bf16.msra.mxu0 %v12822_v25  ;;  %v8959_v11 = vld [vmem:[%s10177_s21 + $0x1c8] ss:$36 sps:$4 sm:$0xff]   ;;  %v8997_v19 = vld [vmem:[%s12772_s2 + $0xa0] ss:$16 sps:$4 sm:$0xff]   ;;  %s494_s21 = scalar_lea.vmem %s12778_s8, %s6971_s14 }
 0x180   : > { %v11111_v3 = vadd.f32 %v8059_v0, %v8058_v55  ;;  %8651 = vmatpush3.bf16.msra.mxu1 %v10996_v7  ;;  %v8061_v62 = vpop.f32.mrb[18].mxu1  ;;  %v2552_v2 = vadd.f32 %v2531_v39, %v1426_v57  ;;  %v1429_v4 = vadd.f32 %v8599_v21, %v1380_v34  ;;  %v1420_v33 = vpop.f32.mrb[19].mxu0  ;;  %8382 = vmatprep.subr.bf16.mxu0 %v12823_v47  ;;  %v8966_v7 = vld [vmem:[%s12772_s2 + $0x4] ss:$16 sps:$4 sm:$0xff]   ;;  %v8990_v34 = vld [vmem:[%s12772_s2 + $0x6c] ss:$16 sps:$4 sm:$0xff]  }
 0x181   : > { %v8062_v37 = vpop.f32.mrb[19].mxu1  ;;  %8652 = vmatprep.subr.bf16.mxu1 %v11007_v12  ;;  %v2544_v6 = vadd.f32 %v2531_v39, %v1418_v63  ;;  %v1421_v46 = vadd.f32 %v1420_v33, %v11066_v5  ;;  %v8967_v5 = vld [vmem:[%s12772_s2 + $0x8] ss:$16 sps:$4 sm:$0xff]   ;;  %v9005_v57 = vld [vmem:[%s12772_s2 + $0xc4] ss:$16 sps:$4 sm:$0xff]  }
 0x182   : > { %v11117_v41 = vadd.f32 %v8062_v37, %v8061_v62  ;;  %v2556_v8 = vadd.f32 %v2531_v39, %v1429_v4  ;;  %v2568_v43 = vmax.f32 %v2552_v2, 0.0  ;;  %v9000_v55 = vld [vmem:[%s12772_s2 + $0xa8] ss:$16 sps:$4 sm:$0xff]   ;;  %v9008_v61 = vld [vmem:[%s12772_s2 + $0xcc] ss:$16 sps:$4 sm:$0xff]  }
 0x183   : > { %v2548_v45 = vadd.f32 %v2531_v39, %v1421_v46  ;;  %8383 = vmatpush3.bf16.msra.mxu0 %v12824_v50  ;;  %v2560_v53 = vmax.f32 %v2544_v6, 0.0  ;;  %v8999_v39 = vld [vmem:[%s12772_s2 + $0xa4] ss:$16 sps:$4 sm:$0xff]   ;;  %v9003_v37 = vld [vmem:[%s12772_s2 + $0xc0] ss:$16 sps:$4 sm:$0xff]  }
 0x184   : > { %8653 = vmatpush3.bf16.msra.mxu1 %v11007_v12  ;;  %v2572_v29 = vmax.f32 %v2556_v8, 0.0  ;;  %8384 = vmatprep.subr.bf16.mxu0 %v12825_v31  ;;  %v8975_v12 = vld [vmem:[%s12772_s2 + $0x24] ss:$16 sps:$4 sm:$0xff]   ;;  %v9006_v47 = vld [vmem:[%s12772_s2 + $0xc8] ss:$16 sps:$4 sm:$0xff]  }
 0x185   : > { %8654 = vmatprep.subr.bf16.mxu1 %v11016_v48  ;;  %v2564_v15 = vmax.f32 %v2548_v45, 0.0  ;;  %v9011_v8 = vld [vmem:[%s12772_s2 + $0xe4] ss:$16 sps:$4 sm:$0xff]   ;;  %v9012_v31 = vld [vmem:[%s12772_s2 + $0xe8] ss:$16 sps:$4 sm:$0xff]  }
 0x186   : > { %v8064_v60 = vpop.f32.mrb[20].mxu1  ;;  %v11141_v44 = vpack.c.bf16 %v2572_v29, %v2568_v43  ;;  %v9009_v29 = vld [vmem:[%s12772_s2 + $0xe0] ss:$16 sps:$4 sm:$0xff]  }
 0x187   : > { %v8065_v10 = vpop.f32.mrb[21].mxu1  ;;  %v11143_v16 = vpack.c.bf16 %v2564_v15, %v2560_v53  ;;  %8385 = vmatpush3.bf16.msra.mxu0 %v12826_v30  ;;  %v9015_v30 = vld [vmem:[%s12772_s2 + $0x100] ss:$16 sps:$4 sm:$0xff]  }
 0x188   : > { %8655 = vmatpush3.bf16.msra.mxu1 %v11016_v48  ;;  %v11150_v51 = vadd.f32 %v8065_v10, %v8064_v60  ;;  %v8067_v17 = vpop.f32.mrb[22].mxu1  ;;  %3388 = vmatprep.subr.bf16.mxu0 %v8966_v7  ;;  %v9014_v7 = vld [vmem:[%s12772_s2 + $0xec] ss:$16 sps:$4 sm:$0xff]  }
 0x189   : > { %3494 = vmatprep.subr.bf16.mxu1 %v8969_v13  ;;  %v8068_v49 = vpop.f32.mrb[23].mxu1 }
 0x18a   : > { %v11158_v48 = vadd.f32 %v8068_v49, %v8067_v17  ;;  %2441 = vmatmul.mubr.bf16.vlgmr.msra.gmra.mrb[64].mxu0 %v8959_v11 }
 0x18b   : > { %8657 = vmatmul.mubr.bf16.vlgmr.msra.gmra.mrb[68].mxu1 %v8963_v59  ;;  %3389 = vmatpush1.bf16.msra.mxu0 %v8964_v42 }
 0x18c   : > { %3495 = vmatpush1.bf16.msra.mxu1 %v8967_v5  ;;  %2448 = vmatprep.mubr.bf16.mxu0 %v8970_v1 }
 0x18d   : > { %3390 = vmatprep.subr.bf16.mxu0 %v8975_v12  ;;  %3496 = vmatprep.subr.bf16.mxu1 %v8978_v14  ;;  %v9018_v14 = vld [vmem:[%s12772_s2 + $0x108] ss:$16 sps:$4 sm:$0xff]  }
 0x18f   : > { %3391 = vmatpush1.bf16.msra.mxu0 %v8973_v9  ;;  %v9023_v9 = vld [vmem:[%s12772_s2 + $0x124] ss:$16 sps:$4 sm:$0xff]  }
 0x190   : > { %3497 = vmatpush1.bf16.msra.mxu1 %v8976_v52  ;;  %3392 = vmatprep.subr.bf16.mxu0 %v8981_v22  ;;  %v9026_v52 = vld [vmem:[%s12772_s2 + $0x12c] ss:$16 sps:$4 sm:$0xff]  }
 0x191   : > { %3498 = vmatprep.subr.bf16.mxu1 %v8984_v24 }
 0x192   : > { %2449 = vmatmul.mubr.bf16.gmra.mrb[68].mxu0 %v8972_v26 }
 0x193   : > { %3393 = vmatpush1.bf16.msra.mxu0 %v8979_v32 }
 0x194   : > { %3499 = vmatpush1.bf16.msra.mxu1 %v8982_v28  ;;  %3394 = vmatprep.subr.bf16.mxu0 %v8987_v58  ;;  %v9021_v58 = vld [vmem:[%s12772_s2 + $0x120] ss:$16 sps:$4 sm:$0xff]  }
 0x195   : > { %3500 = vmatprep.subr.bf16.mxu1 %v8990_v34  ;;  %v9024_v34 = vld [vmem:[%s12772_s2 + $0x128] ss:$16 sps:$4 sm:$0xff]  }
 0x197   : > { %3395 = vmatpush1.bf16.msra.mxu0 %v8985_v38 }
 0x198   : > { %3501 = vmatpush1.bf16.msra.mxu1 %v8988_v54  ;;  %3396 = vmatprep.subr.bf16.mxu0 %v8993_v40  ;;  %v9027_v54 = vld [vmem:[%s12772_s2 + $0x140] ss:$16 sps:$4 sm:$0xff]   ;;  %v9030_v40 = vld [vmem:[%s12772_s2 + $0x148] ss:$16 sps:$4 sm:$0xff]  }
 0x199   : > { %3502 = vmatprep.subr.bf16.mxu1 %v8996_v23  ;;  %v9035_v23 = vld [vmem:[%s12772_s2 + $0x164] ss:$16 sps:$4 sm:$0xff]  }
 0x19b   : > { %3397 = vmatpush1.bf16.msra.mxu0 %v8991_v27  ;;  %v9038_v27 = vld [vmem:[%s12772_s2 + $0x16c] ss:$16 sps:$4 sm:$0xff]  }
 0x19c   : > { %3503 = vmatpush1.bf16.msra.mxu1 %v8994_v35  ;;  %3398 = vmatprep.subr.bf16.mxu0 %v8999_v39  ;;  %v9033_v35 = vld [vmem:[%s12772_s2 + $0x160] ss:$16 sps:$4 sm:$0xff]   ;;  %v9036_v39 = vld [vmem:[%s12772_s2 + $0x168] ss:$16 sps:$4 sm:$0xff]  }
 0x19d   : > { %3504 = vmatprep.subr.bf16.mxu1 %v9002_v20  ;;  %v8086_v0 = vpop.f32.mrb[20].mxu0  ;;  %v9041_v20 = vld [vmem:[%s12772_s2 + $0x184] ss:$16 sps:$4 sm:$0xff]  }
 0x19e   : > { %v8114_v63 = vpop.f32.mrb[24].mxu1  ;;  %v8087_v21 = vpop.f32.mrb[21].mxu0 }
 0x19f   : > { %v8115_v25 = vpop.f32.mrb[25].mxu1  ;;  %v8088_v62 = vadd.f32 %v8087_v21, %v8086_v0  ;;  %v8089_v2 = vpop.f32.mrb[22].mxu0  ;;  %3399 = vmatpush1.bf16.msra.mxu0 %v8997_v19  ;;  %v9044_v19 = vld [vmem:[%s12772_s2 + $0x18c] ss:$16 sps:$4 sm:$0xff]   ;;  %v9045_v21 = vld [vmem:[%s12772_s2 + $0x1a0] ss:$16 sps:$4 sm:$0xff]  }
 0x1a0   : > { %v8116_v4 = vadd.f32 %v8115_v25, %v8114_v63  ;;  %v8117_v33 = vpop.f32.mrb[26].mxu1  ;;  %3505 = vmatpush1.bf16.msra.mxu1 %v9000_v55  ;;  %v8090_v6 = vpop.f32.mrb[23].mxu0  ;;  %3400 = vmatprep.subr.bf16.mxu0 %v9005_v57  ;;  %v9039_v55 = vld [vmem:[%s12772_s2 + $0x180] ss:$16 sps:$4 sm:$0xff]   ;;  %v9042_v57 = vld [vmem:[%s12772_s2 + $0x188] ss:$16 sps:$4 sm:$0xff]  }
 0x1a1   : > { %v8118_v46 = vpop.f32.mrb[27].mxu1  ;;  %3506 = vmatprep.subr.bf16.mxu1 %v9008_v61  ;;  %v1629_v13 = vadd.f32 %v8088_v62, %v11111_v3  ;;  %v8091_v43 = vadd.f32 %v8090_v6, %v8089_v2  ;;  %v9017_v3 = vld [vmem:[%s12772_s2 + $0x104] ss:$16 sps:$4 sm:$0xff]   ;;  %v9050_v0 = vld [vmem:[%s12772_s2 + $0x1ac] ss:$16 sps:$4 sm:$0xff]   ;;  %v2514_v63 = vsub.s32 4, %v11064_v18 }
 0x1a2   : > { %v8119_v45 = vadd.f32 %v8118_v46, %v8117_v33  ;;  %v9047_v61 = vld [vmem:[%s12772_s2 + $0x1a4] ss:$16 sps:$4 sm:$0xff]   ;;  %v9048_v25 = vld [vmem:[%s12772_s2 + $0x1a8] ss:$16 sps:$4 sm:$0xff]   ;;  %v9056_v2 = vld [vmem:[%s12772_s2 + $0x1cc] ss:$16 sps:$4 sm:$0xff]  }
 0x1a3   : > { %v1632_v50 = vadd.f32 %v8091_v43, %v11117_v41  ;;  %v11229_v53 = vadd.f32 %v8116_v4, %v1629_v13  ;;  %3401 = vmatpush1.bf16.msra.mxu0 %v9003_v37  ;;  %v9020_v41 = vld [vmem:[%s12772_s2 + $0x10c] ss:$16 sps:$4 sm:$0xff]   ;;  %v9053_v62 = vld [vmem:[%s12772_s2 + $0x1c4] ss:$16 sps:$4 sm:$0xff]   ;;  %v2515_v37 = vrot.slane %v11094_v36, %v2514_v63  ;;  %v9051_v13 = vld [vmem:[%s12772_s2 + $0x1c0] ss:$16 sps:$4 sm:$0xff]  }
 0x1a4   : > { %3507 = vmatpush1.bf16.msra.mxu1 %v9006_v47  ;;  %3402 = vmatprep.subr.bf16.mxu0 %v9011_v8  ;;  %v9054_v43 = vld [vmem:[%s12772_s2 + $0x1c8] ss:$16 sps:$4 sm:$0xff]   ;;  %v9059_v36 = vld [vmem:[%s12772_s2 + $0x1e4] ss:$16 sps:$4 sm:$0xff]  }
 0x1a5   : > { %3508 = vmatprep.subr.bf16.mxu1 %v9014_v7  ;;  %v11243_v11 = vadd.f32 %v8119_v45, %v1632_v50  ;;  %v8092_v59 = vpop.f32.mrb[24].mxu0 }
 0x1a6   : > { %v8120_v15 = vpop.f32.mrb[28].mxu1  ;;  %v8093_v42 = vpop.f32.mrb[25].mxu0 }
 0x1a7   : > { %v8121_v5 = vpop.f32.mrb[29].mxu1  ;;  %v8094_v60 = vadd.f32 %v8093_v42, %v8092_v59  ;;  %v8095_v1 = vpop.f32.mrb[26].mxu0  ;;  %3403 = vmatpush1.bf16.msra.mxu0 %v9009_v29  ;;  %v9062_v29 = vld [vmem:[%s12772_s2 + $0x1ec] ss:$16 sps:$4 sm:$0xff]   ;;  %v9057_v42 = vld [vmem:[%s12772_s2 + $0x1e0] ss:$16 sps:$4 sm:$0xff]  }
 0x1a8   : > { %v8122_v12 = vadd.f32 %v8121_v5, %v8120_v15  ;;  %v8123_v10 = vpop.f32.mrb[30].mxu1  ;;  %3509 = vmatpush1.bf16.msra.mxu1 %v9012_v31  ;;  %v8096_v17 = vpop.f32.mrb[27].mxu0  ;;  %3404 = vmatprep.subr.bf16.mxu0 %v9017_v3  ;;  %v9060_v5 = vld [vmem:[%s12772_s2 + $0x1e8] ss:$16 sps:$4 sm:$0xff]  }
 0x1a9   : > { %v8124_v49 = vpop.f32.mrb[31].mxu1  ;;  %3510 = vmatprep.subr.bf16.mxu1 %v9020_v41  ;;  %v1637_v22 = vadd.f32 %v8094_v60, %v11150_v51  ;;  %v8097_v24 = vadd.f32 %v8096_v17, %v8095_v1  ;;  %v9029_v51 = vld [vmem:[%s12772_s2 + $0x144] ss:$16 sps:$4 sm:$0xff]   ;;  %v2535_v41 = vrot.slane %v2515_v37, %v11075_v56  ;;  %v9098_v37 = vld [vmem:[%s12772_s2 + $0x2ac] ss:$16 sps:$4 sm:$0xff]  }
 0x1aa   : > { %v8125_v26 = vadd.f32 %v8124_v49, %v8123_v10 }
 0x1ab   : > { %v1640_v32 = vadd.f32 %v8097_v24, %v11158_v48  ;;  %v11259_v28 = vadd.f32 %v8122_v12, %v1637_v22  ;;  %3405 = vmatpush1.bf16.msra.mxu0 %v9015_v30  ;;  %v9032_v48 = vld [vmem:[%s12772_s2 + $0x14c] ss:$16 sps:$4 sm:$0xff]  }
 0x1ac   : > { %3511 = vmatpush1.bf16.msra.mxu1 %v9018_v14  ;;  %3406 = vmatprep.subr.bf16.mxu0 %v9023_v9 }
 0x1ad   : > { %3512 = vmatprep.subr.bf16.mxu1 %v9026_v52  ;;  %v11273_v38 = vadd.f32 %v8125_v26, %v1640_v32 }
 0x1af   : > { %3407 = vmatpush1.bf16.msra.mxu0 %v9021_v58 }
 0x1b0   : > { %3513 = vmatpush1.bf16.msra.mxu1 %v9024_v34  ;;  %3408 = vmatprep.subr.bf16.mxu0 %v9029_v51  ;;  %v9063_v34 = vld [vmem:[%s12772_s2 + $0x200] ss:$16 sps:$4 sm:$0xff]   ;;  %v9066_v51 = vld [vmem:[%s12772_s2 + $0x208] ss:$16 sps:$4 sm:$0xff]  }
 0x1b1   : > { %3514 = vmatprep.subr.bf16.mxu1 %v9032_v48  ;;  %v9071_v48 = vld [vmem:[%s12772_s2 + $0x224] ss:$16 sps:$4 sm:$0xff]  }
 0x1b3   : > { %3409 = vmatpush1.bf16.msra.mxu0 %v9027_v54 }
 0x1b4   : > { %3515 = vmatpush1.bf16.msra.mxu1 %v9030_v40  ;;  %3410 = vmatprep.subr.bf16.mxu0 %v9035_v23  ;;  %v9069_v23 = vld [vmem:[%s12772_s2 + $0x220] ss:$16 sps:$4 sm:$0xff]  }
 0x1b5   : > { %3516 = vmatprep.subr.bf16.mxu1 %v9038_v27  ;;  %v9072_v27 = vld [vmem:[%s12772_s2 + $0x228] ss:$16 sps:$4 sm:$0xff]  }
 0x1b7   : > { %3411 = vmatpush1.bf16.msra.mxu0 %v9033_v35  ;;  %v9077_v35 = vld [vmem:[%s12772_s2 + $0x244] ss:$16 sps:$4 sm:$0xff]  }
 0x1b8   : > { %3517 = vmatpush1.bf16.msra.mxu1 %v9036_v39  ;;  %3412 = vmatprep.subr.bf16.mxu0 %v9041_v20 }
 0x1b9   : > { %3518 = vmatprep.subr.bf16.mxu1 %v9044_v19 }
 0x1bb   : > { %3413 = vmatpush1.bf16.msra.mxu0 %v9039_v55  ;;  %v9075_v55 = vld [vmem:[%s12772_s2 + $0x240] ss:$16 sps:$4 sm:$0xff]  }
 0x1bc   : > { %3519 = vmatpush1.bf16.msra.mxu1 %v9042_v57  ;;  %3414 = vmatprep.subr.bf16.mxu0 %v9047_v61  ;;  %v9078_v57 = vld [vmem:[%s12772_s2 + $0x248] ss:$16 sps:$4 sm:$0xff]   ;;  %v9083_v61 = vld [vmem:[%s12772_s2 + $0x264] ss:$16 sps:$4 sm:$0xff]  }
 0x1bd   : > { %3520 = vmatprep.subr.bf16.mxu1 %v9050_v0  ;;  %v8142_v4 = vpop.f32.mrb[28].mxu0  ;;  %v9086_v0 = vld [vmem:[%s12772_s2 + $0x26c] ss:$16 sps:$4 sm:$0xff]  }
 0x1be   : > { %v8618_v33 = vpop.f32.mrb[32].mxu1  ;;  %v8143_v47 = vpop.f32.mrb[29].mxu0 }
 0x1bf   : > { %v1775_v6 = vpop.f32.mrb[33].mxu1  ;;  %v8144_v46 = vadd.f32 %v8143_v47, %v8142_v4  ;;  %v8145_v8 = vpop.f32.mrb[30].mxu0  ;;  %3415 = vmatpush1.bf16.msra.mxu0 %v9045_v21  ;;  %v9081_v21 = vld [vmem:[%s12772_s2 + $0x260] ss:$16 sps:$4 sm:$0xff]   ;;  %v9090_v4 = vld [vmem:[%s12772_s2 + $0x288] ss:$16 sps:$4 sm:$0xff]  }
 0x1c0   : > { %v8619_v7 = vpop.f32.mrb[34].mxu1  ;;  %3521 = vmatpush1.bf16.msra.mxu1 %v9048_v25  ;;  %v8146_v45 = vpop.f32.mrb[31].mxu0  ;;  %3416 = vmatprep.subr.bf16.mxu0 %v9053_v62  ;;  %v9084_v25 = vld [vmem:[%s12772_s2 + $0x268] ss:$16 sps:$4 sm:$0xff]   ;;  %v9089_v62 = vld [vmem:[%s12772_s2 + $0x284] ss:$16 sps:$4 sm:$0xff]  }
 0x1c1   : > { %v1778_v50 = vpop.f32.mrb[35].mxu1  ;;  %3522 = vmatprep.subr.bf16.mxu1 %v9056_v2  ;;  %v8147_v31 = vadd.f32 %v8146_v45, %v8145_v8  ;;  %v1727_v3 = vadd.f32 %v8144_v46, %v11229_v53  ;;  %v9065_v53 = vld [vmem:[%s12772_s2 + $0x204] ss:$16 sps:$4 sm:$0xff]   ;;  %v9087_v2 = vld [vmem:[%s12772_s2 + $0x280] ss:$16 sps:$4 sm:$0xff]  }
 0x1c3   : > { %v1776_v59 = vadd.f32 %v1775_v6, %v1727_v3  ;;  %v1730_v15 = vadd.f32 %v8147_v31, %v11243_v11  ;;  %3417 = vmatpush1.bf16.msra.mxu0 %v9051_v13  ;;  %v9068_v11 = vld [vmem:[%s12772_s2 + $0x20c] ss:$16 sps:$4 sm:$0xff]   ;;  %v9101_v3 = vld [vmem:[%s12772_s2 + $0x2c4] ss:$16 sps:$4 sm:$0xff]  }
 0x1c4   : > { %3523 = vmatpush1.bf16.msra.mxu1 %v9054_v43  ;;  %3418 = vmatprep.subr.bf16.mxu0 %v9059_v36  ;;  %v9096_v36 = vld [vmem:[%s12772_s2 + $0x2a8] ss:$16 sps:$4 sm:$0xff]  }
 0x1c5   : > { %3524 = vmatprep.subr.bf16.mxu1 %v9062_v29  ;;  %v2545_v60 = vadd.f32 %v2535_v41, %v1776_v59  ;;  %v1779_v1 = vadd.f32 %v1778_v50, %v1730_v15  ;;  %v8148_v12 = vpop.f32.mrb[32].mxu0  ;;  %v9093_v50 = vld [vmem:[%s12772_s2 + $0x2a0] ss:$16 sps:$4 sm:$0xff]  }
 0x1c6   : > { %v8149_v10 = vpop.f32.mrb[33].mxu0 }
 0x1c7   : > { %v2549_v30 = vadd.f32 %v2535_v41, %v1779_v1  ;;  %v8150_v14 = vadd.f32 %v8149_v10, %v8148_v12  ;;  %v8151_v17 = vpop.f32.mrb[34].mxu0  ;;  %3419 = vmatpush1.bf16.msra.mxu0 %v9057_v42  ;;  %v2561_v9 = vmax.f32 %v2545_v60, 0.0  ;;  %v9107_v60 = vld [vmem:[%s12772_s2 + $0x2e4] ss:$16 sps:$4 sm:$0xff]   ;;  %v9110_v1 = vld [vmem:[%s12772_s2 + $0x2ec] ss:$16 sps:$4 sm:$0xff]  }
 0x1c8   : > { %3525 = vmatpush1.bf16.msra.mxu1 %v9060_v5  ;;  %v8152_v49 = vpop.f32.mrb[35].mxu0  ;;  %3441 = vmatprep.subr.bf16.mxu0 %v9065_v53  ;;  %v9099_v53 = vld [vmem:[%s12772_s2 + $0x2c0] ss:$16 sps:$4 sm:$0xff]  }
 0x1c9   : > { %3547 = vmatprep.subr.bf16.mxu1 %v9068_v11  ;;  %v2565_v52 = vmax.f32 %v2549_v30, 0.0  ;;  %v1735_v22 = vadd.f32 %v8150_v14, %v11259_v28  ;;  %v8153_v24 = vadd.f32 %v8152_v49, %v8151_v17  ;;  %v9074_v28 = vld [vmem:[%s12772_s2 + $0x22c] ss:$16 sps:$4 sm:$0xff]   ;;  %v9102_v11 = vld [vmem:[%s12772_s2 + $0x2c8] ss:$16 sps:$4 sm:$0xff]  }
 0x1cb   : > { %v1784_v26 = vadd.f32 %v8618_v33, %v1735_v22  ;;  %v1738_v32 = vadd.f32 %v8153_v24, %v11273_v38  ;;  %v2577_v58 = vpack.c.bf16 %v2565_v52, %v2561_v9  ;;  %v9095_v33 = vld [vmem:[%s12772_s2 + $0x2a4] ss:$16 sps:$4 sm:$0xff]   ;;  %v9105_v22 = vld [vmem:[%s12772_s2 + $0x2e0] ss:$16 sps:$4 sm:$0xff]   ;;  %v9108_v24 = vld [vmem:[%s12772_s2 + $0x2e8] ss:$16 sps:$4 sm:$0xff]  }
 0x1cd   : > { %v1787_v54 = vadd.f32 %v8619_v7, %v1738_v32  ;;  %3420 = vmatprep.mubr.bf16.mxu0 %v2577_v58  ;;  %3526 = vmatprep.mubr.bf16.mxu1 %v2577_v58  ;;  %v2553_v38 = vadd.f32 %v2535_v41, %v1784_v26  ;;  %v9113_v58 = vld [vmem:[%s12772_s2 + $0x304] ss:$16 sps:$4 sm:$0xff]  }
 0x1ce   : > { %3421 = vmatmul.mubr.bf16.vlgmr.msra.gmra.mrb[72].mxu0 %v11143_v16  ;;  %3527 = vmatmul.mubr.bf16.vlgmr.msra.gmra.mrb[72].mxu1 %v11143_v16  ;;  %v9080_v16 = vld [vmem:[%s12772_s2 + $0x24c] ss:$16 sps:$4 sm:$0xff]  }
 0x1cf   : > { %v2557_v40 = vadd.f32 %v2535_v41, %v1787_v54  ;;  %3442 = vmatpush1.bf16.msra.mxu0 %v9063_v34  ;;  %3548 = vmatpush1.bf16.msra.mxu1 %v9066_v51  ;;  %v2569_v39 = vmax.f32 %v2553_v38, 0.0  ;;  %v9104_v41 = vld [vmem:[%s12772_s2 + $0x2cc] ss:$16 sps:$4 sm:$0xff]   ;;  %v9111_v38 = vld [vmem:[%s12772_s2 + $0x300] ss:$16 sps:$4 sm:$0xff]  }
 0x1d0   : > { %3443 = vmatprep.subr.bf16.mxu0 %v9071_v48  ;;  %3549 = vmatprep.subr.bf16.mxu1 %v9074_v28  ;;  %v9116_v34 = vld [vmem:[%s12772_s2 + $0x30c] ss:$16 sps:$4 sm:$0xff]  }
 0x1d1   : > { %v2573_v20 = vmax.f32 %v2557_v40, 0.0  ;;  %v9114_v40 = vld [vmem:[%s12772_s2 + $0x308] ss:$16 sps:$4 sm:$0xff]  }
 0x1d3   : > { %v2581_v19 = vpack.c.bf16 %v2573_v20, %v2569_v39  ;;  %3444 = vmatpush1.bf16.msra.mxu0 %v9069_v23  ;;  %3550 = vmatpush1.bf16.msra.mxu1 %v9072_v27  ;;  %v9119_v23 = vld [vmem:[%s12772_s2 + $0x324] ss:$16 sps:$4 sm:$0xff]   ;;  %v9122_v27 = vld [vmem:[%s12772_s2 + $0x32c] ss:$16 sps:$4 sm:$0xff]  }
 0x1d4   : > { %3445 = vmatprep.subr.bf16.mxu0 %v9077_v35  ;;  %3551 = vmatprep.subr.bf16.mxu1 %v9080_v16  ;;  %v9117_v35 = vld [vmem:[%s12772_s2 + $0x320] ss:$16 sps:$4 sm:$0xff]   ;;  %v9120_v16 = vld [vmem:[%s12772_s2 + $0x328] ss:$16 sps:$4 sm:$0xff]   ;;  %v9125_v39 = vld [vmem:[%s12772_s2 + $0x344] ss:$16 sps:$4 sm:$0xff]  }
 0x1d5   : > { %3430 = vmatprep.mubr.bf16.mxu0 %v2581_v19  ;;  %3536 = vmatprep.mubr.bf16.mxu1 %v2581_v19  ;;  %v9128_v20 = vld [vmem:[%s12772_s2 + $0x34c] ss:$16 sps:$4 sm:$0xff]   ;;  %v9123_v19 = vld [vmem:[%s12772_s2 + $0x340] ss:$16 sps:$4 sm:$0xff]  }
 0x1d6   : > { %3431 = vmatmul.mubr.bf16.gmra.mrb[76].mxu0 %v11141_v44  ;;  %3537 = vmatmul.mubr.bf16.gmra.mrb[76].mxu1 %v11141_v44  ;;  %v9092_v44 = vld [vmem:[%s12772_s2 + $0x28c] ss:$16 sps:$4 sm:$0xff]  }
 0x1d7   : > { %3446 = vmatpush1.bf16.msra.mxu0 %v9075_v55  ;;  %3552 = vmatpush1.bf16.msra.mxu1 %v9078_v57  ;;  %v9126_v55 = vld [vmem:[%s12772_s2 + $0x348] ss:$16 sps:$4 sm:$0xff]   ;;  %v9131_v57 = vld [vmem:[%s12772_s2 + $0x364] ss:$16 sps:$4 sm:$0xff]  }
 0x1d8   : > { %3447 = vmatprep.subr.bf16.mxu0 %v9083_v61  ;;  %3553 = vmatprep.subr.bf16.mxu1 %v9086_v0  ;;  %v9134_v61 = vld [vmem:[%s12772_s2 + $0x36c] ss:$16 sps:$4 sm:$0xff]   ;;  %v9129_v0 = vld [vmem:[%s12772_s2 + $0x360] ss:$16 sps:$4 sm:$0xff]  }
 0x1db   : > { %3448 = vmatpush1.bf16.msra.mxu0 %v9081_v21  ;;  %3554 = vmatpush1.bf16.msra.mxu1 %v9084_v25  ;;  %v9132_v21 = vld [vmem:[%s12772_s2 + $0x368] ss:$16 sps:$4 sm:$0xff]   ;;  %v9137_v25 = vld [vmem:[%s12772_s2 + $0x384] ss:$16 sps:$4 sm:$0xff]  }
 0x1dc   : > { %3449 = vmatprep.subr.bf16.mxu0 %v9089_v62  ;;  %3555 = vmatprep.subr.bf16.mxu1 %v9092_v44  ;;  %v9140_v62 = vld [vmem:[%s12772_s2 + $0x38c] ss:$16 sps:$4 sm:$0xff]   ;;  %v9135_v44 = vld [vmem:[%s12772_s2 + $0x380] ss:$16 sps:$4 sm:$0xff]  }
 0x1dd   : > { %v8180_v47 = vpop.f32.mrb[36].mxu0 }
 0x1de   : > { %v8208_v6 = vpop.f32.mrb[36].mxu1  ;;  %v8181_v46 = vpop.f32.mrb[37].mxu0 }
 0x1df   : > { %v8209_v8 = vpop.f32.mrb[37].mxu1  ;;  %v8182_v7 = vadd.f32 %v8181_v46, %v8180_v47  ;;  %v8183_v43 = vpop.f32.mrb[38].mxu0  ;;  %3450 = vmatpush1.bf16.msra.mxu0 %v9087_v2  ;;  %3556 = vmatpush1.bf16.msra.mxu1 %v9090_v4  ;;  %v9138_v2 = vld [vmem:[%s12772_s2 + $0x388] ss:$16 sps:$4 sm:$0xff]   ;;  %v9143_v4 = vld [vmem:[%s12772_s2 + $0x3a4] ss:$16 sps:$4 sm:$0xff]  }
 0x1e0   : > { %v8210_v13 = vadd.f32 %v8209_v8, %v8208_v6  ;;  %v8211_v45 = vpop.f32.mrb[38].mxu1  ;;  %v8184_v29 = vpop.f32.mrb[39].mxu0  ;;  %3451 = vmatprep.subr.bf16.mxu0 %v9095_v33  ;;  %3557 = vmatprep.subr.bf16.mxu1 %v9098_v37  ;;  %v9146_v33 = vld [vmem:[%s12772_s2 + $0x3ac] ss:$16 sps:$4 sm:$0xff]  }
 0x1e1   : > { %v8212_v31 = vpop.f32.mrb[39].mxu1  ;;  %v8185_v15 = vadd.f32 %v8184_v29, %v8183_v43 }
 0x1e2   : > { %v11432_v59 = vadd.f32 %v8210_v13, %v8182_v7  ;;  %v8213_v42 = vadd.f32 %v8212_v31, %v8211_v45  ;;  %v9141_v45 = vld [vmem:[%s12772_s2 + $0x3a0] ss:$16 sps:$4 sm:$0xff]   ;;  %v9149_v31 = vld [vmem:[%s12772_s2 + $0x3c4] ss:$16 sps:$4 sm:$0xff]  }
 0x1e3   : > { %3452 = vmatpush1.bf16.msra.mxu0 %v9093_v50  ;;  %3558 = vmatpush1.bf16.msra.mxu1 %v9096_v36  ;;  %v9144_v50 = vld [vmem:[%s12772_s2 + $0x3a8] ss:$16 sps:$4 sm:$0xff]  }
 0x1e4   : > { %v11434_v5 = vadd.f32 %v8213_v42, %v8185_v15  ;;  %3453 = vmatprep.subr.bf16.mxu0 %v9101_v3  ;;  %3559 = vmatprep.subr.bf16.mxu1 %v9104_v41  ;;  %v9152_v3 = vld [vmem:[%s12772_s2 + $0x3cc] ss:$16 sps:$4 sm:$0xff]  }
 0x1e5   : > { %v8186_v12 = vpop.f32.mrb[40].mxu0 }
 0x1e6   : > { %v8214_v10 = vpop.f32.mrb[40].mxu1  ;;  %v8187_v30 = vpop.f32.mrb[41].mxu0 }
 0x1e7   : > { %v8215_v14 = vpop.f32.mrb[41].mxu1  ;;  %v8188_v17 = vadd.f32 %v8187_v30, %v8186_v12  ;;  %v8189_v9 = vpop.f32.mrb[42].mxu0  ;;  %3454 = vmatpush1.bf16.msra.mxu0 %v9099_v53  ;;  %3560 = vmatpush1.bf16.msra.mxu1 %v9102_v11 }
 0x1e8   : > { %v8216_v49 = vadd.f32 %v8215_v14, %v8214_v10  ;;  %v8217_v52 = vpop.f32.mrb[42].mxu1  ;;  %v8190_v26 = vpop.f32.mrb[43].mxu0  ;;  %3455 = vmatprep.subr.bf16.mxu0 %v9107_v60  ;;  %3561 = vmatprep.subr.bf16.mxu1 %v9110_v1  ;;  %v9147_v60 = vld [vmem:[%s12772_s2 + $0x3c0] ss:$16 sps:$4 sm:$0xff]   ;;  %v9150_v1 = vld [vmem:[%s12772_s2 + $0x3c8] ss:$16 sps:$4 sm:$0xff]  }
 0x1e9   : > { %v8218_v32 = vpop.f32.mrb[43].mxu1  ;;  %v8191_v48 = vadd.f32 %v8190_v26, %v8189_v9  ;;  %v9156_v26 = vld [vmem:[%s12772_s2 + $0x3e8] ss:$16 sps:$4 sm:$0xff]  }
 0x1ea   : > { %v11460_v51 = vadd.f32 %v8216_v49, %v8188_v17  ;;  %v8219_v28 = vadd.f32 %v8218_v32, %v8217_v52 }
 0x1eb   : > { %3456 = vmatpush1.bf16.msra.mxu0 %v9105_v22  ;;  %3562 = vmatpush1.bf16.msra.mxu1 %v9108_v24  ;;  %v9153_v24 = vld [vmem:[%s12772_s2 + $0x3e0] ss:$16 sps:$4 sm:$0xff]  }
 0x1ec   : > { %v11462_v54 = vadd.f32 %v8219_v28, %v8191_v48  ;;  %3457 = vmatprep.subr.bf16.mxu0 %v9113_v58  ;;  %3563 = vmatprep.subr.bf16.mxu1 %v9116_v34  ;;  %v9161_v34 = vld [vmem:[%s12772_s2 + $0x404] ss:$16 sps:$4 sm:$0xff]   ;;  %v9164_v48 = vld [vmem:[%s12772_s2 + $0x40c] ss:$16 sps:$4 sm:$0xff]  }
 0x1ef   : > { %3458 = vmatpush1.bf16.msra.mxu0 %v9111_v38  ;;  %3564 = vmatpush1.bf16.msra.mxu1 %v9114_v40 }
 0x1f0   : > { %3459 = vmatprep.subr.bf16.mxu0 %v9119_v23  ;;  %3565 = vmatprep.subr.bf16.mxu1 %v9122_v27 }
 0x1f3   : > { %3460 = vmatpush1.bf16.msra.mxu0 %v9117_v35  ;;  %3566 = vmatpush1.bf16.msra.mxu1 %v9120_v16  ;;  %v11567_v16 = vld [vmem:[%s12775_s5 + $0x8] sm:$0xff] }
 0x1f4   : > { %3461 = vmatprep.subr.bf16.mxu0 %v9125_v39  ;;  %3567 = vmatprep.subr.bf16.mxu1 %v9128_v20  ;;  %v2519_v39 = vrot.slane %v11567_v16, %v11075_v56 }
 0x1f7   : > { %3462 = vmatpush1.bf16.msra.mxu0 %v9123_v19  ;;  %3568 = vmatpush1.bf16.msra.mxu1 %v9126_v55 }
 0x1f8   : > { %3463 = vmatprep.subr.bf16.mxu0 %v9131_v57  ;;  %3569 = vmatprep.subr.bf16.mxu1 %v9134_v61 }
 0x1fb   : > { %3464 = vmatpush1.bf16.msra.mxu0 %v9129_v0  ;;  %3570 = vmatpush1.bf16.msra.mxu1 %v9132_v21 }
 0x1fc   : > { %3465 = vmatprep.subr.bf16.mxu0 %v9137_v25  ;;  %3571 = vmatprep.subr.bf16.mxu1 %v9140_v62 }
 0x1fd   : > { %v8236_v37 = vpop.f32.mrb[44].mxu0 }
 0x1fe   : > { %v8264_v47 = vpop.f32.mrb[44].mxu1  ;;  %v8237_v6 = vpop.f32.mrb[45].mxu0 }
 0x1ff   : > { %v8265_v46 = vpop.f32.mrb[45].mxu1  ;;  %v8238_v8 = vadd.f32 %v8237_v6, %v8236_v37  ;;  %v8239_v7 = vpop.f32.mrb[46].mxu0  ;;  %3466 = vmatpush1.bf16.msra.mxu0 %v9135_v44  ;;  %3572 = vmatpush1.bf16.msra.mxu1 %v9138_v2 }
 0x200   : > { %v8266_v13 = vadd.f32 %v8265_v46, %v8264_v47  ;;  %v8267_v43 = vpop.f32.mrb[46].mxu1  ;;  %v8240_v36 = vpop.f32.mrb[47].mxu0  ;;  %3467 = vmatprep.subr.bf16.mxu0 %v9143_v4  ;;  %3573 = vmatprep.subr.bf16.mxu1 %v9146_v33 }
 0x201   : > { %v8268_v29 = vpop.f32.mrb[47].mxu1  ;;  %v2036_v41 = vadd.f32 %v8238_v8, %v11432_v59  ;;  %v8241_v15 = vadd.f32 %v8240_v36, %v8239_v7  ;;  %v9155_v59 = vld [vmem:[%s12772_s2 + $0x3e4] ss:$16 sps:$4 sm:$0xff]  }
 0x202   : > { %v8269_v42 = vadd.f32 %v8268_v29, %v8267_v43 }
 0x203   : > { %v2039_v53 = vadd.f32 %v8241_v15, %v11434_v5  ;;  %v2085_v11 = vadd.f32 %v8266_v13, %v2036_v41  ;;  %3468 = vmatpush1.bf16.msra.mxu0 %v9141_v45  ;;  %3574 = vmatpush1.bf16.msra.mxu1 %v9144_v50  ;;  %v9158_v5 = vld [vmem:[%s12772_s2 + $0x3ec] ss:$16 sps:$4 sm:$0xff]  }
 0x204   : > { %3469 = vmatprep.subr.bf16.mxu0 %v9149_v31  ;;  %3575 = vmatprep.subr.bf16.mxu1 %v9152_v3 }
 0x205   : > { %v8242_v12 = vpop.f32.mrb[48].mxu0  ;;  %v2088_v30 = vadd.f32 %v8269_v42, %v2039_v53 }
 0x206   : > { %v8270_v10 = vpop.f32.mrb[48].mxu1  ;;  %v8243_v14 = vpop.f32.mrb[49].mxu0 }
 0x207   : > { %v8271_v17 = vpop.f32.mrb[49].mxu1  ;;  %v8244_v49 = vadd.f32 %v8243_v14, %v8242_v12  ;;  %v8245_v9 = vpop.f32.mrb[50].mxu0  ;;  %3470 = vmatpush1.bf16.msra.mxu0 %v9147_v60  ;;  %3576 = vmatpush1.bf16.msra.mxu1 %v9150_v1 }
 0x208   : > { %v8272_v52 = vadd.f32 %v8271_v17, %v8270_v10  ;;  %v8273_v22 = vpop.f32.mrb[50].mxu1  ;;  %v8246_v32 = vpop.f32.mrb[51].mxu0  ;;  %3471 = vmatprep.subr.bf16.mxu0 %v9155_v59  ;;  %3577 = vmatprep.subr.bf16.mxu1 %v9158_v5 }
 0x209   : > { %v8274_v58 = vpop.f32.mrb[51].mxu1  ;;  %v2044_v28 = vadd.f32 %v8244_v49, %v11460_v51  ;;  %v8247_v38 = vadd.f32 %v8246_v32, %v8245_v9  ;;  %v2539_v51 = vrot.slane %v2519_v39, %v11075_v56 }
 0x20a   : > { %v8275_v40 = vadd.f32 %v8274_v58, %v8273_v22 }
 0x20b   : > { %v2047_v23 = vadd.f32 %v8247_v38, %v11462_v54  ;;  %v2093_v27 = vadd.f32 %v8272_v52, %v2044_v28  ;;  %3472 = vmatpush1.bf16.msra.mxu0 %v9153_v24  ;;  %3578 = vmatpush1.bf16.msra.mxu1 %v9156_v26 }
 0x20c   : > { %4429 = vmatprep.subr.bf16.mxu0 %v9161_v34  ;;  %4535 = vmatprep.subr.bf16.mxu1 %v9164_v48 }
 0x20d   : > { %v2096_v35 = vadd.f32 %v8275_v40, %v2047_v23 }
 0x21d   : > { %v8638_v20 = vpop.f32.mrb[52].mxu0 }
 0x21e   : > { %v8302_v19 = vpop.f32.mrb[52].mxu1  ;;  %v2142_v55 = vadd.f32 %v8638_v20, %v2093_v27  ;;  %v2133_v54 = vpop.f32.mrb[53].mxu0 }
 0x21f   : > { %v8303_v57 = vpop.f32.mrb[53].mxu1  ;;  %v2134_v61 = vadd.f32 %v2133_v54, %v2085_v11  ;;  %v8639_v0 = vpop.f32.mrb[54].mxu0 }
 0x220   : > { %v8304_v21 = vadd.f32 %v8303_v57, %v8302_v19  ;;  %v8305_v25 = vpop.f32.mrb[54].mxu1  ;;  %v2554_v62 = vadd.f32 %v2539_v51, %v2142_v55  ;;  %v2145_v44 = vadd.f32 %v8639_v0, %v2096_v35  ;;  %v2136_v2 = vpop.f32.mrb[55].mxu0  ;;  %v2523_v57 = vrot.slane %v11567_v16, %v2514_v63 }
 0x221   : > { %v8306_v4 = vpop.f32.mrb[55].mxu1  ;;  %v2546_v33 = vadd.f32 %v2539_v51, %v2134_v61  ;;  %v2137_v37 = vadd.f32 %v2136_v2, %v2088_v30 }
 0x222   : > { %v8307_v47 = vadd.f32 %v8306_v4, %v8305_v25  ;;  %v2558_v6 = vadd.f32 %v2539_v51, %v2145_v44  ;;  %v2570_v8 = vmax.f32 %v2554_v62, 0.0 }
 0x223   : > { %v2550_v46 = vadd.f32 %v2539_v51, %v2137_v37  ;;  %v2562_v13 = vmax.f32 %v2546_v33, 0.0  ;;  %v2543_v33 = vrot.slane %v2523_v57, %v11075_v56  ;;  %v9159_v56 = vld [vmem:[%s12772_s2 + $0x400] ss:$16 sps:$4 sm:$0xff]  }
 0x224   : > { %v2574_v7 = vmax.f32 %v2558_v6, 0.0  ;;  %v9201_v57 = vld [vmem:[%s12772_s2 + $0x4e0] ss:$16 sps:$4 sm:$0xff]  }
 0x225   : > { %v2566_v43 = vmax.f32 %v2550_v46, 0.0 }
 0x226   : > { %v8308_v45 = vpop.f32.mrb[56].mxu1  ;;  %v11572_v36 = vpack.c.bf16 %v2574_v7, %v2570_v8 }
 0x227   : > { %v8309_v50 = vpop.f32.mrb[57].mxu1  ;;  %v11574_v29 = vpack.c.bf16 %v2566_v43, %v2562_v13 }
 0x228   : > { %v8310_v31 = vadd.f32 %v8309_v50, %v8308_v45  ;;  %v8311_v3 = vpop.f32.mrb[58].mxu1 }
 0x229   : > { %v8312_v41 = vpop.f32.mrb[59].mxu1 }
 0x22a   : > { %v8313_v15 = vadd.f32 %v8312_v41, %v8311_v3 }
 0x23d   : > { %v8330_v42 = vpop.f32.mrb[56].mxu0 }
 0x23e   : > { %v8358_v53 = vpop.f32.mrb[60].mxu1  ;;  %v8331_v11 = vpop.f32.mrb[57].mxu0 }
 0x23f   : > { %v8359_v60 = vpop.f32.mrb[61].mxu1  ;;  %v8332_v1 = vadd.f32 %v8331_v11, %v8330_v42  ;;  %v8333_v59 = vpop.f32.mrb[58].mxu0 }
 0x240   : > { %v8360_v5 = vadd.f32 %v8359_v60, %v8358_v53  ;;  %v8361_v12 = vpop.f32.mrb[62].mxu1  ;;  %v8334_v10 = vpop.f32.mrb[59].mxu0  ;;  %v9162_v60 = vld [vmem:[%s12772_s2 + $0x408] ss:$16 sps:$4 sm:$0xff]  }
 0x241   : > { %v8362_v30 = vpop.f32.mrb[63].mxu1  ;;  %v2345_v14 = vadd.f32 %v8332_v1, %v8304_v21  ;;  %v8335_v17 = vadd.f32 %v8334_v10, %v8333_v59  ;;  %v9167_v1 = vld [vmem:[%s12772_s2 + $0x424] ss:$16 sps:$4 sm:$0xff]   ;;  %v9170_v59 = vld [vmem:[%s12772_s2 + $0x42c] ss:$16 sps:$4 sm:$0xff]  }
 0x242   : > { %v8363_v49 = vadd.f32 %v8362_v30, %v8361_v12  ;;  %v9165_v30 = vld [vmem:[%s12772_s2 + $0x420] ss:$16 sps:$4 sm:$0xff]  }
 0x243   : > { %v2348_v9 = vadd.f32 %v8335_v17, %v8307_v47  ;;  %v2394_v52 = vadd.f32 %v8360_v5, %v2345_v14  ;;  %v9168_v14 = vld [vmem:[%s12772_s2 + $0x428] ss:$16 sps:$4 sm:$0xff]   ;;  %v9173_v17 = vld [vmem:[%s12772_s2 + $0x444] ss:$16 sps:$4 sm:$0xff]  }
 0x245   : > { %v2397_v22 = vadd.f32 %v8363_v49, %v2348_v9  ;;  %v8336_v24 = vpop.f32.mrb[60].mxu0 }
 0x246   : > { %v8364_v26 = vpop.f32.mrb[64].mxu1  ;;  %v8337_v32 = vpop.f32.mrb[61].mxu0 }
 0x247   : > { %v8365_v58 = vpop.f32.mrb[65].mxu1  ;;  %v8338_v34 = vadd.f32 %v8337_v32, %v8336_v24  ;;  %v8339_v48 = vpop.f32.mrb[62].mxu0  ;;  %v9174_v24 = vld [vmem:[%s12772_s2 + $0x448] ss:$16 sps:$4 sm:$0xff]   ;;  %v9182_v32 = vld [vmem:[%s12772_s2 + $0x46c] ss:$16 sps:$4 sm:$0xff]  }
 0x248   : > { %v8366_v28 = vadd.f32 %v8365_v58, %v8364_v26  ;;  %v8367_v38 = vpop.f32.mrb[66].mxu1  ;;  %v8340_v40 = vpop.f32.mrb[63].mxu0  ;;  %v9179_v26 = vld [vmem:[%s12772_s2 + $0x464] ss:$16 sps:$4 sm:$0xff]   ;;  %v9177_v58 = vld [vmem:[%s12772_s2 + $0x460] ss:$16 sps:$4 sm:$0xff]  }
 0x249   : > { %v8368_v23 = vpop.f32.mrb[67].mxu1  ;;  %v2353_v27 = vadd.f32 %v8338_v34, %v8310_v31  ;;  %v8341_v35 = vadd.f32 %v8340_v40, %v8339_v48  ;;  %v9180_v34 = vld [vmem:[%s12772_s2 + $0x468] ss:$16 sps:$4 sm:$0xff]   ;;  %v9185_v48 = vld [vmem:[%s12772_s2 + $0x484] ss:$16 sps:$4 sm:$0xff]  }
 0x24a   : > { %v8369_v39 = vadd.f32 %v8368_v23, %v8367_v38  ;;  %v9186_v38 = vld [vmem:[%s12772_s2 + $0x488] ss:$16 sps:$4 sm:$0xff]   ;;  %v9191_v40 = vld [vmem:[%s12772_s2 + $0x4a4] ss:$16 sps:$4 sm:$0xff]   ;;  %v9194_v23 = vld [vmem:[%s12772_s2 + $0x4ac] ss:$16 sps:$4 sm:$0xff]  }
 0x24b   : > { %v2356_v51 = vadd.f32 %v8341_v35, %v8313_v15  ;;  %v2402_v20 = vadd.f32 %v8366_v28, %v2353_v27  ;;  %v9183_v28 = vld [vmem:[%s12772_s2 + $0x480] ss:$16 sps:$4 sm:$0xff]   ;;  %v9192_v35 = vld [vmem:[%s12772_s2 + $0x4a8] ss:$16 sps:$4 sm:$0xff]  }
 0x24c   : > { %v9189_v27 = vld [vmem:[%s12772_s2 + $0x4a0] ss:$16 sps:$4 sm:$0xff]  }
 0x24d   : > { %v2405_v19 = vadd.f32 %v8369_v39, %v2356_v51  ;;  %v9197_v39 = vld [vmem:[%s12772_s2 + $0x4c4] ss:$16 sps:$4 sm:$0xff]   ;;  %v9200_v51 = vld [vmem:[%s12772_s2 + $0x4cc] ss:$16 sps:$4 sm:$0xff]  }
 0x25d   : > { %v8386_v55 = vpop.f32.mrb[64].mxu0 }
 0x25e   : > { %v8658_v54 = vpop.f32.mrb[68].mxu1  ;;  %v8387_v61 = vpop.f32.mrb[65].mxu0 }
 0x25f   : > { %v2491_v0 = vpop.f32.mrb[69].mxu1  ;;  %v8388_v21 = vadd.f32 %v8387_v61, %v8386_v55  ;;  %v8389_v25 = vpop.f32.mrb[66].mxu0  ;;  %v9203_v55 = vld [vmem:[%s12772_s2 + $0x4e4] ss:$16 sps:$4 sm:$0xff]   ;;  %v9204_v61 = vld [vmem:[%s12772_s2 + $0x4e8] ss:$16 sps:$4 sm:$0xff]  }
 0x260   : > { %v8659_v62 = vpop.f32.mrb[70].mxu1  ;;  %v8390_v44 = vpop.f32.mrb[67].mxu0 }
 0x261   : > { %v2494_v2 = vpop.f32.mrb[71].mxu1  ;;  %v2443_v4 = vadd.f32 %v8388_v21, %v2394_v52  ;;  %v8391_v37 = vadd.f32 %v8390_v44, %v8389_v25  ;;  %v9212_v21 = vld [vmem:[%s12772_s2 + $0x50c] ss:$16 sps:$4 sm:$0xff]   ;;  %v9207_v25 = vld [vmem:[%s12772_s2 + $0x500] ss:$16 sps:$4 sm:$0xff]  }
 0x262   : > { %v9215_v44 = vld [vmem:[%s12772_s2 + $0x524] ss:$16 sps:$4 sm:$0xff]  }
 0x263   : > { %v2492_v47 = vadd.f32 %v2491_v0, %v2443_v4  ;;  %v2446_v6 = vadd.f32 %v8391_v37, %v2397_v22  ;;  %v9171_v22 = vld [vmem:[%s12772_s2 + $0x440] ss:$16 sps:$4 sm:$0xff]   ;;  %v9209_v0 = vld [vmem:[%s12772_s2 + $0x504] ss:$16 sps:$4 sm:$0xff]  }
 0x264   : > { %v9213_v4 = vld [vmem:[%s12772_s2 + $0x520] ss:$16 sps:$4 sm:$0xff]   ;;  %v9221_v37 = vld [vmem:[%s12772_s2 + $0x544] ss:$16 sps:$4 sm:$0xff]  }
 0x265   : > { %v2547_v46 = vadd.f32 %v2543_v33, %v2492_v47  ;;  %v2495_v8 = vadd.f32 %v2494_v2, %v2446_v6  ;;  %v8392_v7 = vpop.f32.mrb[68].mxu0  ;;  %v9218_v2 = vld [vmem:[%s12772_s2 + $0x52c] ss:$16 sps:$4 sm:$0xff]   ;;  %v9219_v6 = vld [vmem:[%s12772_s2 + $0x540] ss:$16 sps:$4 sm:$0xff]  }
 0x266   : > { %v8393_v13 = vpop.f32.mrb[69].mxu0  ;;  %v9224_v47 = vld [vmem:[%s12772_s2 + $0x54c] ss:$16 sps:$4 sm:$0xff]  }
 0x267   : > { %v2551_v43 = vadd.f32 %v2543_v33, %v2495_v8  ;;  %v8394_v45 = vadd.f32 %v8393_v13, %v8392_v7  ;;  %v8395_v63 = vpop.f32.mrb[70].mxu0  ;;  %v2563_v31 = vmax.f32 %v2547_v46, 0.0  ;;  %v9222_v46 = vld [vmem:[%s12772_s2 + $0x548] ss:$16 sps:$4 sm:$0xff]   ;;  %v9227_v8 = vld [vmem:[%s12772_s2 + $0x564] ss:$16 sps:$4 sm:$0xff]  }
 0x268   : > { %v8396_v50 = vpop.f32.mrb[71].mxu0  ;;  %v9230_v7 = vld [vmem:[%s12772_s2 + $0x56c] ss:$16 sps:$4 sm:$0xff]   ;;  %v9225_v13 = vld [vmem:[%s12772_s2 + $0x560] ss:$16 sps:$4 sm:$0xff]  }
 0x269   : > { %v2567_v3 = vmax.f32 %v2551_v43, 0.0  ;;  %v2451_v41 = vadd.f32 %v8394_v45, %v2402_v20  ;;  %v8397_v15 = vadd.f32 %v8396_v50, %v8395_v63  ;;  %v9195_v20 = vld [vmem:[%s12772_s2 + $0x4c0] ss:$16 sps:$4 sm:$0xff]   ;;  %v9228_v43 = vld [vmem:[%s12772_s2 + $0x568] ss:$16 sps:$4 sm:$0xff]  }
 0x26a   : > { %v9233_v45 = vld [vmem:[%s12772_s2 + $0x584] ss:$16 sps:$4 sm:$0xff]   ;;  %v9236_v63 = vld [vmem:[%s12772_s2 + $0x58c] ss:$16 sps:$4 sm:$0xff]   ;;  %v9231_v50 = vld [vmem:[%s12772_s2 + $0x580] ss:$16 sps:$4 sm:$0xff]  }
 0x26b   : > { %v2500_v42 = vadd.f32 %v8658_v54, %v2451_v41  ;;  %v2454_v53 = vadd.f32 %v8397_v15, %v2405_v19  ;;  %v2579_v11 = vpack.c.bf16 %v2567_v3, %v2563_v31  ;;  %v9198_v19 = vld [vmem:[%s12772_s2 + $0x4c8] ss:$16 sps:$4 sm:$0xff]   ;;  %v9206_v54 = vld [vmem:[%s12772_s2 + $0x4ec] ss:$16 sps:$4 sm:$0xff]   ;;  %v9239_v3 = vld [vmem:[%s12772_s2 + $0x5a4] ss:$16 sps:$4 sm:$0xff]  }
 0x26c   : > { %v9234_v31 = vld [vmem:[%s12772_s2 + $0x588] ss:$16 sps:$4 sm:$0xff]   ;;  %v9242_v41 = vld [vmem:[%s12772_s2 + $0x5ac] ss:$16 sps:$4 sm:$0xff]   ;;  %v9237_v15 = vld [vmem:[%s12772_s2 + $0x5a0] ss:$16 sps:$4 sm:$0xff]  }
 0x26d   : > { %v2503_v5 = vadd.f32 %v8659_v62, %v2454_v53  ;;  %3473 = vmatprep.mubr.bf16.mxu0 %v2579_v11  ;;  %3579 = vmatprep.mubr.bf16.mxu1 %v2579_v11  ;;  %v2555_v12 = vadd.f32 %v2543_v33, %v2500_v42  ;;  %v9210_v62 = vld [vmem:[%s12772_s2 + $0x508] ss:$16 sps:$4 sm:$0xff]   ;;  %v9245_v53 = vld [vmem:[%s12772_s2 + $0x5c4] ss:$16 sps:$4 sm:$0xff]   ;;  %v9248_v11 = vld [vmem:[%s12772_s2 + $0x5cc] ss:$16 sps:$4 sm:$0xff]  }
 0x26e   : > { %3474 = vmatmul.mubr.bf16.vlgmr.msra.gmra.mrb[72].mxu0 %v11574_v29  ;;  %3580 = vmatmul.mubr.bf16.vlgmr.msra.gmra.mrb[72].mxu1 %v11574_v29  ;;  %v9176_v29 = vld [vmem:[%s12772_s2 + $0x44c] ss:$16 sps:$4 sm:$0xff]   ;;  %v9240_v42 = vld [vmem:[%s12772_s2 + $0x5a8] ss:$16 sps:$4 sm:$0xff]  }
 0x26f   : > { %v2559_v10 = vadd.f32 %v2543_v33, %v2503_v5  ;;  %4430 = vmatpush1.bf16.msra.mxu0 %v9159_v56  ;;  %4536 = vmatpush1.bf16.msra.mxu1 %v9162_v60  ;;  %v2571_v49 = vmax.f32 %v2555_v12, 0.0  ;;  %v9216_v33 = vld [vmem:[%s12772_s2 + $0x528] ss:$16 sps:$4 sm:$0xff]   ;;  %v9243_v56 = vld [vmem:[%s12772_s2 + $0x5c0] ss:$16 sps:$4 sm:$0xff]  }
 0x270   : > { %4431 = vmatprep.subr.bf16.mxu0 %v9167_v1  ;;  %4537 = vmatprep.subr.bf16.mxu1 %v9170_v59  ;;  %v9246_v60 = vld [vmem:[%s12772_s2 + $0x5c8] ss:$16 sps:$4 sm:$0xff]   ;;  %v9251_v1 = vld [vmem:[%s12772_s2 + $0x5e4] ss:$16 sps:$4 sm:$0xff]   ;;  %v9254_v59 = vld [vmem:[%s12772_s2 + $0x5ec] ss:$16 sps:$4 sm:$0xff]  }
 0x271   : > { %v2575_v9 = vmax.f32 %v2559_v10, 0.0  ;;  %v9249_v5 = vld [vmem:[%s12772_s2 + $0x5e0] ss:$16 sps:$4 sm:$0xff]   ;;  %v9252_v12 = vld [vmem:[%s12772_s2 + $0x5e8] ss:$16 sps:$4 sm:$0xff]  }
 0x272   : > { %v9257_v10 = vld [vmem:[%s12772_s2 + $0x604] ss:$16 sps:$4 sm:$0xff]  }
 0x273   : > { %v2583_v52 = vpack.c.bf16 %v2575_v9, %v2571_v49  ;;  %4432 = vmatpush1.bf16.msra.mxu0 %v9165_v30  ;;  %4538 = vmatpush1.bf16.msra.mxu1 %v9168_v14  ;;  %v9260_v30 = vld [vmem:[%s12772_s2 + $0x60c] ss:$16 sps:$4 sm:$0xff]   ;;  %v2714_v14 = vsub.s32 1, %v11064_v18 }
 0x274   : > { %4433 = vmatprep.subr.bf16.mxu0 %v9173_v17  ;;  %4539 = vmatprep.subr.bf16.mxu1 %v9176_v29  ;;  %v2718_v17 = vsub.s32 5, %v11064_v18  ;;  %v11781_v29 = vld [vmem:[%s12775_s5] sm:$0xff] }
 0x275   : > { %3483 = vmatprep.mubr.bf16.mxu0 %v2583_v52  ;;  %3589 = vmatprep.mubr.bf16.mxu1 %v2583_v52  ;;  %v2715_v49 = vrot.slane %v11781_v29, %v2714_v14  ;;  %v2723_v9 = vrot.slane %v11567_v16, %v2714_v14 }
 0x276   : > { %3484 = vmatmul.mubr.bf16.gmra.mrb[76].mxu0 %v11572_v36  ;;  %3590 = vmatmul.mubr.bf16.gmra.mrb[76].mxu1 %v11572_v36  ;;  %v9188_v36 = vld [vmem:[%s12772_s2 + $0x48c] ss:$16 sps:$4 sm:$0xff]   ;;  %v2719_v52 = vrot.slane %v11781_v29, %v2718_v17 }
 0x277   : > { %4434 = vmatpush1.bf16.msra.mxu0 %v9171_v22  ;;  %4540 = vmatpush1.bf16.msra.mxu1 %v9174_v24  ;;  %v2727_v22 = vrot.slane %v11567_v16, %v2718_v17  ;;  %v2735_v24 = vrot.slane %v2715_v49, %v2714_v14 }
 0x278   : > { %4435 = vmatprep.subr.bf16.mxu0 %v9179_v26  ;;  %4541 = vmatprep.subr.bf16.mxu1 %v9182_v32  ;;  %v2743_v26 = vrot.slane %v2723_v9, %v2714_v14  ;;  %v2739_v32 = vrot.slane %v2719_v52, %v2714_v14  ;;  %v9272_v9 = vld [vmem:[%s12772_s2 + $0x64c] ss:$16 sps:$4 sm:$0xff]  }
 0x27b   : > { %4436 = vmatpush1.bf16.msra.mxu0 %v9177_v58  ;;  %4542 = vmatpush1.bf16.msra.mxu1 %v9180_v34  ;;  %v2747_v58 = vrot.slane %v2727_v22, %v2714_v14 }
 0x27c   : > { %4437 = vmatprep.subr.bf16.mxu0 %v9185_v48  ;;  %4543 = vmatprep.subr.bf16.mxu1 %v9188_v36 }
 0x27f   : > { %4438 = vmatpush1.bf16.msra.mxu0 %v9183_v28  ;;  %4544 = vmatpush1.bf16.msra.mxu1 %v9186_v38 }
 0x280   : > { %4439 = vmatprep.subr.bf16.mxu0 %v9191_v40  ;;  %4545 = vmatprep.subr.bf16.mxu1 %v9194_v23 }
 0x283   : > { %4440 = vmatpush1.bf16.msra.mxu0 %v9189_v27  ;;  %4546 = vmatpush1.bf16.msra.mxu1 %v9192_v35 }
 0x284   : > { %4441 = vmatprep.subr.bf16.mxu0 %v9197_v39  ;;  %4547 = vmatprep.subr.bf16.mxu1 %v9200_v51 }
 0x287   : > { %4442 = vmatpush1.bf16.msra.mxu0 %v9195_v20  ;;  %4548 = vmatpush1.bf16.msra.mxu1 %v9198_v19 }
 0x288   : > { %4443 = vmatprep.subr.bf16.mxu0 %v9203_v55  ;;  %4549 = vmatprep.subr.bf16.mxu1 %v9206_v54 }
 0x28b   : > { %4444 = vmatpush1.bf16.msra.mxu0 %v9201_v57  ;;  %4550 = vmatpush1.bf16.msra.mxu1 %v9204_v61 }
 0x28c   : > { %4445 = vmatprep.subr.bf16.mxu0 %v9209_v0  ;;  %4551 = vmatprep.subr.bf16.mxu1 %v9212_v21 }
 0x28f   : > { %4446 = vmatpush1.bf16.msra.mxu0 %v9207_v25  ;;  %4552 = vmatpush1.bf16.msra.mxu1 %v9210_v62 }
 0x290   : > { %4447 = vmatprep.subr.bf16.mxu0 %v9215_v44  ;;  %4553 = vmatprep.subr.bf16.mxu1 %v9218_v2 }
 0x293   : > { %4448 = vmatpush1.bf16.msra.mxu0 %v9213_v4  ;;  %4554 = vmatpush1.bf16.msra.mxu1 %v9216_v33 }
 0x294   : > { %4449 = vmatprep.subr.bf16.mxu0 %v9221_v37  ;;  %4555 = vmatprep.subr.bf16.mxu1 %v9224_v47 }
 0x297   : > { %4450 = vmatpush1.bf16.msra.mxu0 %v9219_v6  ;;  %4556 = vmatpush1.bf16.msra.mxu1 %v9222_v46 }
 0x298   : > { %4451 = vmatprep.subr.bf16.mxu0 %v9227_v8  ;;  %4557 = vmatprep.subr.bf16.mxu1 %v9230_v7  ;;  %v9255_v8 = vld [vmem:[%s12772_s2 + $0x600] ss:$16 sps:$4 sm:$0xff]   ;;  %v9258_v7 = vld [vmem:[%s12772_s2 + $0x608] ss:$16 sps:$4 sm:$0xff]  }
 0x29b   : > { %4452 = vmatpush1.bf16.msra.mxu0 %v9225_v13  ;;  %4558 = vmatpush1.bf16.msra.mxu1 %v9228_v43 }
 0x29c   : > { %4453 = vmatprep.subr.bf16.mxu0 %v9233_v45  ;;  %4559 = vmatprep.subr.bf16.mxu1 %v9236_v63 }
 0x29f   : > { %4454 = vmatpush1.bf16.msra.mxu0 %v9231_v50  ;;  %4560 = vmatpush1.bf16.msra.mxu1 %v9234_v31  ;;  %v9263_v50 = vld [vmem:[%s12772_s2 + $0x624] ss:$16 sps:$4 sm:$0xff]   ;;  %v9266_v31 = vld [vmem:[%s12772_s2 + $0x62c] ss:$16 sps:$4 sm:$0xff]  }
 0x2a0   : > { %4455 = vmatprep.subr.bf16.mxu0 %v9239_v3  ;;  %4561 = vmatprep.subr.bf16.mxu1 %v9242_v41 }
 0x2a3   : > { %4456 = vmatpush1.bf16.msra.mxu0 %v9237_v15  ;;  %4562 = vmatpush1.bf16.msra.mxu1 %v9240_v42 }
 0x2a4   : > { %4457 = vmatprep.subr.bf16.mxu0 %v9245_v53  ;;  %4563 = vmatprep.subr.bf16.mxu1 %v9248_v11 }
 0x2a7   : > { %4458 = vmatpush1.bf16.msra.mxu0 %v9243_v56  ;;  %4564 = vmatpush1.bf16.msra.mxu1 %v9246_v60 }
 0x2a8   : > { %4459 = vmatprep.subr.bf16.mxu0 %v9251_v1  ;;  %4565 = vmatprep.subr.bf16.mxu1 %v9254_v59 }
 0x2ab   : > { %4460 = vmatpush1.bf16.msra.mxu0 %v9249_v5  ;;  %4566 = vmatpush1.bf16.msra.mxu1 %v9252_v12  ;;  %v9261_v5 = vld [vmem:[%s12772_s2 + $0x620] ss:$16 sps:$4 sm:$0xff]   ;;  %v9264_v12 = vld [vmem:[%s12772_s2 + $0x628] ss:$16 sps:$4 sm:$0xff]  }
 0x2ac   : > { %4482 = vmatprep.subr.bf16.mxu0 %v9257_v10  ;;  %4588 = vmatprep.subr.bf16.mxu1 %v9260_v30  ;;  %v9269_v10 = vld [vmem:[%s12772_s2 + $0x644] ss:$16 sps:$4 sm:$0xff]  }
 0x341   : > { %v3475_v34 = vpop.f32.mrb[72].mxu0  ;;  %v3581_v48 = vpop.f32.mrb[72].mxu1 }
 0x342   : > { %v8668_v36 = vadd.f32 %v3475_v34, %v2735_v24  ;;  %v8676_v28 = vadd.f32 %v3581_v48, %v2743_v26  ;;  %v3477_v38 = vpop.f32.mrb[73].mxu0  ;;  %v3583_v40 = vpop.f32.mrb[73].mxu1 }
 0x343   : > { %v8669_v23 = vadd.f32 %v3477_v38, %v2739_v32  ;;  %v8677_v27 = vadd.f32 %v3583_v40, %v2747_v58  ;;  %v3479_v35 = vpop.f32.mrb[74].mxu0  ;;  %v3585_v39 = vpop.f32.mrb[74].mxu1  ;;  %v9275_v38 = vld [vmem:[%s12772_s2 + $0x664] ss:$16 sps:$4 sm:$0xff]   ;;  %v9278_v40 = vld [vmem:[%s12772_s2 + $0x66c] ss:$16 sps:$4 sm:$0xff]  }
 0x344   : > { %v8670_v51 = vadd.f32 %v3479_v35, %v2735_v24  ;;  %v8678_v20 = vadd.f32 %v3585_v39, %v2743_v26  ;;  %v3481_v19 = vpop.f32.mrb[75].mxu0  ;;  %v3587_v55 = vpop.f32.mrb[75].mxu1  ;;  %v3600_v57 = vmax.f32 %v8668_v36, 0.0  ;;  %v3602_v61 = vmax.f32 %v8676_v28, 0.0  ;;  %v9267_v36 = vld [vmem:[%s12772_s2 + $0x640] ss:$16 sps:$4 sm:$0xff]  }
 0x345   : > { %v8671_v54 = vadd.f32 %v3481_v19, %v2739_v32  ;;  %v8679_v16 = vadd.f32 %v3587_v55, %v2747_v58  ;;  %v3601_v25 = vmax.f32 %v8669_v23, 0.0  ;;  %v3603_v62 = vmax.f32 %v8677_v27, 0.0  ;;  %v9270_v28 = vld [vmem:[%s12772_s2 + $0x648] ss:$16 sps:$4 sm:$0xff]   ;;  %v9273_v23 = vld [vmem:[%s12772_s2 + $0x660] ss:$16 sps:$4 sm:$0xff]  }
 0x346   : > { %v3604_v0 = vmax.f32 %v8670_v51, 0.0  ;;  %v3606_v21 = vmax.f32 %v8678_v20, 0.0  ;;  %v9276_v27 = vld [vmem:[%s12772_s2 + $0x668] ss:$16 sps:$4 sm:$0xff]   ;;  %v9281_v35 = vld [vmem:[%s12772_s2 + $0x684] ss:$16 sps:$4 sm:$0xff]  }
 0x347   : > { %v3605_v44 = vmax.f32 %v8671_v54, 0.0  ;;  %v3607_v2 = vmax.f32 %v8679_v16, 0.0  ;;  %v9284_v39 = vld [vmem:[%s12772_s2 + $0x68c] ss:$16 sps:$4 sm:$0xff]   ;;  %v9279_v51 = vld [vmem:[%s12772_s2 + $0x680] ss:$16 sps:$4 sm:$0xff]  }
 0x348   : > { %v11787_v4 = vpack.c.bf16 %v3604_v0, %v3600_v57  ;;  %v11789_v33 = vpack.c.bf16 %v3606_v21, %v3602_v61  ;;  %v9282_v20 = vld [vmem:[%s12772_s2 + $0x688] ss:$16 sps:$4 sm:$0xff]   ;;  %v9287_v19 = vld [vmem:[%s12772_s2 + $0x6a4] ss:$16 sps:$4 sm:$0xff]   ;;  %v9290_v55 = vld [vmem:[%s12772_s2 + $0x6ac] ss:$16 sps:$4 sm:$0xff]  }
 0x349   : > { %v11791_v37 = vpack.c.bf16 %v3605_v44, %v3601_v25  ;;  %v11793_v47 = vpack.c.bf16 %v3607_v2, %v3603_v62  ;;  %v3485_v6 = vpop.f32.mrb[76].mxu0  ;;  %v3591_v46 = vpop.f32.mrb[76].mxu1  ;;  %v9285_v54 = vld [vmem:[%s12772_s2 + $0x6a0] ss:$16 sps:$4 sm:$0xff]   ;;  %v9288_v16 = vld [vmem:[%s12772_s2 + $0x6a8] ss:$16 sps:$4 sm:$0xff]  }
 0x34a   : > { %v8672_v13 = vadd.f32 %v3485_v6, %v2735_v24  ;;  %v8680_v43 = vadd.f32 %v3591_v46, %v2743_v26  ;;  %v3487_v45 = vpop.f32.mrb[77].mxu0  ;;  %v3593_v63 = vpop.f32.mrb[77].mxu1  ;;  %v9293_v57 = vld [vmem:[%s12772_s2 + $0x6c4] ss:$16 sps:$4 sm:$0xff]   ;;  %v9296_v61 = vld [vmem:[%s12772_s2 + $0x6cc] ss:$16 sps:$4 sm:$0xff]  }
 0x34b   : > { %v8673_v3 = vadd.f32 %v3487_v45, %v2739_v32  ;;  %v8681_v41 = vadd.f32 %v3593_v63, %v2747_v58  ;;  %v3489_v15 = vpop.f32.mrb[78].mxu0  ;;  %v3595_v42 = vpop.f32.mrb[78].mxu1  ;;  %4461 = vmatprep.mubr.bf16.mxu0 %v11791_v37  ;;  %4567 = vmatprep.mubr.bf16.mxu1 %v11791_v37  ;;  %v9291_v0 = vld [vmem:[%s12772_s2 + $0x6c0] ss:$16 sps:$4 sm:$0xff]   ;;  %v9294_v21 = vld [vmem:[%s12772_s2 + $0x6c8] ss:$16 sps:$4 sm:$0xff]  }
 0x34c   : > { %v8674_v53 = vadd.f32 %v3489_v15, %v2735_v24  ;;  %v8682_v11 = vadd.f32 %v3595_v42, %v2743_v26  ;;  %v3491_v56 = vpop.f32.mrb[79].mxu0  ;;  %v3597_v60 = vpop.f32.mrb[79].mxu1  ;;  %4462 = vmatmul.mubr.bf16.vlgmr.msra.gmra.mrb[80].mxu0 %v11787_v4  ;;  %4568 = vmatmul.mubr.bf16.vlgmr.msra.gmra.mrb[80].mxu1 %v11787_v4  ;;  %v3608_v30 = vmax.f32 %v8672_v13, 0.0  ;;  %v3610_v14 = vmax.f32 %v8680_v43, 0.0  ;;  %v9299_v25 = vld [vmem:[%s12772_s2 + $0x6e4] ss:$16 sps:$4 sm:$0xff]  }
 0x34d   : > { %v8675_v1 = vadd.f32 %v3491_v56, %v2739_v32  ;;  %v8683_v59 = vadd.f32 %v3597_v60, %v2747_v58  ;;  %4483 = vmatpush1.bf16.msra.mxu0 %v9255_v8  ;;  %4589 = vmatpush1.bf16.msra.mxu1 %v9258_v7  ;;  %v3609_v52 = vmax.f32 %v8673_v3, 0.0  ;;  %v3611_v22 = vmax.f32 %v8681_v41, 0.0  ;;  %v9302_v62 = vld [vmem:[%s12772_s2 + $0x6ec] ss:$16 sps:$4 sm:$0xff]   ;;  %v9297_v44 = vld [vmem:[%s12772_s2 + $0x6e0] ss:$16 sps:$4 sm:$0xff]  }
 0x34e   : > { %v3612_v17 = vmax.f32 %v8674_v53, 0.0  ;;  %v3614_v49 = vmax.f32 %v8682_v11, 0.0  ;;  %4484 = vmatprep.subr.bf16.mxu0 %v9263_v50  ;;  %4590 = vmatprep.subr.bf16.mxu1 %v9266_v31  ;;  %v9300_v2 = vld [vmem:[%s12772_s2 + $0x6e8] ss:$16 sps:$4 sm:$0xff]   ;;  %v9305_v6 = vld [vmem:[%s12772_s2 + $0x704] ss:$16 sps:$4 sm:$0xff]  }
 0x34f   : > { %v3613_v24 = vmax.f32 %v8675_v1, 0.0  ;;  %v3615_v26 = vmax.f32 %v8683_v59, 0.0  ;;  %v9308_v46 = vld [vmem:[%s12772_s2 + $0x70c] ss:$16 sps:$4 sm:$0xff]   ;;  %v9303_v8 = vld [vmem:[%s12772_s2 + $0x700] ss:$16 sps:$4 sm:$0xff]  }
 0x350   : > { %v11823_v32 = vpack.c.bf16 %v3612_v17, %v3608_v30  ;;  %v11825_v58 = vpack.c.bf16 %v3614_v49, %v3610_v14  ;;  %v9306_v7 = vld [vmem:[%s12772_s2 + $0x708] ss:$16 sps:$4 sm:$0xff]   ;;  %v9311_v13 = vld [vmem:[%s12772_s2 + $0x724] ss:$16 sps:$4 sm:$0xff]   ;;  %v9314_v43 = vld [vmem:[%s12772_s2 + $0x72c] ss:$16 sps:$4 sm:$0xff]  }
 0x351   : > { %v11827_v34 = vpack.c.bf16 %v3613_v24, %v3609_v52  ;;  %v11829_v48 = vpack.c.bf16 %v3615_v26, %v3611_v22  ;;  %4485 = vmatpush1.bf16.msra.mxu0 %v9261_v5  ;;  %4591 = vmatpush1.bf16.msra.mxu1 %v9264_v12  ;;  %v9309_v45 = vld [vmem:[%s12772_s2 + $0x720] ss:$16 sps:$4 sm:$0xff]   ;;  %v9312_v63 = vld [vmem:[%s12772_s2 + $0x728] ss:$16 sps:$4 sm:$0xff]   ;;  %v9317_v50 = vld [vmem:[%s12772_s2 + $0x744] ss:$16 sps:$4 sm:$0xff]  }
 0x352   : > { %4486 = vmatprep.subr.bf16.mxu0 %v9269_v10  ;;  %4592 = vmatprep.subr.bf16.mxu1 %v9272_v9  ;;  %v9320_v31 = vld [vmem:[%s12772_s2 + $0x74c] ss:$16 sps:$4 sm:$0xff]   ;;  %v9315_v3 = vld [vmem:[%s12772_s2 + $0x740] ss:$16 sps:$4 sm:$0xff]   ;;  %v9318_v41 = vld [vmem:[%s12772_s2 + $0x748] ss:$16 sps:$4 sm:$0xff]  }
 0x353   : > { %4471 = vmatprep.mubr.bf16.mxu0 %v11827_v34  ;;  %4577 = vmatprep.mubr.bf16.mxu1 %v11827_v34  ;;  %v9323_v15 = vld [vmem:[%s12772_s2 + $0x764] ss:$16 sps:$4 sm:$0xff]   ;;  %v9326_v42 = vld [vmem:[%s12772_s2 + $0x76c] ss:$16 sps:$4 sm:$0xff]   ;;  %v9321_v53 = vld [vmem:[%s12772_s2 + $0x760] ss:$16 sps:$4 sm:$0xff]  }
 0x354   : > { %4472 = vmatmul.mubr.bf16.gmra.mrb[84].mxu0 %v11823_v32  ;;  %4578 = vmatmul.mubr.bf16.gmra.mrb[84].mxu1 %v11823_v32  ;;  %v9324_v11 = vld [vmem:[%s12772_s2 + $0x768] ss:$16 sps:$4 sm:$0xff]   ;;  %v9329_v56 = vld [vmem:[%s12772_s2 + $0x784] ss:$16 sps:$4 sm:$0xff]   ;;  %v9332_v60 = vld [vmem:[%s12772_s2 + $0x78c] ss:$16 sps:$4 sm:$0xff]  }
 0x355   : > { %4487 = vmatpush1.bf16.msra.mxu0 %v9267_v36  ;;  %4593 = vmatpush1.bf16.msra.mxu1 %v9270_v28  ;;  %v9327_v1 = vld [vmem:[%s12772_s2 + $0x780] ss:$16 sps:$4 sm:$0xff]   ;;  %v9330_v59 = vld [vmem:[%s12772_s2 + $0x788] ss:$16 sps:$4 sm:$0xff]   ;;  %v9335_v5 = vld [vmem:[%s12772_s2 + $0x7a4] ss:$16 sps:$4 sm:$0xff]  }
 0x356   : > { %4514 = vmatprep.mubr.bf16.mxu0 %v11793_v47  ;;  %4620 = vmatprep.mubr.bf16.mxu1 %v11793_v47  ;;  %v9338_v12 = vld [vmem:[%s12772_s2 + $0x7ac] ss:$16 sps:$4 sm:$0xff]   ;;  %v9333_v10 = vld [vmem:[%s12772_s2 + $0x7a0] ss:$16 sps:$4 sm:$0xff]   ;;  %v9336_v30 = vld [vmem:[%s12772_s2 + $0x7a8] ss:$16 sps:$4 sm:$0xff]  }
 0x357   : > { %4488 = vmatprep.subr.bf16.mxu0 %v9275_v38  ;;  %4594 = vmatprep.subr.bf16.mxu1 %v9278_v40  ;;  %v9341_v14 = vld [vmem:[%s12772_s2 + $0x7c4] ss:$16 sps:$4 sm:$0xff]   ;;  %v9344_v17 = vld [vmem:[%s12772_s2 + $0x7cc] ss:$16 sps:$4 sm:$0xff]   ;;  %v9339_v49 = vld [vmem:[%s12772_s2 + $0x7c0] ss:$16 sps:$4 sm:$0xff]  }
 0x358   : > { %v9342_v9 = vld [vmem:[%s12772_s2 + $0x7c8] ss:$16 sps:$4 sm:$0xff]   ;;  %v9347_v52 = vld [vmem:[%s12772_s2 + $0x7e4] ss:$16 sps:$4 sm:$0xff]   ;;  %v9350_v22 = vld [vmem:[%s12772_s2 + $0x7ec] ss:$16 sps:$4 sm:$0xff]  }
 0x359   : > { %4489 = vmatpush1.bf16.msra.mxu0 %v9273_v23  ;;  %4595 = vmatpush1.bf16.msra.mxu1 %v9276_v27  ;;  %v9345_v24 = vld [vmem:[%s12772_s2 + $0x7e0] ss:$16 sps:$4 sm:$0xff]   ;;  %v9348_v26 = vld [vmem:[%s12772_s2 + $0x7e8] ss:$16 sps:$4 sm:$0xff]   ;;  %v9353_v36 = vld [vmem:[%s12772_s2 + $0x804] ss:$16 sps:$4 sm:$0xff]  }
 0x35a   : > { %4490 = vmatprep.subr.bf16.mxu0 %v9281_v35  ;;  %4596 = vmatprep.subr.bf16.mxu1 %v9284_v39  ;;  %v9356_v28 = vld [vmem:[%s12772_s2 + $0x80c] ss:$16 sps:$4 sm:$0xff]   ;;  %v9351_v38 = vld [vmem:[%s12772_s2 + $0x800] ss:$16 sps:$4 sm:$0xff]   ;;  %v9354_v40 = vld [vmem:[%s12772_s2 + $0x808] ss:$16 sps:$4 sm:$0xff]  }
 0x35b   : > { %v9359_v23 = vld [vmem:[%s12772_s2 + $0x824] ss:$16 sps:$4 sm:$0xff]   ;;  %v9362_v27 = vld [vmem:[%s12772_s2 + $0x82c] ss:$16 sps:$4 sm:$0xff]   ;;  %v9357_v35 = vld [vmem:[%s12772_s2 + $0x820] ss:$16 sps:$4 sm:$0xff]  }
 0x35c   : > { %v9360_v39 = vld [vmem:[%s12772_s2 + $0x828] ss:$16 sps:$4 sm:$0xff]  }
 0x35d   : > { %4491 = vmatpush1.bf16.msra.mxu0 %v9279_v51  ;;  %4597 = vmatpush1.bf16.msra.mxu1 %v9282_v20  ;;  %v9365_v51 = vld [vmem:[%s12772_s2 + $0x844] ss:$16 sps:$4 sm:$0xff]   ;;  %v9368_v20 = vld [vmem:[%s12772_s2 + $0x84c] ss:$16 sps:$4 sm:$0xff]  }
 0x35e   : > { %4492 = vmatprep.subr.bf16.mxu0 %v9287_v19  ;;  %4598 = vmatprep.subr.bf16.mxu1 %v9290_v55  ;;  %v9363_v19 = vld [vmem:[%s12772_s2 + $0x840] ss:$16 sps:$4 sm:$0xff]   ;;  %v9366_v55 = vld [vmem:[%s12772_s2 + $0x848] ss:$16 sps:$4 sm:$0xff]  }
 0x361   : > { %4493 = vmatpush1.bf16.msra.mxu0 %v9285_v54  ;;  %4599 = vmatpush1.bf16.msra.mxu1 %v9288_v16  ;;  %v9371_v54 = vld [vmem:[%s12772_s2 + $0x864] ss:$16 sps:$4 sm:$0xff]   ;;  %v9374_v16 = vld [vmem:[%s12772_s2 + $0x86c] ss:$16 sps:$4 sm:$0xff]  }
 0x362   : > { %4494 = vmatprep.subr.bf16.mxu0 %v9293_v57  ;;  %4600 = vmatprep.subr.bf16.mxu1 %v9296_v61  ;;  %v9369_v57 = vld [vmem:[%s12772_s2 + $0x860] ss:$16 sps:$4 sm:$0xff]   ;;  %v9372_v61 = vld [vmem:[%s12772_s2 + $0x868] ss:$16 sps:$4 sm:$0xff]  }
 0x365   : > { %4495 = vmatpush1.bf16.msra.mxu0 %v9291_v0  ;;  %4601 = vmatpush1.bf16.msra.mxu1 %v9294_v21  ;;  %v9377_v0 = vld [vmem:[%s12772_s2 + $0x884] ss:$16 sps:$4 sm:$0xff]   ;;  %v9380_v21 = vld [vmem:[%s12772_s2 + $0x88c] ss:$16 sps:$4 sm:$0xff]  }
 0x366   : > { %4496 = vmatprep.subr.bf16.mxu0 %v9299_v25  ;;  %4602 = vmatprep.subr.bf16.mxu1 %v9302_v62  ;;  %v9375_v25 = vld [vmem:[%s12772_s2 + $0x880] ss:$16 sps:$4 sm:$0xff]   ;;  %v9378_v62 = vld [vmem:[%s12772_s2 + $0x888] ss:$16 sps:$4 sm:$0xff]  }
 0x369   : > { %4497 = vmatpush1.bf16.msra.mxu0 %v9297_v44  ;;  %4603 = vmatpush1.bf16.msra.mxu1 %v9300_v2  ;;  %v9383_v44 = vld [vmem:[%s12772_s2 + $0x8a4] ss:$16 sps:$4 sm:$0xff]   ;;  %v9386_v2 = vld [vmem:[%s12772_s2 + $0x8ac] ss:$16 sps:$4 sm:$0xff]  }
 0x36a   : > { %4498 = vmatprep.subr.bf16.mxu0 %v9305_v6  ;;  %4604 = vmatprep.subr.bf16.mxu1 %v9308_v46  ;;  %v9381_v6 = vld [vmem:[%s12772_s2 + $0x8a0] ss:$16 sps:$4 sm:$0xff]   ;;  %v9384_v46 = vld [vmem:[%s12772_s2 + $0x8a8] ss:$16 sps:$4 sm:$0xff]  }
 0x36d   : > { %4499 = vmatpush1.bf16.msra.mxu0 %v9303_v8  ;;  %4605 = vmatpush1.bf16.msra.mxu1 %v9306_v7  ;;  %v9389_v8 = vld [vmem:[%s12772_s2 + $0x8c4] ss:$16 sps:$4 sm:$0xff]   ;;  %v9392_v7 = vld [vmem:[%s12772_s2 + $0x8cc] ss:$16 sps:$4 sm:$0xff]  }
 0x36e   : > { %4500 = vmatprep.subr.bf16.mxu0 %v9311_v13  ;;  %4606 = vmatprep.subr.bf16.mxu1 %v9314_v43  ;;  %v9387_v13 = vld [vmem:[%s12772_s2 + $0x8c0] ss:$16 sps:$4 sm:$0xff]   ;;  %v9390_v43 = vld [vmem:[%s12772_s2 + $0x8c8] ss:$16 sps:$4 sm:$0xff]  }
 0x371   : > { %4501 = vmatpush1.bf16.msra.mxu0 %v9309_v45  ;;  %4607 = vmatpush1.bf16.msra.mxu1 %v9312_v63  ;;  %v9395_v45 = vld [vmem:[%s12772_s2 + $0x8e4] ss:$16 sps:$4 sm:$0xff]   ;;  %v9398_v63 = vld [vmem:[%s12772_s2 + $0x8ec] ss:$16 sps:$4 sm:$0xff]  }
 0x372   : > { %4502 = vmatprep.subr.bf16.mxu0 %v9317_v50  ;;  %4608 = vmatprep.subr.bf16.mxu1 %v9320_v31  ;;  %v9393_v50 = vld [vmem:[%s12772_s2 + $0x8e0] ss:$16 sps:$4 sm:$0xff]   ;;  %v9396_v31 = vld [vmem:[%s12772_s2 + $0x8e8] ss:$16 sps:$4 sm:$0xff]  }
 0x375   : > { %4503 = vmatpush1.bf16.msra.mxu0 %v9315_v3  ;;  %4609 = vmatpush1.bf16.msra.mxu1 %v9318_v41  ;;  %v9401_v3 = vld [vmem:[%s12772_s2 + $0x904] ss:$16 sps:$4 sm:$0xff]   ;;  %v9404_v41 = vld [vmem:[%s12772_s2 + $0x90c] ss:$16 sps:$4 sm:$0xff]  }
 0x376   : > { %4504 = vmatprep.subr.bf16.mxu0 %v9323_v15  ;;  %4610 = vmatprep.subr.bf16.mxu1 %v9326_v42  ;;  %v9399_v15 = vld [vmem:[%s12772_s2 + $0x900] ss:$16 sps:$4 sm:$0xff]   ;;  %v9402_v42 = vld [vmem:[%s12772_s2 + $0x908] ss:$16 sps:$4 sm:$0xff]  }
 0x379   : > { %4505 = vmatpush1.bf16.msra.mxu0 %v9321_v53  ;;  %4611 = vmatpush1.bf16.msra.mxu1 %v9324_v11  ;;  %v9407_v53 = vld [vmem:[%s12772_s2 + $0x924] ss:$16 sps:$4 sm:$0xff]   ;;  %v9410_v11 = vld [vmem:[%s12772_s2 + $0x92c] ss:$16 sps:$4 sm:$0xff]  }
 0x37a   : > { %4506 = vmatprep.subr.bf16.mxu0 %v9329_v56  ;;  %4612 = vmatprep.subr.bf16.mxu1 %v9332_v60  ;;  %v9405_v56 = vld [vmem:[%s12772_s2 + $0x920] ss:$16 sps:$4 sm:$0xff]   ;;  %v9408_v60 = vld [vmem:[%s12772_s2 + $0x928] ss:$16 sps:$4 sm:$0xff]  }
 0x37d   : > { %4507 = vmatpush1.bf16.msra.mxu0 %v9327_v1  ;;  %4613 = vmatpush1.bf16.msra.mxu1 %v9330_v59  ;;  %v9413_v1 = vld [vmem:[%s12772_s2 + $0x944] ss:$16 sps:$4 sm:$0xff]   ;;  %v9416_v59 = vld [vmem:[%s12772_s2 + $0x94c] ss:$16 sps:$4 sm:$0xff]  }
 0x37e   : > { %4508 = vmatprep.subr.bf16.mxu0 %v9335_v5  ;;  %4614 = vmatprep.subr.bf16.mxu1 %v9338_v12  ;;  %v9411_v5 = vld [vmem:[%s12772_s2 + $0x940] ss:$16 sps:$4 sm:$0xff]   ;;  %v9414_v12 = vld [vmem:[%s12772_s2 + $0x948] ss:$16 sps:$4 sm:$0xff]  }
 0x381   : > { %4509 = vmatpush1.bf16.msra.mxu0 %v9333_v10  ;;  %4615 = vmatpush1.bf16.msra.mxu1 %v9336_v30  ;;  %v9419_v10 = vld [vmem:[%s12772_s2 + $0x964] ss:$16 sps:$4 sm:$0xff]   ;;  %v9422_v30 = vld [vmem:[%s12772_s2 + $0x96c] ss:$16 sps:$4 sm:$0xff]  }
 0x382   : > { %4510 = vmatprep.subr.bf16.mxu0 %v9341_v14  ;;  %4616 = vmatprep.subr.bf16.mxu1 %v9344_v17  ;;  %v9417_v14 = vld [vmem:[%s12772_s2 + $0x960] ss:$16 sps:$4 sm:$0xff]   ;;  %v9420_v17 = vld [vmem:[%s12772_s2 + $0x968] ss:$16 sps:$4 sm:$0xff]  }
 0x385   : > { %4511 = vmatpush1.bf16.msra.mxu0 %v9339_v49  ;;  %4617 = vmatpush1.bf16.msra.mxu1 %v9342_v9  ;;  %v9425_v49 = vld [vmem:[%s12772_s2 + $0x984] ss:$16 sps:$4 sm:$0xff]   ;;  %v9428_v9 = vld [vmem:[%s12772_s2 + $0x98c] ss:$16 sps:$4 sm:$0xff]  }
 0x386   : > { %4512 = vmatprep.subr.bf16.mxu0 %v9347_v52  ;;  %4618 = vmatprep.subr.bf16.mxu1 %v9350_v22  ;;  %v9423_v52 = vld [vmem:[%s12772_s2 + $0x980] ss:$16 sps:$4 sm:$0xff]   ;;  %v9426_v22 = vld [vmem:[%s12772_s2 + $0x988] ss:$16 sps:$4 sm:$0xff]  }
 0x389   : > { %4513 = vmatpush1.bf16.msra.mxu0 %v9345_v24  ;;  %4619 = vmatpush1.bf16.msra.mxu1 %v9348_v26  ;;  %v9431_v24 = vld [vmem:[%s12772_s2 + $0x9a4] ss:$16 sps:$4 sm:$0xff]   ;;  %v9434_v26 = vld [vmem:[%s12772_s2 + $0x9ac] ss:$16 sps:$4 sm:$0xff]  }
 0x38a   : > { %5470 = vmatprep.subr.bf16.mxu0 %v9353_v36  ;;  %5576 = vmatprep.subr.bf16.mxu1 %v9356_v28  ;;  %v9429_v36 = vld [vmem:[%s12772_s2 + $0x9a0] ss:$16 sps:$4 sm:$0xff]   ;;  %v9432_v28 = vld [vmem:[%s12772_s2 + $0x9a8] ss:$16 sps:$4 sm:$0xff]  }
 0x38c   : > { %4515 = vmatmul.mubr.bf16.vlgmr.msra.gmra.mrb[80].mxu0 %v11789_v33  ;;  %4621 = vmatmul.mubr.bf16.vlgmr.msra.gmra.mrb[80].mxu1 %v11789_v33 }
 0x38d   : > { %4524 = vmatprep.mubr.bf16.mxu0 %v11829_v48  ;;  %4630 = vmatprep.mubr.bf16.mxu1 %v11829_v48 }
 0x38e   : > { %5471 = vmatpush1.bf16.msra.mxu0 %v9351_v38  ;;  %5577 = vmatpush1.bf16.msra.mxu1 %v9354_v40  ;;  %v9437_v38 = vld [vmem:[%s12772_s2 + $0x9c4] ss:$16 sps:$4 sm:$0xff]   ;;  %v9440_v40 = vld [vmem:[%s12772_s2 + $0x9cc] ss:$16 sps:$4 sm:$0xff]  }
 0x38f   : > { %5472 = vmatprep.subr.bf16.mxu0 %v9359_v23  ;;  %5578 = vmatprep.subr.bf16.mxu1 %v9362_v27  ;;  %v9435_v23 = vld [vmem:[%s12772_s2 + $0x9c0] ss:$16 sps:$4 sm:$0xff]   ;;  %v9438_v27 = vld [vmem:[%s12772_s2 + $0x9c8] ss:$16 sps:$4 sm:$0xff]  }
 0x392   : > { %5473 = vmatpush1.bf16.msra.mxu0 %v9357_v35  ;;  %5579 = vmatpush1.bf16.msra.mxu1 %v9360_v39  ;;  %v9443_v35 = vld [vmem:[%s12772_s2 + $0x9e4] ss:$16 sps:$4 sm:$0xff]   ;;  %v9446_v39 = vld [vmem:[%s12772_s2 + $0x9ec] ss:$16 sps:$4 sm:$0xff]  }
 0x393   : > { %5474 = vmatprep.subr.bf16.mxu0 %v9365_v51  ;;  %5580 = vmatprep.subr.bf16.mxu1 %v9368_v20  ;;  %v9441_v51 = vld [vmem:[%s12772_s2 + $0x9e0] ss:$16 sps:$4 sm:$0xff]   ;;  %v9444_v20 = vld [vmem:[%s12772_s2 + $0x9e8] ss:$16 sps:$4 sm:$0xff]  }
 0x394   : > { %4525 = vmatmul.mubr.bf16.gmra.mrb[84].mxu0 %v11825_v58  ;;  %4631 = vmatmul.mubr.bf16.gmra.mrb[84].mxu1 %v11825_v58 }
 0x396   : > { %5475 = vmatpush1.bf16.msra.mxu0 %v9363_v19  ;;  %5581 = vmatpush1.bf16.msra.mxu1 %v9366_v55  ;;  %v9449_v19 = vld [vmem:[%s12772_s2 + $0xa04] ss:$16 sps:$4 sm:$0xff]   ;;  %v9452_v55 = vld [vmem:[%s12772_s2 + $0xa0c] ss:$16 sps:$4 sm:$0xff]  }
 0x397   : > { %5476 = vmatprep.subr.bf16.mxu0 %v9371_v54  ;;  %5582 = vmatprep.subr.bf16.mxu1 %v9374_v16  ;;  %v3755_v54 = vsub.s32 2, %v11064_v18  ;;  %v3759_v16 = vsub.s32 6, %v11064_v18 }
 0x39a   : > { %5477 = vmatpush1.bf16.msra.mxu0 %v9369_v57  ;;  %5583 = vmatpush1.bf16.msra.mxu1 %v9372_v61  ;;  %v3756_v57 = vrot.slane %v11781_v29, %v3755_v54  ;;  %v12209_v61 = vld [vmem:[%s12775_s5 + $0x8] sm:$0xff] }
 0x39b   : > { %5478 = vmatprep.subr.bf16.mxu0 %v9377_v0  ;;  %5584 = vmatprep.subr.bf16.mxu1 %v9380_v21  ;;  %v3764_v0 = vrot.slane %v12209_v61, %v3755_v54  ;;  %v3760_v21 = vrot.slane %v11781_v29, %v3759_v16 }
 0x39e   : > { %5479 = vmatpush1.bf16.msra.mxu0 %v9375_v25  ;;  %5585 = vmatpush1.bf16.msra.mxu1 %v9378_v62  ;;  %v3768_v25 = vrot.slane %v12209_v61, %v3759_v16  ;;  %v3776_v62 = vrot.slane %v3756_v57, %v3755_v54 }
 0x39f   : > { %5480 = vmatprep.subr.bf16.mxu0 %v9383_v44  ;;  %5586 = vmatprep.subr.bf16.mxu1 %v9386_v2  ;;  %v3784_v44 = vrot.slane %v3764_v0, %v3755_v54  ;;  %v3780_v2 = vrot.slane %v3760_v21, %v3755_v54  ;;  %v9453_v21 = vld [vmem:[%s12772_s2 + $0xa20] ss:$16 sps:$4 sm:$0xff]  }
 0x3a2   : > { %5481 = vmatpush1.bf16.msra.mxu0 %v9381_v6  ;;  %5587 = vmatpush1.bf16.msra.mxu1 %v9384_v46  ;;  %v3788_v6 = vrot.slane %v3768_v25, %v3755_v54  ;;  %v9456_v25 = vld [vmem:[%s12772_s2 + $0xa28] ss:$16 sps:$4 sm:$0xff]  }
 0x3a3   : > { %5482 = vmatprep.subr.bf16.mxu0 %v9389_v8  ;;  %5588 = vmatprep.subr.bf16.mxu1 %v9392_v7 }
 0x3a6   : > { %5483 = vmatpush1.bf16.msra.mxu0 %v9387_v13  ;;  %5589 = vmatpush1.bf16.msra.mxu1 %v9390_v43 }
 0x3a7   : > { %5484 = vmatprep.subr.bf16.mxu0 %v9395_v45  ;;  %5590 = vmatprep.subr.bf16.mxu1 %v9398_v63 }
 0x3aa   : > { %5485 = vmatpush1.bf16.msra.mxu0 %v9393_v50  ;;  %5591 = vmatpush1.bf16.msra.mxu1 %v9396_v31 }
 0x3ab   : > { %5486 = vmatprep.subr.bf16.mxu0 %v9401_v3  ;;  %5592 = vmatprep.subr.bf16.mxu1 %v9404_v41 }
 0x3ae   : > { %5487 = vmatpush1.bf16.msra.mxu0 %v9399_v15  ;;  %5593 = vmatpush1.bf16.msra.mxu1 %v9402_v42 }
 0x3af   : > { %5488 = vmatprep.subr.bf16.mxu0 %v9407_v53  ;;  %5594 = vmatprep.subr.bf16.mxu1 %v9410_v11 }
 0x3b2   : > { %5489 = vmatpush1.bf16.msra.mxu0 %v9405_v56  ;;  %5595 = vmatpush1.bf16.msra.mxu1 %v9408_v60 }
 0x3b3   : > { %5490 = vmatprep.subr.bf16.mxu0 %v9413_v1  ;;  %5596 = vmatprep.subr.bf16.mxu1 %v9416_v59 }
 0x3b6   : > { %5491 = vmatpush1.bf16.msra.mxu0 %v9411_v5  ;;  %5597 = vmatpush1.bf16.msra.mxu1 %v9414_v12 }
 0x3b7   : > { %5492 = vmatprep.subr.bf16.mxu0 %v9419_v10  ;;  %5598 = vmatprep.subr.bf16.mxu1 %v9422_v30 }
 0x3ba   : > { %5493 = vmatpush1.bf16.msra.mxu0 %v9417_v14  ;;  %5599 = vmatpush1.bf16.msra.mxu1 %v9420_v17 }
 0x3bb   : > { %5494 = vmatprep.subr.bf16.mxu0 %v9425_v49  ;;  %5600 = vmatprep.subr.bf16.mxu1 %v9428_v9 }
 0x3be   : > { %5495 = vmatpush1.bf16.msra.mxu0 %v9423_v52  ;;  %5601 = vmatpush1.bf16.msra.mxu1 %v9426_v22 }
 0x3bf   : > { %5496 = vmatprep.subr.bf16.mxu0 %v9431_v24  ;;  %5602 = vmatprep.subr.bf16.mxu1 %v9434_v26  ;;  %v9447_v24 = vld [vmem:[%s12772_s2 + $0xa00] ss:$16 sps:$4 sm:$0xff]   ;;  %v9450_v26 = vld [vmem:[%s12772_s2 + $0xa08] ss:$16 sps:$4 sm:$0xff]  }
 0x3c2   : > { %5497 = vmatpush1.bf16.msra.mxu0 %v9429_v36  ;;  %5603 = vmatpush1.bf16.msra.mxu1 %v9432_v28 }
 0x3c3   : > { %5498 = vmatprep.subr.bf16.mxu0 %v9437_v38  ;;  %5604 = vmatprep.subr.bf16.mxu1 %v9440_v40 }
 0x3c6   : > { %5499 = vmatpush1.bf16.msra.mxu0 %v9435_v23  ;;  %5605 = vmatpush1.bf16.msra.mxu1 %v9438_v27  ;;  %v9455_v23 = vld [vmem:[%s12772_s2 + $0xa24] ss:$16 sps:$4 sm:$0xff]   ;;  %v9458_v27 = vld [vmem:[%s12772_s2 + $0xa2c] ss:$16 sps:$4 sm:$0xff]  }
 0x3c7   : > { %5500 = vmatprep.subr.bf16.mxu0 %v9443_v35  ;;  %5606 = vmatprep.subr.bf16.mxu1 %v9446_v39 }
 0x3ca   : > { %5501 = vmatpush1.bf16.msra.mxu0 %v9441_v51  ;;  %5607 = vmatpush1.bf16.msra.mxu1 %v9444_v20 }
 0x3cb   : > { %5523 = vmatprep.subr.bf16.mxu0 %v9449_v19  ;;  %5629 = vmatprep.subr.bf16.mxu1 %v9452_v55 }
 0x45f   : > { %v4516_v46 = vpop.f32.mrb[80].mxu0  ;;  %v4622_v8 = vpop.f32.mrb[80].mxu1 }
 0x460   : > { %v8684_v7 = vadd.f32 %v4516_v46, %v3776_v62  ;;  %v8692_v13 = vadd.f32 %v4622_v8, %v3784_v44  ;;  %v4518_v43 = vpop.f32.mrb[81].mxu0  ;;  %v4624_v45 = vpop.f32.mrb[81].mxu1 }
 0x461   : > { %v8685_v63 = vadd.f32 %v4518_v43, %v3780_v2  ;;  %v8693_v50 = vadd.f32 %v4624_v45, %v3788_v6  ;;  %v4520_v31 = vpop.f32.mrb[82].mxu0  ;;  %v4626_v3 = vpop.f32.mrb[82].mxu1 }
 0x462   : > { %v8686_v41 = vadd.f32 %v4520_v31, %v3776_v62  ;;  %v8694_v15 = vadd.f32 %v4626_v3, %v3784_v44  ;;  %v4522_v42 = vpop.f32.mrb[83].mxu0  ;;  %v4628_v29 = vpop.f32.mrb[83].mxu1  ;;  %v4641_v56 = vmax.f32 %v8684_v7, 0.0  ;;  %v4643_v60 = vmax.f32 %v8692_v13, 0.0 }
 0x463   : > { %v8687_v53 = vadd.f32 %v4522_v42, %v3780_v2  ;;  %v8695_v11 = vadd.f32 %v4628_v29, %v3788_v6  ;;  %v4642_v5 = vmax.f32 %v8685_v63, 0.0  ;;  %v4644_v12 = vmax.f32 %v8693_v50, 0.0  ;;  %v9467_v42 = vld [vmem:[%s12772_s2 + $0xa64] ss:$16 sps:$4 sm:$0xff]   ;;  %v9470_v29 = vld [vmem:[%s12772_s2 + $0xa6c] ss:$16 sps:$4 sm:$0xff]  }
 0x464   : > { %v4645_v1 = vmax.f32 %v8686_v41, 0.0  ;;  %v4647_v59 = vmax.f32 %v8694_v15, 0.0  ;;  %v9459_v41 = vld [vmem:[%s12772_s2 + $0xa40] ss:$16 sps:$4 sm:$0xff]   ;;  %v9462_v15 = vld [vmem:[%s12772_s2 + $0xa48] ss:$16 sps:$4 sm:$0xff]  }
 0x465   : > { %v4646_v10 = vmax.f32 %v8687_v53, 0.0  ;;  %v4648_v30 = vmax.f32 %v8695_v11, 0.0  ;;  %v9465_v53 = vld [vmem:[%s12772_s2 + $0xa60] ss:$16 sps:$4 sm:$0xff]   ;;  %v9468_v11 = vld [vmem:[%s12772_s2 + $0xa68] ss:$16 sps:$4 sm:$0xff]  }
 0x466   : > { %v12214_v14 = vpack.c.bf16 %v4645_v1, %v4641_v56  ;;  %v12216_v17 = vpack.c.bf16 %v4647_v59, %v4643_v60  ;;  %v9473_v56 = vld [vmem:[%s12772_s2 + $0xa84] ss:$16 sps:$4 sm:$0xff]   ;;  %v9476_v60 = vld [vmem:[%s12772_s2 + $0xa8c] ss:$16 sps:$4 sm:$0xff]   ;;  %v9471_v1 = vld [vmem:[%s12772_s2 + $0xa80] ss:$16 sps:$4 sm:$0xff]  }
 0x467   : > { %v12218_v49 = vpack.c.bf16 %v4646_v10, %v4642_v5  ;;  %v12220_v9 = vpack.c.bf16 %v4648_v30, %v4644_v12  ;;  %v4526_v52 = vpop.f32.mrb[84].mxu0  ;;  %v4632_v22 = vpop.f32.mrb[84].mxu1  ;;  %v9474_v59 = vld [vmem:[%s12772_s2 + $0xa88] ss:$16 sps:$4 sm:$0xff]   ;;  %v9479_v5 = vld [vmem:[%s12772_s2 + $0xaa4] ss:$16 sps:$4 sm:$0xff]  }
 0x468   : > { %v8688_v36 = vadd.f32 %v4526_v52, %v3776_v62  ;;  %v8696_v28 = vadd.f32 %v4632_v22, %v3784_v44  ;;  %v4528_v38 = vpop.f32.mrb[85].mxu0  ;;  %v4634_v40 = vpop.f32.mrb[85].mxu1  ;;  %v9482_v12 = vld [vmem:[%s12772_s2 + $0xaac] ss:$16 sps:$4 sm:$0xff]   ;;  %v9477_v10 = vld [vmem:[%s12772_s2 + $0xaa0] ss:$16 sps:$4 sm:$0xff]  }
 0x469   : > { %v8689_v35 = vadd.f32 %v4528_v38, %v3780_v2  ;;  %v8697_v39 = vadd.f32 %v4634_v40, %v3788_v6  ;;  %v4530_v51 = vpop.f32.mrb[86].mxu0  ;;  %v4636_v20 = vpop.f32.mrb[86].mxu1  ;;  %5502 = vmatprep.mubr.bf16.mxu0 %v12218_v49  ;;  %5608 = vmatprep.mubr.bf16.mxu1 %v12218_v49  ;;  %v9480_v30 = vld [vmem:[%s12772_s2 + $0xaa8] ss:$16 sps:$4 sm:$0xff]   ;;  %v9485_v52 = vld [vmem:[%s12772_s2 + $0xac4] ss:$16 sps:$4 sm:$0xff]  }
 0x46a   : > { %v8690_v19 = vadd.f32 %v4530_v51, %v3776_v62  ;;  %v8698_v55 = vadd.f32 %v4636_v20, %v3784_v44  ;;  %v4532_v54 = vpop.f32.mrb[87].mxu0  ;;  %v4638_v16 = vpop.f32.mrb[87].mxu1  ;;  %5503 = vmatmul.mubr.bf16.vlgmr.msra.gmra.mrb[88].mxu0 %v12214_v14  ;;  %5609 = vmatmul.mubr.bf16.vlgmr.msra.gmra.mrb[88].mxu1 %v12214_v14  ;;  %v9461_v62 = vld [vmem:[%s12772_s2 + $0xa44] ss:$16 sps:$4 sm:$0xff]   ;;  %v4649_v44 = vmax.f32 %v8688_v36, 0.0  ;;  %v4651_v46 = vmax.f32 %v8696_v28, 0.0 }
 0x46b   : > { %v8691_v57 = vadd.f32 %v4532_v54, %v3780_v2  ;;  %v8699_v0 = vadd.f32 %v4638_v16, %v3788_v6  ;;  %5524 = vmatpush1.bf16.msra.mxu0 %v9447_v24  ;;  %5630 = vmatpush1.bf16.msra.mxu1 %v9450_v26  ;;  %v9464_v2 = vld [vmem:[%s12772_s2 + $0xa4c] ss:$16 sps:$4 sm:$0xff]   ;;  %v4650_v6 = vmax.f32 %v8689_v35, 0.0  ;;  %v4652_v13 = vmax.f32 %v8697_v39, 0.0  ;;  %v9483_v24 = vld [vmem:[%s12772_s2 + $0xac0] ss:$16 sps:$4 sm:$0xff]  }
 0x46c   : > { %v4653_v8 = vmax.f32 %v8690_v19, 0.0  ;;  %v4655_v7 = vmax.f32 %v8698_v55, 0.0  ;;  %5525 = vmatprep.subr.bf16.mxu0 %v9455_v23  ;;  %5631 = vmatprep.subr.bf16.mxu1 %v9458_v27  ;;  %v9488_v22 = vld [vmem:[%s12772_s2 + $0xacc] ss:$16 sps:$4 sm:$0xff]   ;;  %v9486_v26 = vld [vmem:[%s12772_s2 + $0xac8] ss:$16 sps:$4 sm:$0xff]  }
 0x46d   : > { %v4654_v43 = vmax.f32 %v8691_v57, 0.0  ;;  %v4656_v45 = vmax.f32 %v8699_v0, 0.0  ;;  %v9491_v36 = vld [vmem:[%s12772_s2 + $0xae4] ss:$16 sps:$4 sm:$0xff]   ;;  %v9494_v28 = vld [vmem:[%s12772_s2 + $0xaec] ss:$16 sps:$4 sm:$0xff]  }
 0x46e   : > { %v12250_v63 = vpack.c.bf16 %v4653_v8, %v4649_v44  ;;  %v12252_v50 = vpack.c.bf16 %v4655_v7, %v4651_v46  ;;  %v9489_v38 = vld [vmem:[%s12772_s2 + $0xae0] ss:$16 sps:$4 sm:$0xff]   ;;  %v9492_v40 = vld [vmem:[%s12772_s2 + $0xae8] ss:$16 sps:$4 sm:$0xff]   ;;  %v9497_v23 = vld [vmem:[%s12772_s2 + $0xb04] ss:$16 sps:$4 sm:$0xff]  }
 0x46f   : > { %v12254_v31 = vpack.c.bf16 %v4654_v43, %v4650_v6  ;;  %v12256_v3 = vpack.c.bf16 %v4656_v45, %v4652_v13  ;;  %5526 = vmatpush1.bf16.msra.mxu0 %v9453_v21  ;;  %5632 = vmatpush1.bf16.msra.mxu1 %v9456_v25  ;;  %v9500_v27 = vld [vmem:[%s12772_s2 + $0xb0c] ss:$16 sps:$4 sm:$0xff]   ;;  %v9495_v35 = vld [vmem:[%s12772_s2 + $0xb00] ss:$16 sps:$4 sm:$0xff]   ;;  %v9498_v39 = vld [vmem:[%s12772_s2 + $0xb08] ss:$16 sps:$4 sm:$0xff]  }
 0x470   : > { %5527 = vmatprep.subr.bf16.mxu0 %v9461_v62  ;;  %5633 = vmatprep.subr.bf16.mxu1 %v9464_v2  ;;  %v9503_v51 = vld [vmem:[%s12772_s2 + $0xb24] ss:$16 sps:$4 sm:$0xff]   ;;  %v9506_v20 = vld [vmem:[%s12772_s2 + $0xb2c] ss:$16 sps:$4 sm:$0xff]   ;;  %v9501_v19 = vld [vmem:[%s12772_s2 + $0xb20] ss:$16 sps:$4 sm:$0xff]  }
 0x471   : > { %5512 = vmatprep.mubr.bf16.mxu0 %v12254_v31  ;;  %5618 = vmatprep.mubr.bf16.mxu1 %v12254_v31  ;;  %v9504_v55 = vld [vmem:[%s12772_s2 + $0xb28] ss:$16 sps:$4 sm:$0xff]   ;;  %v9509_v54 = vld [vmem:[%s12772_s2 + $0xb44] ss:$16 sps:$4 sm:$0xff]   ;;  %v9512_v16 = vld [vmem:[%s12772_s2 + $0xb4c] ss:$16 sps:$4 sm:$0xff]  }
 0x472   : > { %5513 = vmatmul.mubr.bf16.gmra.mrb[92].mxu0 %v12250_v63  ;;  %5619 = vmatmul.mubr.bf16.gmra.mrb[92].mxu1 %v12250_v63  ;;  %v9507_v57 = vld [vmem:[%s12772_s2 + $0xb40] ss:$16 sps:$4 sm:$0xff]   ;;  %v9510_v0 = vld [vmem:[%s12772_s2 + $0xb48] ss:$16 sps:$4 sm:$0xff]   ;;  %v9515_v21 = vld [vmem:[%s12772_s2 + $0xb64] ss:$16 sps:$4 sm:$0xff]  }
 0x473   : > { %5528 = vmatpush1.bf16.msra.mxu0 %v9459_v41  ;;  %5634 = vmatpush1.bf16.msra.mxu1 %v9462_v15  ;;  %v9518_v25 = vld [vmem:[%s12772_s2 + $0xb6c] ss:$16 sps:$4 sm:$0xff]   ;;  %v9513_v62 = vld [vmem:[%s12772_s2 + $0xb60] ss:$16 sps:$4 sm:$0xff]   ;;  %v9516_v44 = vld [vmem:[%s12772_s2 + $0xb68] ss:$16 sps:$4 sm:$0xff]  }
 0x474   : > { %5555 = vmatprep.mubr.bf16.mxu0 %v12220_v9  ;;  %5661 = vmatprep.mubr.bf16.mxu1 %v12220_v9  ;;  %v9521_v46 = vld [vmem:[%s12772_s2 + $0xb84] ss:$16 sps:$4 sm:$0xff]   ;;  %v9524_v8 = vld [vmem:[%s12772_s2 + $0xb8c] ss:$16 sps:$4 sm:$0xff]   ;;  %v9519_v7 = vld [vmem:[%s12772_s2 + $0xb80] ss:$16 sps:$4 sm:$0xff]  }
 0x475   : > { %5529 = vmatprep.subr.bf16.mxu0 %v9467_v42  ;;  %5635 = vmatprep.subr.bf16.mxu1 %v9470_v29  ;;  %v9522_v2 = vld [vmem:[%s12772_s2 + $0xb88] ss:$16 sps:$4 sm:$0xff]   ;;  %v9527_v6 = vld [vmem:[%s12772_s2 + $0xba4] ss:$16 sps:$4 sm:$0xff]   ;;  %v9530_v13 = vld [vmem:[%s12772_s2 + $0xbac] ss:$16 sps:$4 sm:$0xff]  }
 0x476   : > { %v9525_v43 = vld [vmem:[%s12772_s2 + $0xba0] ss:$16 sps:$4 sm:$0xff]   ;;  %v9528_v45 = vld [vmem:[%s12772_s2 + $0xba8] ss:$16 sps:$4 sm:$0xff]   ;;  %v9533_v41 = vld [vmem:[%s12772_s2 + $0xbc4] ss:$16 sps:$4 sm:$0xff]  }
 0x477   : > { %5530 = vmatpush1.bf16.msra.mxu0 %v9465_v53  ;;  %5636 = vmatpush1.bf16.msra.mxu1 %v9468_v11  ;;  %v9536_v15 = vld [vmem:[%s12772_s2 + $0xbcc] ss:$16 sps:$4 sm:$0xff]   ;;  %v9531_v42 = vld [vmem:[%s12772_s2 + $0xbc0] ss:$16 sps:$4 sm:$0xff]   ;;  %v9534_v29 = vld [vmem:[%s12772_s2 + $0xbc8] ss:$16 sps:$4 sm:$0xff]  }
 0x478   : > { %5531 = vmatprep.subr.bf16.mxu0 %v9473_v56  ;;  %5637 = vmatprep.subr.bf16.mxu1 %v9476_v60  ;;  %v9539_v53 = vld [vmem:[%s12772_s2 + $0xbe4] ss:$16 sps:$4 sm:$0xff]   ;;  %v9542_v11 = vld [vmem:[%s12772_s2 + $0xbec] ss:$16 sps:$4 sm:$0xff]   ;;  %v9537_v56 = vld [vmem:[%s12772_s2 + $0xbe0] ss:$16 sps:$4 sm:$0xff]  }
 0x479   : > { %v9540_v60 = vld [vmem:[%s12772_s2 + $0xbe8] ss:$16 sps:$4 sm:$0xff]  }
 0x47b   : > { %5532 = vmatpush1.bf16.msra.mxu0 %v9471_v1  ;;  %5638 = vmatpush1.bf16.msra.mxu1 %v9474_v59  ;;  %v9543_v1 = vld [vmem:[%s12773_s3 + $0x40] sm:$0xff]  }
 0x47c   : > { %5533 = vmatprep.subr.bf16.mxu0 %v9479_v5  ;;  %5639 = vmatprep.subr.bf16.mxu1 %v9482_v12  ;;  %v9544_v59 = vld [vmem:[%s12773_s3 + $0xc0] sm:$0xff]  }
 0x47d   : > { %v9545_v5 = vld [vmem:[%s12773_s3] sm:$0xff]  }
 0x47e   : > { %v9546_v12 = vld [vmem:[%s12773_s3 + $0x80] sm:$0xff]  }
 0x47f   : > { %5534 = vmatpush1.bf16.msra.mxu0 %v9477_v10  ;;  %5640 = vmatpush1.bf16.msra.mxu1 %v9480_v30  ;;  %v9547_v10 = vld [vmem:[%s12773_s3 + $0x48] sm:$0xff]  }
 0x480   : > { %5535 = vmatprep.subr.bf16.mxu0 %v9485_v52  ;;  %5641 = vmatprep.subr.bf16.mxu1 %v9488_v22  ;;  %v9548_v30 = vld [vmem:[%s12773_s3 + $0xc8] sm:$0xff]  }
 0x481   : > { %v9549_v52 = vld [vmem:[%s12773_s3 + $0x8] sm:$0xff]  }
 0x482   : > { %v9550_v22 = vld [vmem:[%s12773_s3 + $0x88] sm:$0xff]  }
 0x483   : > { %5536 = vmatpush1.bf16.msra.mxu0 %v9483_v24  ;;  %5642 = vmatpush1.bf16.msra.mxu1 %v9486_v26  ;;  %v9551_v24 = vld [vmem:[%s12773_s3 + $0x50] sm:$0xff]  }
 0x484   : > { %5537 = vmatprep.subr.bf16.mxu0 %v9491_v36  ;;  %5643 = vmatprep.subr.bf16.mxu1 %v9494_v28  ;;  %v9552_v26 = vld [vmem:[%s12773_s3 + $0xd0] sm:$0xff]  }
 0x485   : > { %v9553_v36 = vld [vmem:[%s12773_s3 + $0x10] sm:$0xff]  }
 0x486   : > { %v9554_v28 = vld [vmem:[%s12773_s3 + $0x90] sm:$0xff]  }
 0x487   : > { %5538 = vmatpush1.bf16.msra.mxu0 %v9489_v38  ;;  %5644 = vmatpush1.bf16.msra.mxu1 %v9492_v40  ;;  %v9555_v38 = vld [vmem:[%s12773_s3 + $0x58] sm:$0xff]  }
 0x488   : > { %5539 = vmatprep.subr.bf16.mxu0 %v9497_v23  ;;  %5645 = vmatprep.subr.bf16.mxu1 %v9500_v27  ;;  %v9556_v40 = vld [vmem:[%s12773_s3 + $0xd8] sm:$0xff]  }
 0x489   : > { %v9557_v23 = vld [vmem:[%s12773_s3 + $0x18] sm:$0xff]  }
 0x48a   : > { %v9558_v27 = vld [vmem:[%s12773_s3 + $0x98] sm:$0xff]  }
 0x48b   : > { %5540 = vmatpush1.bf16.msra.mxu0 %v9495_v35  ;;  %5646 = vmatpush1.bf16.msra.mxu1 %v9498_v39  ;;  %v9559_v35 = vld [vmem:[%s12773_s3 + $0x60] sm:$0xff]  }
 0x48c   : > { %5541 = vmatprep.subr.bf16.mxu0 %v9503_v51  ;;  %5647 = vmatprep.subr.bf16.mxu1 %v9506_v20  ;;  %v9562_v39 = vld [vmem:[%s12773_s3 + $0xa0] sm:$0xff]   ;;  %v9563_v51 = vld [vmem:[%s12773_s3 + $0x68] sm:$0xff]  }
 0x48d   : > { %v9564_v20 = vld [vmem:[%s12773_s3 + $0xe8] sm:$0xff]  }
 0x48f   : > { %5542 = vmatpush1.bf16.msra.mxu0 %v9501_v19  ;;  %5648 = vmatpush1.bf16.msra.mxu1 %v9504_v55  ;;  %v9565_v19 = vld [vmem:[%s12773_s3 + $0x28] sm:$0xff]  }
 0x490   : > { %5543 = vmatprep.subr.bf16.mxu0 %v9509_v54  ;;  %5649 = vmatprep.subr.bf16.mxu1 %v9512_v16  ;;  %v9566_v55 = vld [vmem:[%s12773_s3 + $0xa8] sm:$0xff]   ;;  %v9567_v54 = vld [vmem:[%s12773_s3 + $0x70] sm:$0xff]  }
 0x491   : > { %v9568_v16 = vld [vmem:[%s12773_s3 + $0xf0] sm:$0xff]  }
 0x493   : > { %5544 = vmatpush1.bf16.msra.mxu0 %v9507_v57  ;;  %5650 = vmatpush1.bf16.msra.mxu1 %v9510_v0  ;;  %v9569_v57 = vld [vmem:[%s12773_s3 + $0x30] sm:$0xff]  }
 0x494   : > { %5545 = vmatprep.subr.bf16.mxu0 %v9515_v21  ;;  %5651 = vmatprep.subr.bf16.mxu1 %v9518_v25  ;;  %v9570_v0 = vld [vmem:[%s12773_s3 + $0xb0] sm:$0xff]   ;;  %v9571_v21 = vld [vmem:[%s12773_s3 + $0x78] sm:$0xff]  }
 0x495   : > { %v9572_v25 = vld [vmem:[%s12773_s3 + $0xf8] sm:$0xff]  }
 0x497   : > { %5546 = vmatpush1.bf16.msra.mxu0 %v9513_v62  ;;  %5652 = vmatpush1.bf16.msra.mxu1 %v9516_v44  ;;  %v9573_v62 = vld [vmem:[%s12773_s3 + $0x38] sm:$0xff]  }
 0x498   : > { %5547 = vmatprep.subr.bf16.mxu0 %v9521_v46  ;;  %5653 = vmatprep.subr.bf16.mxu1 %v9524_v8  ;;  %v9574_v44 = vld [vmem:[%s12773_s3 + $0xb8] sm:$0xff]   ;;  %v9575_v46 = vld [vmem:[%s12773_s3 + $0x140] sm:$0xff]  }
 0x499   : > { %v9576_v8 = vld [vmem:[%s12773_s3 + $0x1c0] sm:$0xff]  }
 0x49b   : > { %5548 = vmatpush1.bf16.msra.mxu0 %v9519_v7  ;;  %5654 = vmatpush1.bf16.msra.mxu1 %v9522_v2  ;;  %v9577_v7 = vld [vmem:[%s12773_s3 + $0x100] sm:$0xff]  }
 0x49c   : > { %5549 = vmatprep.subr.bf16.mxu0 %v9527_v6  ;;  %5655 = vmatprep.subr.bf16.mxu1 %v9530_v13  ;;  %v9578_v2 = vld [vmem:[%s12773_s3 + $0x180] sm:$0xff]   ;;  %v9579_v6 = vld [vmem:[%s12773_s3 + $0x148] sm:$0xff]  }
 0x49d   : > { %v9580_v13 = vld [vmem:[%s12773_s3 + $0x1c8] sm:$0xff]  }
 0x49f   : > { %5550 = vmatpush1.bf16.msra.mxu0 %v9525_v43  ;;  %5656 = vmatpush1.bf16.msra.mxu1 %v9528_v45  ;;  %v9581_v43 = vld [vmem:[%s12773_s3 + $0x108] sm:$0xff]  }
 0x4a0   : > { %5551 = vmatprep.subr.bf16.mxu0 %v9533_v41  ;;  %5657 = vmatprep.subr.bf16.mxu1 %v9536_v15  ;;  %v9582_v45 = vld [vmem:[%s12773_s3 + $0x188] sm:$0xff]   ;;  %v9587_v41 = vld [vmem:[%s12773_s3 + $0x158] sm:$0xff]  }
 0x4a1   : > { %v9588_v15 = vld [vmem:[%s12773_s3 + $0x1d8] sm:$0xff]  }
 0x4a3   : > { %5552 = vmatpush1.bf16.msra.mxu0 %v9531_v42  ;;  %5658 = vmatpush1.bf16.msra.mxu1 %v9534_v29  ;;  %v9589_v42 = vld [vmem:[%s12773_s3 + $0x118] sm:$0xff]  }
 0x4a4   : > { %5553 = vmatprep.subr.bf16.mxu0 %v9539_v53  ;;  %5659 = vmatprep.subr.bf16.mxu1 %v9542_v11  ;;  %v9590_v29 = vld [vmem:[%s12773_s3 + $0x198] sm:$0xff]   ;;  %v9595_v53 = vld [vmem:[%s12773_s3 + $0x168] sm:$0xff]  }
 0x4a5   : > { %v9596_v11 = vld [vmem:[%s12773_s3 + $0x1e8] sm:$0xff]  }
 0x4a7   : > { %5554 = vmatpush1.bf16.msra.mxu0 %v9537_v56  ;;  %5660 = vmatpush1.bf16.msra.mxu1 %v9540_v60  ;;  %v9597_v56 = vld [vmem:[%s12773_s3 + $0x128] sm:$0xff]  }
 0x4a8   : > { %8408 = vmatprep.subr.bf16.mxu0 %v9543_v1  ;;  %8436 = vmatprep.subr.bf16.mxu1 %v9544_v59  ;;  %v9598_v60 = vld [vmem:[%s12773_s3 + $0x1a8] sm:$0xff]   ;;  %v9599_v1 = vld [vmem:[%s12773_s3 + $0x170] sm:$0xff]  }
 0x4a9   : > { %v9600_v59 = vld [vmem:[%s12773_s3 + $0x1f0] sm:$0xff]  }
 0x4aa   : > { %5556 = vmatmul.mubr.bf16.vlgmr.msra.gmra.mrb[88].mxu0 %v12216_v17  ;;  %5662 = vmatmul.mubr.bf16.vlgmr.msra.gmra.mrb[88].mxu1 %v12216_v17 }
 0x4ab   : > { %5565 = vmatprep.mubr.bf16.mxu0 %v12256_v3  ;;  %5671 = vmatprep.mubr.bf16.mxu1 %v12256_v3 }
 0x4ac   : > { %8409 = vmatpush3.bf16.msra.mxu0 %v9545_v5  ;;  %8437 = vmatpush3.bf16.msra.mxu1 %v9546_v12  ;;  %v9601_v5 = vld [vmem:[%s12773_s3 + $0x130] sm:$0xff]  }
 0x4ad   : > { %8410 = vmatprep.subr.bf16.mxu0 %v9547_v10  ;;  %8438 = vmatprep.subr.bf16.mxu1 %v9548_v30  ;;  %v9602_v12 = vld [vmem:[%s12773_s3 + $0x1b0] sm:$0xff]   ;;  %v9603_v10 = vld [vmem:[%s12773_s3 + $0x178] sm:$0xff]  }
 0x4ae   : > { %v9604_v30 = vld [vmem:[%s12773_s3 + $0x1f8] sm:$0xff]  }
 0x4b0   : > { %8411 = vmatpush3.bf16.msra.mxu0 %v9549_v52  ;;  %8439 = vmatpush3.bf16.msra.mxu1 %v9550_v22  ;;  %v9605_v52 = vld [vmem:[%s12773_s3 + $0x138] sm:$0xff]  }
 0x4b1   : > { %8412 = vmatprep.subr.bf16.mxu0 %v9551_v24  ;;  %8440 = vmatprep.subr.bf16.mxu1 %v9552_v26  ;;  %v9606_v22 = vld [vmem:[%s12773_s3 + $0x1b8] sm:$0xff]   ;;  %v9607_v24 = vld [vmem:[%s12773_s3 + $0x240] sm:$0xff]  }
 0x4b2   : > { %5566 = vmatmul.mubr.bf16.gmra.mrb[92].mxu0 %v12252_v50  ;;  %5672 = vmatmul.mubr.bf16.gmra.mrb[92].mxu1 %v12252_v50  ;;  %v9608_v26 = vld [vmem:[%s12773_s3 + $0x2c0] sm:$0xff]  }
 0x4b3   : > { %6513 = vmatprep.mubr.bf16.mxu0 %v11791_v37  ;;  %6562 = vmatprep.mubr.bf16.mxu1 %v11793_v47  ;;  %v9560_v37 = vld [vmem:[%s12773_s3 + $0xe0] sm:$0xff]  }
 0x4b4   : > { %8413 = vmatpush3.bf16.msra.mxu0 %v9553_v36  ;;  %8441 = vmatpush3.bf16.msra.mxu1 %v9554_v28  ;;  %v9561_v47 = vld [vmem:[%s12773_s3 + $0x20] sm:$0xff]  }
 0x4b5   : > { %8414 = vmatprep.subr.bf16.mxu0 %v9555_v38  ;;  %8442 = vmatprep.subr.bf16.mxu1 %v9556_v40  ;;  %v9609_v36 = vld [vmem:[%s12773_s3 + $0x200] sm:$0xff]   ;;  %v9611_v38 = vld [vmem:[%s12773_s3 + $0x248] sm:$0xff]  }
 0x4b6   : > { %v9610_v28 = vld [vmem:[%s12773_s3 + $0x280] sm:$0xff]   ;;  %v9612_v40 = vld [vmem:[%s12773_s3 + $0x2c8] sm:$0xff]  }
 0x4b8   : > { %8415 = vmatpush3.bf16.msra.mxu0 %v9557_v23  ;;  %8443 = vmatpush3.bf16.msra.mxu1 %v9558_v27  ;;  %v9613_v23 = vld [vmem:[%s12773_s3 + $0x208] sm:$0xff]  }
 0x4b9   : > { %8416 = vmatprep.subr.bf16.mxu0 %v9559_v35  ;;  %8444 = vmatprep.subr.bf16.mxu1 %v9560_v37  ;;  %v9614_v27 = vld [vmem:[%s12773_s3 + $0x288] sm:$0xff]   ;;  %v9619_v35 = vld [vmem:[%s12773_s3 + $0x258] sm:$0xff]  }
 0x4ba   : > { %v9620_v37 = vld [vmem:[%s12773_s3 + $0x2d8] sm:$0xff]  }
 0x4bc   : > { %8417 = vmatpush3.bf16.msra.mxu0 %v9561_v47  ;;  %8445 = vmatpush3.bf16.msra.mxu1 %v9562_v39  ;;  %v9621_v47 = vld [vmem:[%s12773_s3 + $0x218] sm:$0xff]  }
 0x4bd   : > { %8418 = vmatprep.subr.bf16.mxu0 %v9563_v51  ;;  %8446 = vmatprep.subr.bf16.mxu1 %v9564_v20  ;;  %v9622_v39 = vld [vmem:[%s12773_s3 + $0x298] sm:$0xff]   ;;  %v9623_v51 = vld [vmem:[%s12773_s3 + $0x260] sm:$0xff]  }
 0x4be   : > { %v9626_v20 = vld [vmem:[%s12773_s3 + $0x2a0] sm:$0xff]  }
 0x4c0   : > { %8419 = vmatpush3.bf16.msra.mxu0 %v9565_v19  ;;  %8447 = vmatpush3.bf16.msra.mxu1 %v9566_v55  ;;  %v9627_v19 = vld [vmem:[%s12773_s3 + $0x268] sm:$0xff]  }
 0x4c1   : > { %8420 = vmatprep.subr.bf16.mxu0 %v9567_v54  ;;  %8448 = vmatprep.subr.bf16.mxu1 %v9568_v16  ;;  %v9628_v55 = vld [vmem:[%s12773_s3 + $0x2e8] sm:$0xff]  }
 0x4c2   : > { %v9629_v54 = vld [vmem:[%s12773_s3 + $0x228] sm:$0xff]  }
 0x4c3   : > { %v9630_v16 = vld [vmem:[%s12773_s3 + $0x2a8] sm:$0xff]  }
 0x4c4   : > { %8421 = vmatpush3.bf16.msra.mxu0 %v9569_v57  ;;  %8449 = vmatpush3.bf16.msra.mxu1 %v9570_v0  ;;  %v9631_v57 = vld [vmem:[%s12773_s3 + $0x270] sm:$0xff]  }
 0x4c5   : > { %8422 = vmatprep.subr.bf16.mxu0 %v9571_v21  ;;  %8450 = vmatprep.subr.bf16.mxu1 %v9572_v25  ;;  %v9632_v0 = vld [vmem:[%s12773_s3 + $0x2f0] sm:$0xff]  }
 0x4c6   : > { %v9633_v21 = vld [vmem:[%s12773_s3 + $0x230] sm:$0xff]  }
 0x4c7   : > { %v9634_v25 = vld [vmem:[%s12773_s3 + $0x2b0] sm:$0xff]  }
 0x4c8   : > { %8423 = vmatpush3.bf16.msra.mxu0 %v9573_v62  ;;  %8451 = vmatpush3.bf16.msra.mxu1 %v9574_v44  ;;  %v9635_v62 = vld [vmem:[%s12773_s3 + $0x278] sm:$0xff]  }
 0x4c9   : > { %8464 = vmatprep.subr.bf16.mxu0 %v9575_v46  ;;  %8492 = vmatprep.subr.bf16.mxu1 %v9576_v8  ;;  %v9636_v44 = vld [vmem:[%s12773_s3 + $0x2f8] sm:$0xff]  }
 0x4ca   : > { %v9637_v46 = vld [vmem:[%s12773_s3 + $0x238] sm:$0xff]  }
 0x4cb   : > { %6514 = vmatmul.mubr.bf16.vlgmr.msra.gmra.mrb[96].mxu0 %v11787_v4  ;;  %6563 = vmatmul.mubr.bf16.vlgmr.msra.gmra.mrb[96].mxu1 %v11789_v33  ;;  %v9583_v4 = vld [vmem:[%s12773_s3 + $0x150] sm:$0xff]   ;;  %v9638_v8 = vld [vmem:[%s12773_s3 + $0x2b8] sm:$0xff]  }
 0x4cc   : > { %6521 = vmatprep.mubr.bf16.mxu0 %v11827_v34  ;;  %6570 = vmatprep.mubr.bf16.mxu1 %v11829_v48  ;;  %v9584_v33 = vld [vmem:[%s12773_s3 + $0x1d0] sm:$0xff]  }
 0x4cd   : > { %8465 = vmatpush3.bf16.msra.mxu0 %v9577_v7  ;;  %8493 = vmatpush3.bf16.msra.mxu1 %v9578_v2  ;;  %v9585_v34 = vld [vmem:[%s12773_s3 + $0x110] sm:$0xff]   ;;  %v4796_v7 = vsub.s32 3, %v11064_v18  ;;  %v4800_v2 = vsub.s32 7, %v11064_v18 }
 0x4ce   : > { %8466 = vmatprep.subr.bf16.mxu0 %v9579_v6  ;;  %8494 = vmatprep.subr.bf16.mxu1 %v9580_v13  ;;  %v9586_v48 = vld [vmem:[%s12773_s3 + $0x190] sm:$0xff]   ;;  %v9715_v6 = vld [vmem:[%s12775_s5] sm:$0xff] }
 0x4cf   : > { %v4797_v13 = vrot.slane %v9715_v6, %v4796_v7 }
 0x4d1   : > { %8467 = vmatpush3.bf16.msra.mxu0 %v9581_v43  ;;  %8495 = vmatpush3.bf16.msra.mxu1 %v9582_v45  ;;  %v4805_v43 = vrot.slane %v12209_v61, %v4796_v7  ;;  %v4801_v45 = vrot.slane %v9715_v6, %v4800_v2 }
 0x4d2   : > { %8468 = vmatprep.subr.bf16.mxu0 %v9583_v4  ;;  %8496 = vmatprep.subr.bf16.mxu1 %v9584_v33  ;;  %v4809_v4 = vrot.slane %v12209_v61, %v4800_v2  ;;  %v4817_v33 = vrot.slane %v4797_v13, %v4796_v7 }
 0x4d3   : > { %6522 = vmatmul.mubr.bf16.gmra.mrb[100].mxu0 %v11823_v32  ;;  %6571 = vmatmul.mubr.bf16.gmra.mrb[100].mxu1 %v11825_v58  ;;  %v9591_v32 = vld [vmem:[%s12773_s3 + $0x160] sm:$0xff]  }
 0x4d4   : > { %6611 = vmatprep.mubr.bf16.mxu0 %v12218_v49  ;;  %6660 = vmatprep.mubr.bf16.mxu1 %v12220_v9  ;;  %v9592_v58 = vld [vmem:[%s12773_s3 + $0x1e0] sm:$0xff]  }
 0x4d5   : > { %8469 = vmatpush3.bf16.msra.mxu0 %v9585_v34  ;;  %8497 = vmatpush3.bf16.msra.mxu1 %v9586_v48  ;;  %v9593_v49 = vld [vmem:[%s12773_s3 + $0x120] sm:$0xff]   ;;  %v4825_v34 = vrot.slane %v4805_v43, %v4796_v7  ;;  %v4821_v48 = vrot.slane %v4801_v45, %v4796_v7 }
 0x4d6   : > { %8470 = vmatprep.subr.bf16.mxu0 %v9587_v41  ;;  %8498 = vmatprep.subr.bf16.mxu1 %v9588_v15  ;;  %v9594_v9 = vld [vmem:[%s12773_s3 + $0x1a0] sm:$0xff]   ;;  %v4829_v41 = vrot.slane %v4809_v4, %v4796_v7 }
 0x4d7   : > { %v7816_v45 = vld [vmem:[%s12776_s6] ss:$0 sm:$0xff] }
 0x4d9   : > { %8471 = vmatpush3.bf16.msra.mxu0 %v9589_v42  ;;  %8499 = vmatpush3.bf16.msra.mxu1 %v9590_v29 }
 0x4da   : > { %8472 = vmatprep.subr.bf16.mxu0 %v9591_v32  ;;  %8500 = vmatprep.subr.bf16.mxu1 %v9592_v58 }
 0x4dd   : > { %8473 = vmatpush3.bf16.msra.mxu0 %v9593_v49  ;;  %8501 = vmatpush3.bf16.msra.mxu1 %v9594_v9 }
 0x4de   : > { %8474 = vmatprep.subr.bf16.mxu0 %v9595_v53  ;;  %8502 = vmatprep.subr.bf16.mxu1 %v9596_v11 }
 0x4e1   : > { %8475 = vmatpush3.bf16.msra.mxu0 %v9597_v56  ;;  %8503 = vmatpush3.bf16.msra.mxu1 %v9598_v60 }
 0x4e2   : > { %8476 = vmatprep.subr.bf16.mxu0 %v9599_v1  ;;  %8504 = vmatprep.subr.bf16.mxu1 %v9600_v59 }
 0x4e5   : > { %8477 = vmatpush3.bf16.msra.mxu0 %v9601_v5  ;;  %8505 = vmatpush3.bf16.msra.mxu1 %v9602_v12 }
 0x4e6   : > { %8478 = vmatprep.subr.bf16.mxu0 %v9603_v10  ;;  %8506 = vmatprep.subr.bf16.mxu1 %v9604_v30 }
 0x4e9   : > { %8479 = vmatpush3.bf16.msra.mxu0 %v9605_v52  ;;  %8507 = vmatpush3.bf16.msra.mxu1 %v9606_v22 }
 0x4ea   : > { %8520 = vmatprep.subr.bf16.mxu0 %v9607_v24  ;;  %8548 = vmatprep.subr.bf16.mxu1 %v9608_v26 }
 0x4ec   : > { %6612 = vmatmul.mubr.bf16.vlgmr.msra.gmra.mrb[104].mxu0 %v12214_v14  ;;  %6661 = vmatmul.mubr.bf16.vlgmr.msra.gmra.mrb[104].mxu1 %v12216_v17  ;;  %v9615_v14 = vld [vmem:[%s12773_s3 + $0x250] sm:$0xff]  }
 0x4ed   : > { %6619 = vmatprep.mubr.bf16.mxu0 %v12254_v31  ;;  %6668 = vmatprep.mubr.bf16.mxu1 %v12256_v3  ;;  %v9616_v17 = vld [vmem:[%s12773_s3 + $0x2d0] sm:$0xff]  }
 0x4ee   : > { %8521 = vmatpush3.bf16.msra.mxu0 %v9609_v36  ;;  %8549 = vmatpush3.bf16.msra.mxu1 %v9610_v28  ;;  %v9617_v31 = vld [vmem:[%s12773_s3 + $0x210] sm:$0xff]  }
 0x4ef   : > { %8522 = vmatprep.subr.bf16.mxu0 %v9611_v38  ;;  %8550 = vmatprep.subr.bf16.mxu1 %v9612_v40  ;;  %v9618_v3 = vld [vmem:[%s12773_s3 + $0x290] sm:$0xff]  }
 0x4f2   : > { %8523 = vmatpush3.bf16.msra.mxu0 %v9613_v23  ;;  %8551 = vmatpush3.bf16.msra.mxu1 %v9614_v27 }
 0x4f3   : > { %8524 = vmatprep.subr.bf16.mxu0 %v9615_v14  ;;  %8552 = vmatprep.subr.bf16.mxu1 %v9616_v17 }
 0x4f4   : > { %6620 = vmatmul.mubr.bf16.gmra.mrb[108].mxu0 %v12250_v63  ;;  %6669 = vmatmul.mubr.bf16.gmra.mrb[108].mxu1 %v12252_v50  ;;  %v9624_v63 = vld [vmem:[%s12773_s3 + $0x2e0] sm:$0xff]  }
 0x4f5   : > { %v9625_v50 = vld [vmem:[%s12773_s3 + $0x220] sm:$0xff]  }
 0x4f6   : > { %8525 = vmatpush3.bf16.msra.mxu0 %v9617_v31  ;;  %8553 = vmatpush3.bf16.msra.mxu1 %v9618_v3 }
 0x4f7   : > { %8526 = vmatprep.subr.bf16.mxu0 %v9619_v35  ;;  %8554 = vmatprep.subr.bf16.mxu1 %v9620_v37 }
 0x4fa   : > { %8527 = vmatpush3.bf16.msra.mxu0 %v9621_v47  ;;  %8555 = vmatpush3.bf16.msra.mxu1 %v9622_v39 }
 0x4fb   : > { %8528 = vmatprep.subr.bf16.mxu0 %v9623_v51  ;;  %8556 = vmatprep.subr.bf16.mxu1 %v9624_v63 }
 0x4fe   : > { %8529 = vmatpush3.bf16.msra.mxu0 %v9625_v50  ;;  %8557 = vmatpush3.bf16.msra.mxu1 %v9626_v20 }
 0x4ff   : > { %8530 = vmatprep.subr.bf16.mxu0 %v9627_v19  ;;  %8558 = vmatprep.subr.bf16.mxu1 %v9628_v55 }
 0x502   : > { %8531 = vmatpush3.bf16.msra.mxu0 %v9629_v54  ;;  %8559 = vmatpush3.bf16.msra.mxu1 %v9630_v16 }
 0x503   : > { %8532 = vmatprep.subr.bf16.mxu0 %v9631_v57  ;;  %8560 = vmatprep.subr.bf16.mxu1 %v9632_v0 }
 0x506   : > { %8533 = vmatpush3.bf16.msra.mxu0 %v9633_v21  ;;  %8561 = vmatpush3.bf16.msra.mxu1 %v9634_v25 }
 0x507   : > { %8534 = vmatprep.subr.bf16.mxu0 %v9635_v62  ;;  %8562 = vmatprep.subr.bf16.mxu1 %v9636_v44 }
 0x50a   : > { %8535 = vmatpush3.bf16.msra.mxu0 %v9637_v46  ;;  %8563 = vmatpush3.bf16.msra.mxu1 %v9638_v8 }
 0x57d   : > { %v5557_v15 = vpop.f32.mrb[88].mxu0  ;;  %v5663_v42 = vpop.f32.mrb[88].mxu1 }
 0x57e   : > { %v8700_v29 = vadd.f32 %v5557_v15, %v4817_v33  ;;  %v8708_v32 = vadd.f32 %v5663_v42, %v4825_v34  ;;  %v5559_v58 = vpop.f32.mrb[89].mxu0  ;;  %v5665_v18 = vpop.f32.mrb[89].mxu1 }
 0x57f   : > { %v8701_v49 = vadd.f32 %v5559_v58, %v4821_v48  ;;  %v8709_v9 = vadd.f32 %v5665_v18, %v4829_v41  ;;  %v5561_v53 = vpop.f32.mrb[90].mxu0  ;;  %v5667_v11 = vpop.f32.mrb[90].mxu1 }
 0x580   : > { %v8702_v56 = vadd.f32 %v5561_v53, %v4817_v33  ;;  %v8710_v60 = vadd.f32 %v5667_v11, %v4825_v34  ;;  %v5563_v1 = vpop.f32.mrb[91].mxu0  ;;  %v5669_v59 = vpop.f32.mrb[91].mxu1  ;;  %v5682_v12 = vmax.f32 %v8700_v29, 0.0  ;;  %v5684_v10 = vmax.f32 %v8708_v32, 0.0 }
 0x581   : > { %v8703_v5 = vadd.f32 %v5563_v1, %v4821_v48  ;;  %v8711_v61 = vadd.f32 %v5669_v59, %v4829_v41  ;;  %v5683_v22 = vmax.f32 %v8701_v49, 0.0  ;;  %v5685_v24 = vmax.f32 %v8709_v9, 0.0 }
 0x582   : > { %v5686_v30 = vmax.f32 %v8702_v56, 0.0  ;;  %v5688_v52 = vmax.f32 %v8710_v60, 0.0 }
 0x583   : > { %v5687_v26 = vmax.f32 %v8703_v5, 0.0  ;;  %v5689_v36 = vmax.f32 %v8711_v61, 0.0 }
 0x584   : > { %v5698_v28 = vpack.c.bf16 %v5686_v30, %v5682_v12  ;;  %v5700_v38 = vpack.c.bf16 %v5688_v52, %v5684_v10 }
 0x585   : > { %v5699_v40 = vpack.c.bf16 %v5687_v26, %v5683_v22  ;;  %v5701_v23 = vpack.c.bf16 %v5689_v36, %v5685_v24  ;;  %v5567_v27 = vpop.f32.mrb[92].mxu0  ;;  %v5673_v14 = vpop.f32.mrb[92].mxu1 }
 0x586   : > { %v8704_v17 = vadd.f32 %v5567_v27, %v4817_v33  ;;  %v8712_v31 = vadd.f32 %v5673_v14, %v4825_v34  ;;  %v5569_v3 = vpop.f32.mrb[93].mxu0  ;;  %v5675_v35 = vpop.f32.mrb[93].mxu1 }
 0x587   : > { %v8705_v37 = vadd.f32 %v5569_v3, %v4821_v48  ;;  %v8713_v47 = vadd.f32 %v5675_v35, %v4829_v41  ;;  %v5571_v39 = vpop.f32.mrb[94].mxu0  ;;  %v5677_v51 = vpop.f32.mrb[94].mxu1  ;;  %6709 = vmatprep.mubr.bf16.mxu0 %v5699_v40  ;;  %6758 = vmatprep.mubr.bf16.mxu1 %v5701_v23 }
 0x588   : > { %v8706_v63 = vadd.f32 %v5571_v39, %v4817_v33  ;;  %v8714_v50 = vadd.f32 %v5677_v51, %v4825_v34  ;;  %v5573_v20 = vpop.f32.mrb[95].mxu0  ;;  %v5679_v19 = vpop.f32.mrb[95].mxu1  ;;  %6710 = vmatmul.mubr.bf16.vlgmr.msra.gmra.mrb[112].mxu0 %v5698_v28  ;;  %6759 = vmatmul.mubr.bf16.vlgmr.msra.gmra.mrb[112].mxu1 %v5700_v38  ;;  %v5690_v16 = vmax.f32 %v8704_v17, 0.0  ;;  %v5692_v57 = vmax.f32 %v8712_v31, 0.0 }
 0x589   : > { %v8707_v55 = vadd.f32 %v5573_v20, %v4821_v48  ;;  %v8715_v54 = vadd.f32 %v5679_v19, %v4829_v41  ;;  %v5691_v25 = vmax.f32 %v8705_v37, 0.0  ;;  %v5693_v62 = vmax.f32 %v8713_v47, 0.0 }
 0x58a   : > { %v5694_v0 = vmax.f32 %v8706_v63, 0.0  ;;  %v5696_v21 = vmax.f32 %v8714_v50, 0.0 }
 0x58b   : > { %v5695_v44 = vmax.f32 %v8707_v55, 0.0  ;;  %v5697_v46 = vmax.f32 %v8715_v54, 0.0 }
 0x58c   : > { %v5702_v8 = vpack.c.bf16 %v5694_v0, %v5690_v16  ;;  %v5704_v7 = vpack.c.bf16 %v5696_v21, %v5692_v57 }
 0x58d   : > { %v5703_v2 = vpack.c.bf16 %v5695_v44, %v5691_v25  ;;  %v5705_v6 = vpack.c.bf16 %v5697_v46, %v5693_v62 }
 0x58f   : > { %6717 = vmatprep.mubr.bf16.mxu0 %v5703_v2  ;;  %6766 = vmatprep.mubr.bf16.mxu1 %v5705_v6 }
 0x590   : > { %6718 = vmatmul.mubr.bf16.gmra.mrb[116].mxu0 %v5702_v8  ;;  %6767 = vmatmul.mubr.bf16.gmra.mrb[116].mxu1 %v5704_v7 }
 0x59e   : > { %v8424_v13 = vpop.f32.mrb[96].mxu0  ;;  %v8452_v43 = vpop.f32.mrb[96].mxu1 }
 0x59f   : > { %v8425_v4 = vpop.f32.mrb[97].mxu0  ;;  %v8453_v33 = vpop.f32.mrb[97].mxu1 }
 0x5a0   : > { %v8426_v34 = vadd.f32 %v8425_v4, %v8424_v13  ;;  %v8454_v48 = vadd.f32 %v8453_v33, %v8452_v43  ;;  %v8427_v41 = vpop.f32.mrb[98].mxu0  ;;  %v8455_v15 = vpop.f32.mrb[98].mxu1  ;;  %v9639_v43 = vld [vmem:[%s12774_s4] sm:$0xff]  }
 0x5a1   : > { %v8428_v42 = vpop.f32.mrb[99].mxu0  ;;  %v8456_v29 = vpop.f32.mrb[99].mxu1  ;;  %8660 = vmatprep.subr.bf16.mxu0 %v9639_v43 }
 0x5a2   : > { %v6516_v32 = vadd.f32 %v8426_v34, %v7816_v45  ;;  %v8429_v58 = vadd.f32 %v8428_v42, %v8427_v41  ;;  %v8457_v18 = vadd.f32 %v8456_v29, %v8455_v15  ;;  %8661 = vmatpush3.bf16.msra.mxu0 %v9639_v43 }
 0x5a4   : > { %v6565_v49 = vadd.f32 %v8454_v48, %v6516_v32  ;;  %v6519_v9 = vadd.f32 %v8429_v58, %v7816_v45 }
 0x5a6   : > { %v6568_v53 = vadd.f32 %v8457_v18, %v6519_v9  ;;  %v8430_v11 = vpop.f32.mrb[100].mxu0  ;;  %v8458_v56 = vpop.f32.mrb[100].mxu1 }
 0x5a7   : > { %v8431_v60 = vpop.f32.mrb[101].mxu0  ;;  %v8459_v1 = vpop.f32.mrb[101].mxu1 }
 0x5a8   : > { %v8432_v59 = vadd.f32 %v8431_v60, %v8430_v11  ;;  %v8460_v5 = vadd.f32 %v8459_v1, %v8458_v56  ;;  %v8433_v61 = vpop.f32.mrb[102].mxu0  ;;  %v8461_v12 = vpop.f32.mrb[102].mxu1 }
 0x5a9   : > { %v8434_v10 = vpop.f32.mrb[103].mxu0  ;;  %v8462_v30 = vpop.f32.mrb[103].mxu1 }
 0x5aa   : > { %v6524_v52 = vadd.f32 %v8432_v59, %v7816_v45  ;;  %v8435_v22 = vadd.f32 %v8434_v10, %v8433_v61  ;;  %v8463_v24 = vadd.f32 %v8462_v30, %v8461_v12 }
 0x5ac   : > { %v6573_v26 = vadd.f32 %v8460_v5, %v6524_v52  ;;  %v6527_v36 = vadd.f32 %v8435_v22, %v7816_v45  ;;  %v9640_v45 = vld [vmem:[%s12774_s4 + $0x8] sm:$0xff]  }
 0x5ad   : > { %8662 = vmatprep.subr.bf16.mxu0 %v9640_v45 }
 0x5ae   : > { %v6576_v28 = vadd.f32 %v8463_v24, %v6527_v36  ;;  %8663 = vmatpush3.bf16.msra.mxu0 %v9640_v45 }
 0x5bf   : > { %v8480_v38 = vpop.f32.mrb[104].mxu0  ;;  %v8508_v40 = vpop.f32.mrb[104].mxu1 }
 0x5c0   : > { %v8481_v23 = vpop.f32.mrb[105].mxu0  ;;  %v8509_v27 = vpop.f32.mrb[105].mxu1 }
 0x5c1   : > { %v8482_v14 = vadd.f32 %v8481_v23, %v8480_v38  ;;  %v8510_v17 = vadd.f32 %v8509_v27, %v8508_v40  ;;  %v8483_v31 = vpop.f32.mrb[106].mxu0  ;;  %v8511_v3 = vpop.f32.mrb[106].mxu1 }
 0x5c2   : > { %v8484_v35 = vpop.f32.mrb[107].mxu0  ;;  %v8512_v37 = vpop.f32.mrb[107].mxu1 }
 0x5c3   : > { %v6614_v47 = vadd.f32 %v8482_v14, %v6565_v49  ;;  %v8485_v39 = vadd.f32 %v8484_v35, %v8483_v31  ;;  %v8513_v51 = vadd.f32 %v8512_v37, %v8511_v3  ;;  %v7913_v35 = vld [vmem:[%s12777_s7] ss:$0 sm:$0xff] }
 0x5c5   : > { %v6663_v63 = vadd.f32 %v8510_v17, %v6614_v47  ;;  %v6617_v50 = vadd.f32 %v8485_v39, %v6568_v53 }
 0x5c7   : > { %v6666_v20 = vadd.f32 %v8513_v51, %v6617_v50  ;;  %v8486_v19 = vpop.f32.mrb[108].mxu0  ;;  %v8514_v55 = vpop.f32.mrb[108].mxu1 }
 0x5c8   : > { %v8487_v54 = vpop.f32.mrb[109].mxu0  ;;  %v8515_v16 = vpop.f32.mrb[109].mxu1 }
 0x5c9   : > { %v8488_v57 = vadd.f32 %v8487_v54, %v8486_v19  ;;  %v8516_v0 = vadd.f32 %v8515_v16, %v8514_v55  ;;  %v8489_v21 = vpop.f32.mrb[110].mxu0  ;;  %v8517_v25 = vpop.f32.mrb[110].mxu1 }
 0x5ca   : > { %v8490_v62 = vpop.f32.mrb[111].mxu0  ;;  %v8518_v44 = vpop.f32.mrb[111].mxu1 }
 0x5cb   : > { %v6622_v46 = vadd.f32 %v8488_v57, %v6573_v26  ;;  %v8491_v8 = vadd.f32 %v8490_v62, %v8489_v21  ;;  %v8519_v7 = vadd.f32 %v8518_v44, %v8517_v25 }
 0x5cd   : > { %v6671_v2 = vadd.f32 %v8516_v0, %v6622_v46  ;;  %v6625_v6 = vadd.f32 %v8491_v8, %v6576_v28 }
 0x5cf   : > { %v6674_v13 = vadd.f32 %v8519_v7, %v6625_v6 }
 0x65b   : > { %v8536_v4 = vpop.f32.mrb[112].mxu0  ;;  %v8564_v33 = vpop.f32.mrb[112].mxu1 }
 0x65c   : > { %v8537_v34 = vpop.f32.mrb[113].mxu0  ;;  %v8565_v48 = vpop.f32.mrb[113].mxu1 }
 0x65d   : > { %v8538_v41 = vadd.f32 %v8537_v34, %v8536_v4  ;;  %v8566_v15 = vadd.f32 %v8565_v48, %v8564_v33  ;;  %v8539_v42 = vpop.f32.mrb[114].mxu0  ;;  %v8567_v29 = vpop.f32.mrb[114].mxu1 }
 0x65e   : > { %v8540_v32 = vpop.f32.mrb[115].mxu0  ;;  %v8568_v58 = vpop.f32.mrb[115].mxu1 }
 0x65f   : > { %v6712_v18 = vadd.f32 %v8538_v41, %v6663_v63  ;;  %v8541_v49 = vadd.f32 %v8540_v32, %v8539_v42  ;;  %v8569_v9 = vadd.f32 %v8568_v58, %v8567_v29 }
 0x661   : > { %v6761_v53 = vadd.f32 %v8566_v15, %v6712_v18  ;;  %v6715_v11 = vadd.f32 %v8541_v49, %v6666_v20 }
 0x663   : > { %v6764_v56 = vadd.f32 %v8569_v9, %v6715_v11  ;;  %v8542_v60 = vpop.f32.mrb[116].mxu0  ;;  %v8570_v1 = vpop.f32.mrb[116].mxu1  ;;  %v6775_v61 = vmax.f32 %v6761_v53, 0.0 }
 0x664   : > { %v8543_v59 = vpop.f32.mrb[117].mxu0  ;;  %v8571_v5 = vpop.f32.mrb[117].mxu1 }
 0x665   : > { %v6776_v12 = vmax.f32 %v6764_v56, 0.0  ;;  %v8544_v10 = vadd.f32 %v8543_v59, %v8542_v60  ;;  %v8572_v30 = vadd.f32 %v8571_v5, %v8570_v1  ;;  %v8545_v52 = vpop.f32.mrb[118].mxu0  ;;  %v8573_v22 = vpop.f32.mrb[118].mxu1 }
 0x666   : > { %v8546_v24 = vpop.f32.mrb[119].mxu0  ;;  %v8574_v26 = vpop.f32.mrb[119].mxu1 }
 0x667   : > { %v6779_v36 = vpack.c.bf16 %v6776_v12, %v6775_v61  ;;  %v6720_v28 = vadd.f32 %v8544_v10, %v6671_v2  ;;  %v8547_v38 = vadd.f32 %v8546_v24, %v8545_v52  ;;  %v8575_v40 = vadd.f32 %v8574_v26, %v8573_v22 }
 0x669   : > { %v6769_v23 = vadd.f32 %v8572_v30, %v6720_v28  ;;  %v6723_v27 = vadd.f32 %v8547_v38, %v6674_v13  ;;  %8664 = vmatprep.mubr.msk.bf16.mxu0 %vm6804_vm0, %v6779_v36 }
 0x66b   : > { %v6772_v14 = vadd.f32 %v8575_v40, %v6723_v27  ;;  %v6777_v17 = vmax.f32 %v6769_v23, 0.0 }
 0x66d   : > { %v6778_v31 = vmax.f32 %v6772_v14, 0.0 }
 0x66f   : > { %v6780_v3 = vpack.c.bf16 %v6778_v31, %v6777_v17 }
 0x671   : > { %8665 = vmatmul.mubr.msk.bf16.vlgmr.msra.gmra.mrb[120].mxu0 %vm6804_vm0, %v6780_v3 }
 0x744   : > { %v8666_v37 = vpop.f32.mrb[120].mxu0 }
 0x745   : > { %v6845_v47 = vpop.f32.mrb[121].mxu0  ;;  %v6854_v20 = vadd.f32 %v8666_v37, %v7913_v35 }
 0x746   : > { %v6846_v39 = vadd.f32 %v7913_v35, %v6845_v47  ;;  %v8667_v51 = vpop.f32.mrb[122].mxu0 }
 0x747   : > { %v6848_v63 = vpop.f32.mrb[123].mxu0  ;;  %v6857_v19 = vadd.f32 %v8667_v51, %v7913_v35  ;;  %6862 = vst [vmem:[%s494_s21 + $0x10] sm:$0xff] %v6854_v20 }
 0x748   : > { %6860 = vst [vmem:[%s494_s21] sm:$0xff] %v6846_v39  ;;  %v6849_v50 = vadd.f32 %v7913_v35, %v6848_v63 }
 0x749   : > { %6863 = vst [vmem:[%s494_s21 + $0x18] sm:$0xff] %v6857_v19 }
 0x74a   : > { %6861 = vst [vmem:[%s494_s21 + $0x8] sm:$0xff] %v6849_v50 }
 0x74b PF: > { %p15_p9 = scmp.ge.s32.totalorder %s9802_s9, 4   ;;  %s12827_s27 = smov %s9734_s28 }
 0x74c   : > { %s12828_s28 = smov %s9811_s12  ;;  %s12829_s29 = smov %s9802_s9 }
 0x74d   :  { %17 = sbr.rel (!%p15_p9) target bundleno = 2 (0x2), region = 124 }

</bundles_post_ra>
